<compile_context>
chip_gen: v7x
topology: tpu7x:2x2x1
jax: 0.10.0
libtpu: 0.0.40
codegen_flags: <defaults>
</compile_context>

<pallas_src>
import functools
import math

import jax
import jax.numpy as jnp
from jax.experimental import pallas as pl
from jax.experimental.pallas import tpu as pltpu

LN_EPS = 1e-12          # HF ViT layer_norm_eps
NEG_INF = -1e30         # additive key-padding mask value


def _round_up(n, m):
    return ((n + m - 1) // m) * m


@functools.lru_cache(maxsize=None)
def _vmem_limit_bytes():
    """Generation-aware scoped-VMEM cap (~3/4 of per-core VMEM), clamped."""
    try:
        cap = getattr(pltpu.get_tpu_info(), "vmem_capacity_bytes", None)
        if cap:
            return int(min(max(int(cap) * 3 // 4, 32 * 1024 * 1024),
                           96 * 1024 * 1024))
    except Exception:
        pass
    return 48 * 1024 * 1024  # safe on v5e/v6e/v7x


# ----------------------------- in-kernel helpers -----------------------------

def _layernorm(x, g, b, eps):
    mu = jnp.mean(x, axis=-1, keepdims=True)
    xc = x - mu
    var = jnp.mean(xc * xc, axis=-1, keepdims=True)
    return xc * jax.lax.rsqrt(var + eps) * g + b


def _gelu(x):  # exact erf GELU (HF ViT default "gelu")
    return 0.5 * x * (1.0 + jax.lax.erf(x * 0.7071067811865476))


# ----------------------------- Pallas kernels -----------------------------

def _embed_kernel(p_ref, w_ref, b_ref, cls_ref, pos_ref, o_ref, *, s_pad):
    """Patch projection + [CLS] + position embedding for one batch element.

    p_ref: (1, NP, CPPp) f32, w_ref: (CPPp, H) bf16, b/cls: (1, H) f32,
    pos_ref: (s_pad, H) f32 (rows >= NP+1 are zero), o_ref: (1, s_pad, H) f32.
    """
    proj = jnp.dot(p_ref[0].astype(jnp.bfloat16), w_ref[...],
                   preferred_element_type=jnp.float32) + b_ref[...]     # (NP, H)
    np_, h = proj.shape
    pad = jnp.zeros((s_pad - np_ - 1, h), jnp.float32)
    tok = jnp.concatenate([cls_ref[...], proj, pad], axis=0)            # (s_pad, H)
    o_ref[0] = tok + pos_ref[...]


def _encoder_kernel(h_ref, g1_ref, b1_ref, wqkv_ref, bqkv_ref, wo_ref, bo_ref,
                    g2_ref, b2_ref, w1_ref, bm1_ref, w2_ref, bm2_ref,
                    gf_ref, bf_ref, wc_ref, bc_ref,
                    logits_ref, res_ref,
                    *, nh, dh, s_real, eps):
    """One (batch-element, layer) grid step of the fused encoder.

    Residual stream is VMEM-resident in `res_ref` across the whole l axis;
    the final LN + classifier run on the last layer step only.
    """
    l = pl.program_id(1)

    @pl.when(l == 0)
    def _():
        res_ref[...] = h_ref[0]                      # load embeddings once per b
        logits_ref[...] = jnp.zeros_like(logits_ref)

    x = res_ref[...]                                 # (S, H) f32
    H = nh * dh
    S = x.shape[0]

    # ---- attention: LN1 + fused QKV (1/sqrt(dh) pre-folded into Q cols) ----
    ln1 = _layernorm(x, g1_ref[0], b1_ref[0], eps)
    qkv = jnp.dot(ln1.astype(jnp.bfloat16), wqkv_ref[0],
                  preferred_element_type=jnp.float32) + bqkv_ref[0]     # (S, 3H)

    # additive mask on padded key columns (hoisted out of the head loop)
    key_id = jax.lax.broadcasted_iota(jnp.int32, (1, S), 1)
    kmask = jnp.where(key_id < s_real, 0.0, NEG_INF).astype(jnp.float32)

    ctxs = []
    for hd in range(nh):                             # tiny static head loop
        q = qkv[:, hd * dh:(hd + 1) * dh].astype(jnp.bfloat16)
        k = qkv[:, H + hd * dh:H + (hd + 1) * dh].astype(jnp.bfloat16)
        v = qkv[:, 2 * H + hd * dh:2 * H + (hd + 1) * dh].astype(jnp.bfloat16)
        # scores without a physical transpose: contract the head dims directly
        s = jax.lax.dot_general(q, k, (((1,), (1,)), ((), ())),
                                preferred_element_type=jnp.float32) + kmask
        m = jnp.max(s, axis=-1, keepdims=True)
        p = jnp.exp(s - m)
        p = p * pl.reciprocal(jnp.sum(p, axis=-1, keepdims=True), approx=True)
        ctxs.append(jnp.dot(p.astype(jnp.bfloat16), v,
                            preferred_element_type=jnp.float32))        # (S, dh)

    # concat heads -> ONE K=H output projection (full MXU contraction width)
    ctx = jnp.concatenate(ctxs, axis=-1).astype(jnp.bfloat16)           # (S, H)
    attn = jnp.dot(ctx, wo_ref[0],
                   preferred_element_type=jnp.float32) + bo_ref[0]
    x = x + attn                                     # residual 1

    # ---- MLP: LN2 + up-proj + GELU + down-proj + residual ----
    ln2 = _layernorm(x, g2_ref[0], b2_ref[0], eps)
    mid = _gelu(jnp.dot(ln2.astype(jnp.bfloat16), w1_ref[0],
                        preferred_element_type=jnp.float32) + bm1_ref[0])
    mlp = jnp.dot(mid.astype(jnp.bfloat16), w2_ref[0],
                  preferred_element_type=jnp.float32) + bm2_ref[0]
    x = x + mlp                                      # residual 2
    res_ref[...] = x

    # ---- fused head on the last layer step: final LN + classifier on [CLS] ----
    @pl.when(l == pl.num_programs(1) - 1)
    def _():
        cls_row = x[0:1, :]                          # (1, H)
        lnf = _layernorm(cls_row, gf_ref[...], bf_ref[...], eps)
        logits_ref[0] = jnp.dot(lnf.astype(jnp.bfloat16), wc_ref[...],
                                preferred_element_type=jnp.float32) + bc_ref[...]


# ----------------------------- Pallas wrappers -----------------------------

def pallas_embed(patches, params, s_pad, H):
    B, NP, CPPp = patches.shape
    return pl.pallas_call(
        functools.partial(_embed_kernel, s_pad=s_pad),
        out_shape=jax.ShapeDtypeStruct((B, s_pad, H), jnp.float32),
        grid=(B,),
        in_specs=[
            pl.BlockSpec((1, NP, CPPp), lambda b: (b, 0, 0)),
            pl.BlockSpec((CPPp, H), lambda b: (0, 0)),
            pl.BlockSpec((1, H), lambda b: (0, 0)),
            pl.BlockSpec((1, H), lambda b: (0, 0)),
            pl.BlockSpec((s_pad, H), lambda b: (0, 0)),
        ],
        out_specs=pl.BlockSpec((1, s_pad, H), lambda b: (b, 0, 0)),
        compiler_params=pltpu.CompilerParams(
            dimension_semantics=("parallel",),
            vmem_limit_bytes=_vmem_limit_bytes()),
    )(patches, params["patch_w"], params["patch_b"],
      params["cls_token"], params["pos_emb"])


def pallas_encoder(h, params, nh, dh, s_real, nc_pad):
    """All L layers + final LN + classifier in ONE pallas_call, grid=(B, L)."""
    B, S, H = h.shape
    L, _, I = params["w1"].shape

    def lw(shape):     # stacked per-layer weight: block (1, *shape), index l
        return pl.BlockSpec((1,) + shape, lambda b, l: (l, 0, 0))

    def const2(shape):  # grid-constant 2-D param
        return pl.BlockSpec(shape, lambda b, l: (0, 0))

    kernel = functools.partial(_encoder_kernel, nh=nh, dh=dh,
                               s_real=s_real, eps=LN_EPS)
    logits = pl.pallas_call(
        kernel,
        out_shape=jax.ShapeDtypeStruct((B, 1, nc_pad), jnp.float32),
        grid=(B, L),
        in_specs=[
            pl.BlockSpec((1, S, H), lambda b, l: (b, 0, 0)),   # embeddings (read at l==0)
            lw((1, H)), lw((1, H)),                            # ln1 gamma, beta
            lw((H, 3 * H)), lw((1, 3 * H)),                    # fused QKV
            lw((H, H)), lw((1, H)),                            # Wo, bo
            lw((1, H)), lw((1, H)),                            # ln2 gamma, beta
            lw((H, I)), lw((1, I)),                            # MLP up
            lw((I, H)), lw((1, H)),                            # MLP down
            const2((1, H)), const2((1, H)),                    # final LN
            const2((H, nc_pad)), const2((1, nc_pad)),          # classifier
        ],
        out_specs=pl.BlockSpec((1, 1, nc_pad), lambda b, l: (b, 0, 0)),
        scratch_shapes=[pltpu.VMEM((S, H), jnp.float32)],      # resident residual
        compiler_params=pltpu.CompilerParams(
            dimension_semantics=("parallel", "arbitrary"),
            vmem_limit_bytes=_vmem_limit_bytes()),
    )(h,
      params["ln1_g"], params["ln1_b"], params["wqkv"], params["bqkv"],
      params["wo"], params["bo"], params["ln2_g"], params["ln2_b"],
      params["w1"], params["b1"], params["w2"], params["b2"],
      params["ln_f_g"], params["ln_f_b"], params["cls_w"], params["cls_b"])
    return logits[:, 0, :]


# ----------------------------- Model (glue) -----------------------------

def vit_forward(x, params, cfg):
    B, C, Hi, Wi = x.shape
    P, H, nh, NC = cfg["patch"], cfg["hidden"], cfg["heads"], cfg["num_classes"]
    dh = H // nh
    gh, gw = Hi // P, Wi // P
    NP = gh * gw
    s_real = NP + 1
    s_pad = _round_up(s_real, 128)
    cpp = C * P * P
    cpp_pad = _round_up(cpp, 128)
    nc_pad = _round_up(NC, 128)

    # Patch unfold (pure data-layout glue); flatten order (C,P,P) matches the
    # Conv2d weight flattening.  Lane-pad the C*P*P axis to 128.
    patches = x.reshape(B, C, gh, P, gw, P).transpose(0, 2, 4, 1, 3, 5)
    patches = patches.reshape(B, NP, cpp)
    patches = jnp.pad(patches, ((0, 0), (0, 0), (0, cpp_pad - cpp)))

    h = pallas_embed(patches, params, s_pad, H)        # (B, s_pad, H) f32
    logits = pallas_encoder(h, params, nh, dh, s_real, nc_pad)
    return logits[:, :NC]
    # TODO(synk): dropout layers are identity in eval mode and are omitted.


# ----------------------------- Param init -----------------------------

def init_params(key, cfg):
    C, P, H = cfg["channels"], cfg["patch"], cfg["hidden"]
    I, L, NC = cfg["intermediate"], cfg["layers"], cfg["num_classes"]
    dh = H // cfg["heads"]
    NP = (cfg["image"] // P) ** 2
    s_real = NP + 1
    s_pad = _round_up(s_real, 128)
    cpp = C * P * P
    cpp_pad = _round_up(cpp, 128)
    nc_pad = _round_up(NC, 128)
    std = 0.02

    keys = jax.random.split(key, 8)

    def nrm(k, shape):
        return jax.random.normal(k, shape, jnp.float32) * std

    # Conv2d weight in PyTorch (H, C, P, P) layout, pre-flattened / zero-padded
    # / transposed once at init into the (cpp_pad, H) bf16 layout the kernel uses.
    w_conv = nrm(keys[0], (H, C, P, P)).reshape(H, cpp)
    patch_w = jnp.zeros((cpp_pad, H), jnp.float32).at[:cpp, :].set(w_conv.T)

    # Position embedding zero-padded over the padded sequence rows.
    pos = jnp.zeros((s_pad, H), jnp.float32).at[:s_real, :].set(
        nrm(keys[1], (s_real, H)))

    # Classifier padded to 128 output lanes (lane-dense logits store).
    cls_w = jnp.zeros((H, nc_pad), jnp.float32).at[:, :NC].set(
        nrm(keys[2], (H, NC)))

    # Fused [Wq | Wk | Wv] stacked over L; fold 1/sqrt(dh) into the Q columns
    # (and the Q bias, which is zero here) so the kernel needs no score scale.
    scale = 1.0 / math.sqrt(dh)
    wqkv = nrm(keys[3], (L, H, 3 * H))
    wqkv = wqkv.at[:, :, :H].multiply(scale)
    bqkv = jnp.zeros((L, 1, 3 * H), jnp.float32)
    bqkv = bqkv.at[:, :, :H].multiply(scale)

    return {
        "patch_w": patch_w.astype(jnp.bfloat16),
        "patch_b": jnp.zeros((1, H), jnp.float32),
        "cls_token": nrm(keys[4], (1, H)),
        "pos_emb": pos,
        "ln_f_g": jnp.ones((1, H), jnp.float32),
        "ln_f_b": jnp.zeros((1, H), jnp.float32),
        "cls_w": cls_w.astype(jnp.bfloat16),
        "cls_b": jnp.zeros((1, nc_pad), jnp.float32),
        # per-layer weights stacked with a leading L axis (grid=(B, L))
        "ln1_g": jnp.ones((L, 1, H), jnp.float32),
        "ln1_b": jnp.zeros((L, 1, H), jnp.float32),
        "wqkv": wqkv.astype(jnp.bfloat16),
        "bqkv": bqkv,
        "wo": nrm(keys[5], (L, H, H)).astype(jnp.bfloat16),
        "bo": jnp.zeros((L, 1, H), jnp.float32),
        "ln2_g": jnp.ones((L, 1, H), jnp.float32),
        "ln2_b": jnp.zeros((L, 1, H), jnp.float32),
        "w1": nrm(keys[6], (L, H, I)).astype(jnp.bfloat16),
        "b1": jnp.zeros((L, 1, I), jnp.float32),
        "w2": nrm(keys[7], (L, I, H)).astype(jnp.bfloat16),
        "b2": jnp.zeros((L, 1, H), jnp.float32),
    }


# ----------------------------- Main -----------------------------

if __name__ == "__main__":
    cfg = {
        "image": 16,          # small stand-in for 224
        "patch": 4,           # small stand-in for 16 -> 16 patches, seq = 17
        "channels": 3,
        "hidden": 128,        # lane-aligned small stand-in for 768
        "heads": 2,           # dh = 64 (same head dim as ViT-Base)
        "layers": 2,          # small stand-in for 12
        "intermediate": 512,  # 4 * hidden, like ViT-Base
        "num_classes": 10,
    }
    key = jax.random.PRNGKey(0)
    pkey, xkey = jax.random.split(key)
    params = init_params(pkey, cfg)
    x = jax.random.normal(
        xkey, (2, cfg["channels"], cfg["image"], cfg["image"]), jnp.float32)

    fwd = jax.jit(functools.partial(vit_forward, cfg=cfg))
    logits = jax.block_until_ready(fwd(x, params))
    assert logits.shape == (2, cfg["num_classes"])
    assert bool(jnp.all(jnp.isfinite(logits)))
    print("KERNEL_OK")
</pallas_src>

<mosaic_0001>
module attributes {stable_mosaic.version = 11 : i64} {
  func.func @_embed_kernel(%arg0: i32, %arg1: memref<1x16x128xf32, #tpu.memory_space<vmem>>, %arg2: memref<128x128xbf16, #tpu.memory_space<vmem>>, %arg3: memref<1x128xf32, #tpu.memory_space<vmem>>, %arg4: memref<1x128xf32, #tpu.memory_space<vmem>>, %arg5: memref<128x128xf32, #tpu.memory_space<vmem>>, %arg6: memref<1x128x128xf32, #tpu.memory_space<vmem>>) attributes {dimension_semantics = [#tpu.dimension_semantics<parallel>], iteration_bounds = array<i64: 2>, scalar_prefetch = 0 : i64, scratch_operands = 0 : i64, tpu.core_type = #tpu.core_type<tc>, window_params = [{transform_indices = @transform_0, window_bounds = array<i64: 1, 16, 128>}, {pipeline_mode = #tpu.pipeline_mode<synchronous>, transform_indices = @transform_1, window_bounds = array<i64: 128, 128>}, {pipeline_mode = #tpu.pipeline_mode<synchronous>, transform_indices = @transform_2, window_bounds = array<i64: 1, 128>}, {pipeline_mode = #tpu.pipeline_mode<synchronous>, transform_indices = @transform_3, window_bounds = array<i64: 1, 128>}, {pipeline_mode = #tpu.pipeline_mode<synchronous>, transform_indices = @transform_4, window_bounds = array<i64: 128, 128>}, {transform_indices = @transform_5, window_bounds = array<i64: 1, 128, 128>}]} {
    %c0 = arith.constant 0 : index
    %c0_0 = arith.constant 0 : index
    %c0_1 = arith.constant 0 : index
    %0 = vector.load %arg1[%c0, %c0_0, %c0_1] : memref<1x16x128xf32, #tpu.memory_space<vmem>>, vector<1x16x128xf32>
    %1 = vector.shape_cast %0 : vector<1x16x128xf32> to vector<16x128xf32>
    %2 = arith.truncf %1 : vector<16x128xf32> to vector<16x128xbf16>
    %c0_2 = arith.constant 0 : index
    %c0_3 = arith.constant 0 : index
    %3 = vector.load %arg2[%c0_2, %c0_3] : memref<128x128xbf16, #tpu.memory_space<vmem>>, vector<128x128xbf16>
    %cst = arith.constant dense<0.000000e+00> : vector<16x128xf32>
    %4 = tpu.matmul %2, %3, %cst {dimension_numbers = #tpu.dot_dimension_numbers<[1], [0], [0], [1], [0, 0, 1, 1], [], []>} : vector<16x128xbf16>, vector<128x128xbf16>, vector<16x128xf32> -> vector<16x128xf32>
    %c0_4 = arith.constant 0 : index
    %c0_5 = arith.constant 0 : index
    %5 = vector.load %arg3[%c0_4, %c0_5] : memref<1x128xf32, #tpu.memory_space<vmem>>, vector<1x128xf32>
    %6 = vector.broadcast %5 : vector<1x128xf32> to vector<16x128xf32>
    %7 = arith.addf %4, %6 : vector<16x128xf32>
    %cst_6 = arith.constant 0.000000e+00 : f32
    %8 = vector.broadcast %cst_6 : f32 to vector<111x128xf32>
    %c0_7 = arith.constant 0 : index
    %c0_8 = arith.constant 0 : index
    %9 = vector.load %arg4[%c0_7, %c0_8] : memref<1x128xf32, #tpu.memory_space<vmem>>, vector<1x128xf32>
    %10 = tpu.concatenate %9, %7, %8 in 0 : vector<1x128xf32>, vector<16x128xf32>, vector<111x128xf32> -> vector<128x128xf32>
    %c0_9 = arith.constant 0 : index
    %c0_10 = arith.constant 0 : index
    %11 = vector.load %arg5[%c0_9, %c0_10] : memref<128x128xf32, #tpu.memory_space<vmem>>, vector<128x128xf32>
    %12 = arith.addf %10, %11 : vector<128x128xf32>
    %c0_11 = arith.constant 0 : index
    %c0_12 = arith.constant 0 : index
    %c0_13 = arith.constant 0 : index
    %13 = vector.load %arg6[%c0_11, %c0_12, %c0_13] : memref<1x128x128xf32, #tpu.memory_space<vmem>>, vector<1x128x128xf32>
    %14 = vector.shape_cast %13 : vector<1x128x128xf32> to vector<128x128xf32>
    %15 = vector.shape_cast %12 : vector<128x128xf32> to vector<1x128x128xf32>
    tpu.vector_store %arg6[%c0_11, %c0_12, %c0_13], %15 {strides = array<i32>} : memref<1x128x128xf32, #tpu.memory_space<vmem>>, vector<1x128x128xf32>,
    return
  }
  func.func @transform_0(%arg0: i32) -> (i32, i32, i32) {
    %c0_i32 = arith.constant 0 : i32
    %c0_i32_0 = arith.constant 0 : i32
    %c0_i32_1 = arith.constant 0 : i32
    return %arg0, %c0_i32, %c0_i32_0 : i32, i32, i32
  }
  func.func @transform_1(%arg0: i32) -> (i32, i32) {
    %c0_i32 = arith.constant 0 : i32
    %c0_i32_0 = arith.constant 0 : i32
    %c0_i32_1 = arith.constant 0 : i32
    return %c0_i32, %c0_i32_0 : i32, i32
  }
  func.func @transform_2(%arg0: i32) -> (i32, i32) {
    %c0_i32 = arith.constant 0 : i32
    %c0_i32_0 = arith.constant 0 : i32
    %c0_i32_1 = arith.constant 0 : i32
    return %c0_i32, %c0_i32_0 : i32, i32
  }
  func.func @transform_3(%arg0: i32) -> (i32, i32) {
    %c0_i32 = arith.constant 0 : i32
    %c0_i32_0 = arith.constant 0 : i32
    %c0_i32_1 = arith.constant 0 : i32
    return %c0_i32, %c0_i32_0 : i32, i32
  }
  func.func @transform_4(%arg0: i32) -> (i32, i32) {
    %c0_i32 = arith.constant 0 : i32
    %c0_i32_0 = arith.constant 0 : i32
    %c0_i32_1 = arith.constant 0 : i32
    return %c0_i32, %c0_i32_0 : i32, i32
  }
  func.func @transform_5(%arg0: i32) -> (i32, i32, i32) {
    %c0_i32 = arith.constant 0 : i32
    %c0_i32_0 = arith.constant 0 : i32
    %c0_i32_1 = arith.constant 0 : i32
    return %arg0, %c0_i32, %c0_i32_0 : i32, i32, i32
  }
}

module attributes {stable_mosaic.version = 11 : i64} {
  func.func @_encoder_kernel(%arg0: i32, %arg1: i32, %arg2: memref<1x128x128xf32, #tpu.memory_space<vmem>>, %arg3: memref<1x1x128xf32, #tpu.memory_space<vmem>>, %arg4: memref<1x1x128xf32, #tpu.memory_space<vmem>>, %arg5: memref<1x128x384xbf16, #tpu.memory_space<vmem>>, %arg6: memref<1x1x384xf32, #tpu.memory_space<vmem>>, %arg7: memref<1x128x128xbf16, #tpu.memory_space<vmem>>, %arg8: memref<1x1x128xf32, #tpu.memory_space<vmem>>, %arg9: memref<1x1x128xf32, #tpu.memory_space<vmem>>, %arg10: memref<1x1x128xf32, #tpu.memory_space<vmem>>, %arg11: memref<1x128x512xbf16, #tpu.memory_space<vmem>>, %arg12: memref<1x1x512xf32, #tpu.memory_space<vmem>>, %arg13: memref<1x512x128xbf16, #tpu.memory_space<vmem>>, %arg14: memref<1x1x128xf32, #tpu.memory_space<vmem>>, %arg15: memref<1x128xf32, #tpu.memory_space<vmem>>, %arg16: memref<1x128xf32, #tpu.memory_space<vmem>>, %arg17: memref<128x128xbf16, #tpu.memory_space<vmem>>, %arg18: memref<1x128xf32, #tpu.memory_space<vmem>>, %arg19: memref<1x1x128xf32, #tpu.memory_space<vmem>>, %arg20: memref<128x128xf32, #tpu.memory_space<vmem>>) attributes {dimension_semantics = [#tpu.dimension_semantics<parallel>, #tpu.dimension_semantics<arbitrary>], iteration_bounds = array<i64: 2, 2>, scalar_prefetch = 0 : i64, scratch_operands = 1 : i64, tpu.core_type = #tpu.core_type<tc>, window_params = [{transform_indices = @transform_0, window_bounds = array<i64: 1, 128, 128>}, {transform_indices = @transform_1, window_bounds = array<i64: 1, 1, 128>}, {transform_indices = @transform_2, window_bounds = array<i64: 1, 1, 128>}, {transform_indices = @transform_3, window_bounds = array<i64: 1, 128, 384>}, {transform_indices = @transform_4, window_bounds = array<i64: 1, 1, 384>}, {transform_indices = @transform_5, window_bounds = array<i64: 1, 128, 128>}, {transform_indices = @transform_6, window_bounds = array<i64: 1, 1, 128>}, {transform_indices = @transform_7, window_bounds = array<i64: 1, 1, 128>}, {transform_indices = @transform_8, window_bounds = array<i64: 1, 1, 128>}, {transform_indices = @transform_9, window_bounds = array<i64: 1, 128, 512>}, {transform_indices = @transform_10, window_bounds = array<i64: 1, 1, 512>}, {transform_indices = @transform_11, window_bounds = array<i64: 1, 512, 128>}, {transform_indices = @transform_12, window_bounds = array<i64: 1, 1, 128>}, {pipeline_mode = #tpu.pipeline_mode<synchronous>, transform_indices = @transform_13, window_bounds = array<i64: 1, 128>}, {pipeline_mode = #tpu.pipeline_mode<synchronous>, transform_indices = @transform_14, window_bounds = array<i64: 1, 128>}, {pipeline_mode = #tpu.pipeline_mode<synchronous>, transform_indices = @transform_15, window_bounds = array<i64: 128, 128>}, {pipeline_mode = #tpu.pipeline_mode<synchronous>, transform_indices = @transform_16, window_bounds = array<i64: 1, 128>}, {transform_indices = @transform_17, window_bounds = array<i64: 1, 1, 128>}]} {
    %c0_i32 = arith.constant 0 : i32
    %0 = arith.cmpi eq, %arg1, %c0_i32 : i32
    %1 = arith.extui %0 : i1 to i32
    %c0_i32_0 = arith.constant 0 : i32
    %2 = arith.cmpi ne, %1, %c0_i32_0 : i32
    scf.if %2 {
      %c0_67 = arith.constant 0 : index
      %c0_68 = arith.constant 0 : index
      %c0_69 = arith.constant 0 : index
      %147 = vector.load %arg2[%c0_67, %c0_68, %c0_69] : memref<1x128x128xf32, #tpu.memory_space<vmem>>, vector<1x128x128xf32>
      %148 = vector.shape_cast %147 : vector<1x128x128xf32> to vector<128x128xf32>
      %c0_70 = arith.constant 0 : index
      %c0_71 = arith.constant 0 : index
      %149 = vector.load %arg20[%c0_70, %c0_71] : memref<128x128xf32, #tpu.memory_space<vmem>>, vector<128x128xf32>
      tpu.vector_store %arg20[%c0_70, %c0_71], %148 {strides = array<i32>} : memref<128x128xf32, #tpu.memory_space<vmem>>, vector<128x128xf32>,
      %cst_72 = arith.constant 0.000000e+00 : f32
      %150 = vector.broadcast %cst_72 : f32 to vector<1x1x128xf32>
      %c0_73 = arith.constant 0 : index
      %c0_74 = arith.constant 0 : index
      %c0_75 = arith.constant 0 : index
      %151 = vector.load %arg19[%c0_73, %c0_74, %c0_75] : memref<1x1x128xf32, #tpu.memory_space<vmem>>, vector<1x1x128xf32>
      tpu.vector_store %arg19[%c0_73, %c0_74, %c0_75], %150 {strides = array<i32>} : memref<1x1x128xf32, #tpu.memory_space<vmem>>, vector<1x1x128xf32>,
    } else {
    }
    %c0 = arith.constant 0 : index
    %c0_1 = arith.constant 0 : index
    %3 = vector.load %arg20[%c0, %c0_1] : memref<128x128xf32, #tpu.memory_space<vmem>>, vector<128x128xf32>
    %c0_2 = arith.constant 0 : index
    %c0_3 = arith.constant 0 : index
    %c0_4 = arith.constant 0 : index
    %4 = vector.load %arg3[%c0_2, %c0_3, %c0_4] : memref<1x1x128xf32, #tpu.memory_space<vmem>>, vector<1x1x128xf32>
    %5 = vector.shape_cast %4 : vector<1x1x128xf32> to vector<1x128xf32>
    %c0_5 = arith.constant 0 : index
    %c0_6 = arith.constant 0 : index
    %c0_7 = arith.constant 0 : index
    %6 = vector.load %arg4[%c0_5, %c0_6, %c0_7] : memref<1x1x128xf32, #tpu.memory_space<vmem>>, vector<1x1x128xf32>
    %7 = vector.shape_cast %6 : vector<1x1x128xf32> to vector<1x128xf32>
    %cst = arith.constant dense<0.000000e+00> : vector<128xf32>
    %8 = vector.multi_reduction <add>, %3, %cst [1] : vector<128x128xf32> to vector<128xf32>
    %9 = vector.shape_cast %8 : vector<128xf32> to vector<128x1xf32>
    %cst_8 = arith.constant 1.280000e+02 : f32
    %10 = vector.broadcast %cst_8 : f32 to vector<128x1xf32>
    %11 = arith.divf %9, %10 : vector<128x1xf32>
    %12 = vector.broadcast %11 : vector<128x1xf32> to vector<128x128xf32>
    %13 = arith.subf %3, %12 : vector<128x128xf32>
    %14 = arith.mulf %13, %13 : vector<128x128xf32>
    %cst_9 = arith.constant dense<0.000000e+00> : vector<128xf32>
    %15 = vector.multi_reduction <add>, %14, %cst_9 [1] : vector<128x128xf32> to vector<128xf32>
    %16 = vector.shape_cast %15 : vector<128xf32> to vector<128x1xf32>
    %cst_10 = arith.constant 1.280000e+02 : f32
    %17 = vector.broadcast %cst_10 : f32 to vector<128x1xf32>
    %18 = arith.divf %16, %17 : vector<128x1xf32>
    %cst_11 = arith.constant 9.99999996E-13 : f32
    %19 = vector.broadcast %cst_11 : f32 to vector<128x1xf32>
    %20 = arith.addf %18, %19 : vector<128x1xf32>
    %21 = math.rsqrt %20 : vector<128x1xf32>
    %22 = vector.broadcast %21 : vector<128x1xf32> to vector<128x128xf32>
    %23 = arith.mulf %13, %22 : vector<128x128xf32>
    %24 = vector.broadcast %5 : vector<1x128xf32> to vector<128x128xf32>
    %25 = arith.mulf %23, %24 : vector<128x128xf32>
    %26 = vector.broadcast %7 : vector<1x128xf32> to vector<128x128xf32>
    %27 = arith.addf %25, %26 : vector<128x128xf32>
    %28 = arith.truncf %27 : vector<128x128xf32> to vector<128x128xbf16>
    %c0_12 = arith.constant 0 : index
    %c0_13 = arith.constant 0 : index
    %c0_14 = arith.constant 0 : index
    %29 = vector.load %arg5[%c0_12, %c0_13, %c0_14] : memref<1x128x384xbf16, #tpu.memory_space<vmem>>, vector<1x128x384xbf16>
    %30 = vector.shape_cast %29 : vector<1x128x384xbf16> to vector<128x384xbf16>
    %cst_15 = arith.constant dense<0.000000e+00> : vector<128x384xf32>
    %31 = tpu.matmul %28, %30, %cst_15 {dimension_numbers = #tpu.dot_dimension_numbers<[1], [0], [0], [1], [0, 0, 1, 1], [], []>} : vector<128x128xbf16>, vector<128x384xbf16>, vector<128x384xf32> -> vector<128x384xf32>
    %c0_16 = arith.constant 0 : index
    %c0_17 = arith.constant 0 : index
    %c0_18 = arith.constant 0 : index
    %32 = vector.load %arg6[%c0_16, %c0_17, %c0_18] : memref<1x1x384xf32, #tpu.memory_space<vmem>>, vector<1x1x384xf32>
    %33 = vector.shape_cast %32 : vector<1x1x384xf32> to vector<1x384xf32>
    %34 = vector.broadcast %33 : vector<1x384xf32> to vector<128x384xf32>
    %35 = arith.addf %31, %34 : vector<128x384xf32>
    %36 = tpu.iota {dimensions = array<i32: 1>} : vector<1x128xi32>
    %c17_i32 = arith.constant 17 : i32
    %37 = vector.broadcast %c17_i32 : i32 to vector<1x128xi32>
    %38 = arith.cmpi slt, %36, %37 : vector<1x128xi32>
    %cst_19 = arith.constant 0.000000e+00 : f32
    %cst_20 = arith.constant -1.000000e+30 : f32
    %39 = vector.broadcast %cst_19 : f32 to vector<1x128xf32>
    %40 = vector.broadcast %cst_20 : f32 to vector<1x128xf32>
    %41 = arith.select %38, %39, %40 : vector<1x128xi1>, vector<1x128xf32>
    %42 = vector.extract_strided_slice %35 {offsets = [0, 0], sizes = [128, 64], strides = [1, 1]} : vector<128x384xf32> to vector<128x64xf32>
    %43 = arith.truncf %42 : vector<128x64xf32> to vector<128x64xbf16>
    %44 = vector.extract_strided_slice %35 {offsets = [0, 128], sizes = [128, 64], strides = [1, 1]} : vector<128x384xf32> to vector<128x64xf32>
    %45 = arith.truncf %44 : vector<128x64xf32> to vector<128x64xbf16>
    %46 = vector.extract_strided_slice %35 {offsets = [0, 256], sizes = [128, 64], strides = [1, 1]} : vector<128x384xf32> to vector<128x64xf32>
    %47 = arith.truncf %46 : vector<128x64xf32> to vector<128x64xbf16>
    %cst_21 = arith.constant dense<0.000000e+00> : vector<128x128xf32>
    %48 = tpu.matmul %43, %45, %cst_21 {dimension_numbers = #tpu.dot_dimension_numbers<[1], [1], [0], [0], [0, 0, 1, 0], [], []>} : vector<128x64xbf16>, vector<128x64xbf16>, vector<128x128xf32> -> vector<128x128xf32>
    %49 = vector.broadcast %41 : vector<1x128xf32> to vector<128x128xf32>
    %50 = arith.addf %48, %49 : vector<128x128xf32>
    %cst_22 = arith.constant dense<0xFF800000> : vector<128xf32>
    %51 = vector.multi_reduction <maximumf>, %50, %cst_22 [1] : vector<128x128xf32> to vector<128xf32>
    %52 = vector.shape_cast %51 : vector<128xf32> to vector<128x1xf32>
    %53 = vector.broadcast %52 : vector<128x1xf32> to vector<128x128xf32>
    %54 = arith.subf %50, %53 : vector<128x128xf32>
    %55 = math.exp %54 : vector<128x128xf32>
    %cst_23 = arith.constant dense<0.000000e+00> : vector<128xf32>
    %56 = vector.multi_reduction <add>, %55, %cst_23 [1] : vector<128x128xf32> to vector<128xf32>
    %57 = vector.shape_cast %56 : vector<128xf32> to vector<128x1xf32>
    %58 = tpu.reciprocal %57 {approx = true} : vector<128x1xf32> -> vector<128x1xf32>
    %59 = vector.broadcast %58 : vector<128x1xf32> to vector<128x128xf32>
    %60 = arith.mulf %55, %59 : vector<128x128xf32>
    %61 = arith.truncf %60 : vector<128x128xf32> to vector<128x128xbf16>
    %cst_24 = arith.constant dense<0.000000e+00> : vector<128x64xf32>
    %62 = tpu.matmul %61, %47, %cst_24 {dimension_numbers = #tpu.dot_dimension_numbers<[1], [0], [0], [1], [0, 0, 1, 1], [], []>} : vector<128x128xbf16>, vector<128x64xbf16>, vector<128x64xf32> -> vector<128x64xf32>
    %63 = vector.extract_strided_slice %35 {offsets = [0, 64], sizes = [128, 64], strides = [1, 1]} : vector<128x384xf32> to vector<128x64xf32>
    %64 = arith.truncf %63 : vector<128x64xf32> to vector<128x64xbf16>
    %65 = vector.extract_strided_slice %35 {offsets = [0, 192], sizes = [128, 64], strides = [1, 1]} : vector<128x384xf32> to vector<128x64xf32>
    %66 = arith.truncf %65 : vector<128x64xf32> to vector<128x64xbf16>
    %67 = vector.extract_strided_slice %35 {offsets = [0, 320], sizes = [128, 64], strides = [1, 1]} : vector<128x384xf32> to vector<128x64xf32>
    %68 = arith.truncf %67 : vector<128x64xf32> to vector<128x64xbf16>
    %cst_25 = arith.constant dense<0.000000e+00> : vector<128x128xf32>
    %69 = tpu.matmul %64, %66, %cst_25 {dimension_numbers = #tpu.dot_dimension_numbers<[1], [1], [0], [0], [0, 0, 1, 0], [], []>} : vector<128x64xbf16>, vector<128x64xbf16>, vector<128x128xf32> -> vector<128x128xf32>
    %70 = vector.broadcast %41 : vector<1x128xf32> to vector<128x128xf32>
    %71 = arith.addf %69, %70 : vector<128x128xf32>
    %cst_26 = arith.constant dense<0xFF800000> : vector<128xf32>
    %72 = vector.multi_reduction <maximumf>, %71, %cst_26 [1] : vector<128x128xf32> to vector<128xf32>
    %73 = vector.shape_cast %72 : vector<128xf32> to vector<128x1xf32>
    %74 = vector.broadcast %73 : vector<128x1xf32> to vector<128x128xf32>
    %75 = arith.subf %71, %74 : vector<128x128xf32>
    %76 = math.exp %75 : vector<128x128xf32>
    %cst_27 = arith.constant dense<0.000000e+00> : vector<128xf32>
    %77 = vector.multi_reduction <add>, %76, %cst_27 [1] : vector<128x128xf32> to vector<128xf32>
    %78 = vector.shape_cast %77 : vector<128xf32> to vector<128x1xf32>
    %79 = tpu.reciprocal %78 {approx = true} : vector<128x1xf32> -> vector<128x1xf32>
    %80 = vector.broadcast %79 : vector<128x1xf32> to vector<128x128xf32>
    %81 = arith.mulf %76, %80 : vector<128x128xf32>
    %82 = arith.truncf %81 : vector<128x128xf32> to vector<128x128xbf16>
    %cst_28 = arith.constant dense<0.000000e+00> : vector<128x64xf32>
    %83 = tpu.matmul %82, %68, %cst_28 {dimension_numbers = #tpu.dot_dimension_numbers<[1], [0], [0], [1], [0, 0, 1, 1], [], []>} : vector<128x128xbf16>, vector<128x64xbf16>, vector<128x64xf32> -> vector<128x64xf32>
    %84 = tpu.concatenate %62, %83 in 1 : vector<128x64xf32>, vector<128x64xf32> -> vector<128x128xf32>
    %85 = arith.truncf %84 : vector<128x128xf32> to vector<128x128xbf16>
    %c0_29 = arith.constant 0 : index
    %c0_30 = arith.constant 0 : index
    %c0_31 = arith.constant 0 : index
    %86 = vector.load %arg7[%c0_29, %c0_30, %c0_31] : memref<1x128x128xbf16, #tpu.memory_space<vmem>>, vector<1x128x128xbf16>
    %87 = vector.shape_cast %86 : vector<1x128x128xbf16> to vector<128x128xbf16>
    %cst_32 = arith.constant dense<0.000000e+00> : vector<128x128xf32>
    %88 = tpu.matmul %85, %87, %cst_32 {dimension_numbers = #tpu.dot_dimension_numbers<[1], [0], [0], [1], [0, 0, 1, 1], [], []>} : vector<128x128xbf16>, vector<128x128xbf16>, vector<128x128xf32> -> vector<128x128xf32>
    %c0_33 = arith.constant 0 : index
    %c0_34 = arith.constant 0 : index
    %c0_35 = arith.constant 0 : index
    %89 = vector.load %arg8[%c0_33, %c0_34, %c0_35] : memref<1x1x128xf32, #tpu.memory_space<vmem>>, vector<1x1x128xf32>
    %90 = vector.shape_cast %89 : vector<1x1x128xf32> to vector<1x128xf32>
    %91 = vector.broadcast %90 : vector<1x128xf32> to vector<128x128xf32>
    %92 = arith.addf %88, %91 : vector<128x128xf32>
    %93 = arith.addf %3, %92 : vector<128x128xf32>
    %c0_36 = arith.constant 0 : index
    %c0_37 = arith.constant 0 : index
    %c0_38 = arith.constant 0 : index
    %94 = vector.load %arg9[%c0_36, %c0_37, %c0_38] : memref<1x1x128xf32, #tpu.memory_space<vmem>>, vector<1x1x128xf32>
    %95 = vector.shape_cast %94 : vector<1x1x128xf32> to vector<1x128xf32>
    %c0_39 = arith.constant 0 : index
    %c0_40 = arith.constant 0 : index
    %c0_41 = arith.constant 0 : index
    %96 = vector.load %arg10[%c0_39, %c0_40, %c0_41] : memref<1x1x128xf32, #tpu.memory_space<vmem>>, vector<1x1x128xf32>
    %97 = vector.shape_cast %96 : vector<1x1x128xf32> to vector<1x128xf32>
    %cst_42 = arith.constant dense<0.000000e+00> : vector<128xf32>
    %98 = vector.multi_reduction <add>, %93, %cst_42 [1] : vector<128x128xf32> to vector<128xf32>
    %99 = vector.shape_cast %98 : vector<128xf32> to vector<128x1xf32>
    %cst_43 = arith.constant 1.280000e+02 : f32
    %100 = vector.broadcast %cst_43 : f32 to vector<128x1xf32>
    %101 = arith.divf %99, %100 : vector<128x1xf32>
    %102 = vector.broadcast %101 : vector<128x1xf32> to vector<128x128xf32>
    %103 = arith.subf %93, %102 : vector<128x128xf32>
    %104 = arith.mulf %103, %103 : vector<128x128xf32>
    %cst_44 = arith.constant dense<0.000000e+00> : vector<128xf32>
    %105 = vector.multi_reduction <add>, %104, %cst_44 [1] : vector<128x128xf32> to vector<128xf32>
    %106 = vector.shape_cast %105 : vector<128xf32> to vector<128x1xf32>
    %cst_45 = arith.constant 1.280000e+02 : f32
    %107 = vector.broadcast %cst_45 : f32 to vector<128x1xf32>
    %108 = arith.divf %106, %107 : vector<128x1xf32>
    %cst_46 = arith.constant 9.99999996E-13 : f32
    %109 = vector.broadcast %cst_46 : f32 to vector<128x1xf32>
    %110 = arith.addf %108, %109 : vector<128x1xf32>
    %111 = math.rsqrt %110 : vector<128x1xf32>
    %112 = vector.broadcast %111 : vector<128x1xf32> to vector<128x128xf32>
    %113 = arith.mulf %103, %112 : vector<128x128xf32>
    %114 = vector.broadcast %95 : vector<1x128xf32> to vector<128x128xf32>
    %115 = arith.mulf %113, %114 : vector<128x128xf32>
    %116 = vector.broadcast %97 : vector<1x128xf32> to vector<128x128xf32>
    %117 = arith.addf %115, %116 : vector<128x128xf32>
    %118 = arith.truncf %117 : vector<128x128xf32> to vector<128x128xbf16>
    %c0_47 = arith.constant 0 : index
    %c0_48 = arith.constant 0 : index
    %c0_49 = arith.constant 0 : index
    %119 = vector.load %arg11[%c0_47, %c0_48, %c0_49] : memref<1x128x512xbf16, #tpu.memory_space<vmem>>, vector<1x128x512xbf16>
    %120 = vector.shape_cast %119 : vector<1x128x512xbf16> to vector<128x512xbf16>
    %cst_50 = arith.constant dense<0.000000e+00> : vector<128x512xf32>
    %121 = tpu.matmul %118, %120, %cst_50 {dimension_numbers = #tpu.dot_dimension_numbers<[1], [0], [0], [1], [0, 0, 1, 1], [], []>} : vector<128x128xbf16>, vector<128x512xbf16>, vector<128x512xf32> -> vector<128x512xf32>
    %c0_51 = arith.constant 0 : index
    %c0_52 = arith.constant 0 : index
    %c0_53 = arith.constant 0 : index
    %122 = vector.load %arg12[%c0_51, %c0_52, %c0_53] : memref<1x1x512xf32, #tpu.memory_space<vmem>>, vector<1x1x512xf32>
    %123 = vector.shape_cast %122 : vector<1x1x512xf32> to vector<1x512xf32>
    %124 = vector.broadcast %123 : vector<1x512xf32> to vector<128x512xf32>
    %125 = arith.addf %121, %124 : vector<128x512xf32>
    %cst_54 = arith.constant 5.000000e-01 : f32
    %126 = vector.broadcast %cst_54 : f32 to vector<128x512xf32>
    %127 = arith.mulf %126, %125 : vector<128x512xf32>
    %cst_55 = arith.constant 0.707106769 : f32
    %128 = vector.broadcast %cst_55 : f32 to vector<128x512xf32>
    %129 = arith.mulf %125, %128 : vector<128x512xf32>
    %130 = math.erf %129 : vector<128x512xf32>
    %cst_56 = arith.constant 1.000000e+00 : f32
    %131 = vector.broadcast %cst_56 : f32 to vector<128x512xf32>
    %132 = arith.addf %131, %130 : vector<128x512xf32>
    %133 = arith.mulf %127, %132 : vector<128x512xf32>
    %134 = arith.truncf %133 : vector<128x512xf32> to vector<128x512xbf16>
    %c0_57 = arith.constant 0 : index
    %c0_58 = arith.constant 0 : index
    %c0_59 = arith.constant 0 : index
    %135 = vector.load %arg13[%c0_57, %c0_58, %c0_59] : memref<1x512x128xbf16, #tpu.memory_space<vmem>>, vector<1x512x128xbf16>
    %136 = vector.shape_cast %135 : vector<1x512x128xbf16> to vector<512x128xbf16>
    %cst_60 = arith.constant dense<0.000000e+00> : vector<128x128xf32>
    %137 = tpu.matmul %134, %136, %cst_60 {dimension_numbers = #tpu.dot_dimension_numbers<[1], [0], [0], [1], [0, 0, 1, 1], [], []>} : vector<128x512xbf16>, vector<512x128xbf16>, vector<128x128xf32> -> vector<128x128xf32>
    %c0_61 = arith.constant 0 : index
    %c0_62 = arith.constant 0 : index
    %c0_63 = arith.constant 0 : index
    %138 = vector.load %arg14[%c0_61, %c0_62, %c0_63] : memref<1x1x128xf32, #tpu.memory_space<vmem>>, vector<1x1x128xf32>
    %139 = vector.shape_cast %138 : vector<1x1x128xf32> to vector<1x128xf32>
    %140 = vector.broadcast %139 : vector<1x128xf32> to vector<128x128xf32>
    %141 = arith.addf %137, %140 : vector<128x128xf32>
    %142 = arith.addf %93, %141 : vector<128x128xf32>
    %c0_64 = arith.constant 0 : index
    %c0_65 = arith.constant 0 : index
    %143 = vector.load %arg20[%c0_64, %c0_65] : memref<128x128xf32, #tpu.memory_space<vmem>>, vector<128x128xf32>
    tpu.vector_store %arg20[%c0_64, %c0_65], %142 {strides = array<i32>} : memref<128x128xf32, #tpu.memory_space<vmem>>, vector<128x128xf32>,
    %c1_i32 = arith.constant 1 : i32
    %144 = arith.cmpi eq, %arg1, %c1_i32 : i32
    %145 = arith.extui %144 : i1 to i32
    %c0_i32_66 = arith.constant 0 : i32
    %146 = arith.cmpi ne, %145, %c0_i32_66 : i32
    scf.if %146 {
      %147 = vector.extract_strided_slice %142 {offsets = [0, 0], sizes = [1, 128], strides = [1, 1]} : vector<128x128xf32> to vector<1x128xf32>
      %c0_67 = arith.constant 0 : index
      %c0_68 = arith.constant 0 : index
      %148 = vector.load %arg15[%c0_67, %c0_68] : memref<1x128xf32, #tpu.memory_space<vmem>>, vector<1x128xf32>
      %c0_69 = arith.constant 0 : index
      %c0_70 = arith.constant 0 : index
      %149 = vector.load %arg16[%c0_69, %c0_70] : memref<1x128xf32, #tpu.memory_space<vmem>>, vector<1x128xf32>
      %cst_71 = arith.constant dense<0.000000e+00> : vector<1xf32>
      %150 = vector.multi_reduction <add>, %147, %cst_71 [1] : vector<1x128xf32> to vector<1xf32>
      %151 = vector.shape_cast %150 : vector<1xf32> to vector<1x1xf32>
      %cst_72 = arith.constant 1.280000e+02 : f32
      %152 = vector.broadcast %cst_72 : f32 to vector<1x1xf32>
      %153 = arith.divf %151, %152 : vector<1x1xf32>
      %154 = vector.broadcast %153 : vector<1x1xf32> to vector<1x128xf32>
      %155 = arith.subf %147, %154 : vector<1x128xf32>
      %156 = arith.mulf %155, %155 : vector<1x128xf32>
      %cst_73 = arith.constant dense<0.000000e+00> : vector<1xf32>
      %157 = vector.multi_reduction <add>, %156, %cst_73 [1] : vector<1x128xf32> to vector<1xf32>
      %158 = vector.shape_cast %157 : vector<1xf32> to vector<1x1xf32>
      %cst_74 = arith.constant 1.280000e+02 : f32
      %159 = vector.broadcast %cst_74 : f32 to vector<1x1xf32>
      %160 = arith.divf %158, %159 : vector<1x1xf32>
      %cst_75 = arith.constant 9.99999996E-13 : f32
      %161 = vector.broadcast %cst_75 : f32 to vector<1x1xf32>
      %162 = arith.addf %160, %161 : vector<1x1xf32>
      %163 = math.rsqrt %162 : vector<1x1xf32>
      %164 = vector.broadcast %163 : vector<1x1xf32> to vector<1x128xf32>
      %165 = arith.mulf %155, %164 : vector<1x128xf32>
      %166 = arith.mulf %165, %148 : vector<1x128xf32>
      %167 = arith.addf %166, %149 : vector<1x128xf32>
      %168 = arith.truncf %167 : vector<1x128xf32> to vector<1x128xbf16>
      %c0_76 = arith.constant 0 : index
      %c0_77 = arith.constant 0 : index
      %169 = vector.load %arg17[%c0_76, %c0_77] : memref<128x128xbf16, #tpu.memory_space<vmem>>, vector<128x128xbf16>
      %cst_78 = arith.constant dense<0.000000e+00> : vector<1x128xf32>
      %170 = tpu.matmul %168, %169, %cst_78 {dimension_numbers = #tpu.dot_dimension_numbers<[1], [0], [0], [1], [0, 0, 1, 1], [], []>} : vector<1x128xbf16>, vector<128x128xbf16>, vector<1x128xf32> -> vector<1x128xf32>
      %c0_79 = arith.constant 0 : index
      %c0_80 = arith.constant 0 : index
      %171 = vector.load %arg18[%c0_79, %c0_80] : memref<1x128xf32, #tpu.memory_space<vmem>>, vector<1x128xf32>
      %172 = arith.addf %170, %171 : vector<1x128xf32>
      %c0_81 = arith.constant 0 : index
      %c0_82 = arith.constant 0 : index
      %c0_83 = arith.constant 0 : index
      %173 = vector.load %arg19[%c0_81, %c0_82, %c0_83] : memref<1x1x128xf32, #tpu.memory_space<vmem>>, vector<1x1x128xf32>
      %174 = vector.shape_cast %173 : vector<1x1x128xf32> to vector<1x128xf32>
      %175 = vector.shape_cast %172 : vector<1x128xf32> to vector<1x1x128xf32>
      tpu.vector_store %arg19[%c0_81, %c0_82, %c0_83], %175 {strides = array<i32>} : memref<1x1x128xf32, #tpu.memory_space<vmem>>, vector<1x1x128xf32>,
    } else {
    }
    return
  }
  func.func @transform_0(%arg0: i32, %arg1: i32) -> (i32, i32, i32) {
    %c0_i32 = arith.constant 0 : i32
    %c0_i32_0 = arith.constant 0 : i32
    %c0_i32_1 = arith.constant 0 : i32
    return %arg0, %c0_i32, %c0_i32_0 : i32, i32, i32
  }
  func.func @transform_1(%arg0: i32, %arg1: i32) -> (i32, i32, i32) {
    %c0_i32 = arith.constant 0 : i32
    %c0_i32_0 = arith.constant 0 : i32
    %c0_i32_1 = arith.constant 0 : i32
    return %arg1, %c0_i32, %c0_i32_0 : i32, i32, i32
  }
  func.func @transform_2(%arg0: i32, %arg1: i32) -> (i32, i32, i32) {
    %c0_i32 = arith.constant 0 : i32
    %c0_i32_0 = arith.constant 0 : i32
    %c0_i32_1 = arith.constant 0 : i32
    return %arg1, %c0_i32, %c0_i32_0 : i32, i32, i32
  }
  func.func @transform_3(%arg0: i32, %arg1: i32) -> (i32, i32, i32) {
    %c0_i32 = arith.constant 0 : i32
    %c0_i32_0 = arith.constant 0 : i32
    %c0_i32_1 = arith.constant 0 : i32
    return %arg1, %c0_i32, %c0_i32_0 : i32, i32, i32
  }
  func.func @transform_4(%arg0: i32, %arg1: i32) -> (i32, i32, i32) {
    %c0_i32 = arith.constant 0 : i32
    %c0_i32_0 = arith.constant 0 : i32
    %c0_i32_1 = arith.constant 0 : i32
    return %arg1, %c0_i32, %c0_i32_0 : i32, i32, i32
  }
  func.func @transform_5(%arg0: i32, %arg1: i32) -> (i32, i32, i32) {
    %c0_i32 = arith.constant 0 : i32
    %c0_i32_0 = arith.constant 0 : i32
    %c0_i32_1 = arith.constant 0 : i32
    return %arg1, %c0_i32, %c0_i32_0 : i32, i32, i32
  }
  func.func @transform_6(%arg0: i32, %arg1: i32) -> (i32, i32, i32) {
    %c0_i32 = arith.constant 0 : i32
    %c0_i32_0 = arith.constant 0 : i32
    %c0_i32_1 = arith.constant 0 : i32
    return %arg1, %c0_i32, %c0_i32_0 : i32, i32, i32
  }
  func.func @transform_7(%arg0: i32, %arg1: i32) -> (i32, i32, i32) {
    %c0_i32 = arith.constant 0 : i32
    %c0_i32_0 = arith.constant 0 : i32
    %c0_i32_1 = arith.constant 0 : i32
    return %arg1, %c0_i32, %c0_i32_0 : i32, i32, i32
  }
  func.func @transform_8(%arg0: i32, %arg1: i32) -> (i32, i32, i32) {
    %c0_i32 = arith.constant 0 : i32
    %c0_i32_0 = arith.constant 0 : i32
    %c0_i32_1 = arith.constant 0 : i32
    return %arg1, %c0_i32, %c0_i32_0 : i32, i32, i32
  }
  func.func @transform_9(%arg0: i32, %arg1: i32) -> (i32, i32, i32) {
    %c0_i32 = arith.constant 0 : i32
    %c0_i32_0 = arith.constant 0 : i32
    %c0_i32_1 = arith.constant 0 : i32
    return %arg1, %c0_i32, %c0_i32_0 : i32, i32, i32
  }
  func.func @transform_10(%arg0: i32, %arg1: i32) -> (i32, i32, i32) {
    %c0_i32 = arith.constant 0 : i32
    %c0_i32_0 = arith.constant 0 : i32
    %c0_i32_1 = arith.constant 0 : i32
    return %arg1, %c0_i32, %c0_i32_0 : i32, i32, i32
  }
  func.func @transform_11(%arg0: i32, %arg1: i32) -> (i32, i32, i32) {
    %c0_i32 = arith.constant 0 : i32
    %c0_i32_0 = arith.constant 0 : i32
    %c0_i32_1 = arith.constant 0 : i32
    return %arg1, %c0_i32, %c0_i32_0 : i32, i32, i32
  }
  func.func @transform_12(%arg0: i32, %arg1: i32) -> (i32, i32, i32) {
    %c0_i32 = arith.constant 0 : i32
    %c0_i32_0 = arith.constant 0 : i32
    %c0_i32_1 = arith.constant 0 : i32
    return %arg1, %c0_i32, %c0_i32_0 : i32, i32, i32
  }
  func.func @transform_13(%arg0: i32, %arg1: i32) -> (i32, i32) {
    %c0_i32 = arith.constant 0 : i32
    %c0_i32_0 = arith.constant 0 : i32
    %c0_i32_1 = arith.constant 0 : i32
    return %c0_i32, %c0_i32_0 : i32, i32
  }
  func.func @transform_14(%arg0: i32, %arg1: i32) -> (i32, i32) {
    %c0_i32 = arith.constant 0 : i32
    %c0_i32_0 = arith.constant 0 : i32
    %c0_i32_1 = arith.constant 0 : i32
    return %c0_i32, %c0_i32_0 : i32, i32
  }
  func.func @transform_15(%arg0: i32, %arg1: i32) -> (i32, i32) {
    %c0_i32 = arith.constant 0 : i32
    %c0_i32_0 = arith.constant 0 : i32
    %c0_i32_1 = arith.constant 0 : i32
    return %c0_i32, %c0_i32_0 : i32, i32
  }
  func.func @transform_16(%arg0: i32, %arg1: i32) -> (i32, i32) {
    %c0_i32 = arith.constant 0 : i32
    %c0_i32_0 = arith.constant 0 : i32
    %c0_i32_1 = arith.constant 0 : i32
    return %c0_i32, %c0_i32_0 : i32, i32
  }
  func.func @transform_17(%arg0: i32, %arg1: i32) -> (i32, i32, i32) {
    %c0_i32 = arith.constant 0 : i32
    %c0_i32_0 = arith.constant 0 : i32
    %c0_i32_1 = arith.constant 0 : i32
    return %arg0, %c0_i32, %c0_i32_0 : i32, i32, i32
  }
}

</mosaic_0001>

<bundles_post_ra>
// kernel: vit_forward.2
= control target key start
LH: loop header
LB: loop body
LE: loop exit
PB: predicated region body
PF: predicated region fallthrough
CT: control target
= control target key end

     0   :  { %s565_s18 = smov 0   ;;  %s682_s0 = inlined_call_operand.vmem [shape: f32[2,16,128], index: 0, kind: input, shape index: {}]   ;;  %s683_s1 = inlined_call_operand.vmem [shape: bf16[128,128], index: 1, kind: input, shape index: {}]   ;;  %s684_s2 = inlined_call_operand.vmem [shape: f32[1,128], index: 2, kind: input, shape index: {}]   ;;  %s685_s3 = inlined_call_operand.vmem [shape: f32[1,128], index: 3, kind: input, shape index: {}]   ;;  %s686_s4 = inlined_call_operand.vmem [shape: f32[128,128], index: 4, kind: input, shape index: {}]   ;;  %s687_s5 = inlined_call_operand.vmem [shape: f32[2,128,128], index: 5, kind: output, shape index: {}]  }
   0x1 LB: > { %s456_s19 = sadd.s32 4294967295, %s531_s18   ;;  %p460_p0 = scmp.ge.s32.totalorder %s531_s18, 1  ;;  %s531_s18 = sphi %s565_s18, %s15_s18  }
   0x2   : > { %p187_p1 = scmp.lt.s32.totalorder %s531_s18, 3 }
   0x4   : > { %p188_p2 = pnand %p460_p0, %p187_p1 }
   0x5   : > { %v517_v0 = vld [vmem:[%s683_s1] sm:$0xff] (!%p188_p2)   ;;  %v533_v1 = vmov (!%p188_p2), 0.0   ;;  %v518_v2 = vld [vmem:[%s683_s1 + $0x8] sm:$0xff] (!%p188_p2)   ;;  %vm534_vm0 = vmmov (!%p188_p2), 0   ;;  %p215_p3 = scmp.lt.s32.totalorder (!%p188_p2), %s456_s19, 1  ;;  %v519_v3 = vld [vmem:[%s683_s1 + $0x10] sm:$0xff] (!%p188_p2)  }
   0x6   : > { %191 = sbr.rel (%p188_p2) target bundleno = 260 (0x104), region = 40  ;;  %487 = vmatprep.subr.bf16.mxu0 (!%p188_p2), %v533_v1  ;;  %503 = vmatprep.mubr.msk.bf16.mxu0 (!%p188_p2), %vm534_vm0, %v533_v1  ;;  %v520_v4 = vld [vmem:[%s683_s1 + $0x18] sm:$0xff] (!%p188_p2)   ;;  %v357_v6 = vld [vmem:[%s686_s4 + $0x20] sm:$0xff] (!%p188_p2)  ;;  %v358_v7 = vld [vmem:[%s686_s4 + $0x28] sm:$0xff] (!%p188_p2)  ;;  %vm344_vm1 = vcmask (!%p188_p2), 1040384  }
   0x7   : > { %488 = vmatpush3.bf16.msra.mxu0 (!%p188_p2), %v517_v0  ;;  %v356_v5 = vld [vmem:[%s686_s4 + $0x18] sm:$0xff] (!%p188_p2)  ;;  %v359_v8 = vld [vmem:[%s686_s4 + $0x30] sm:$0xff] (!%p188_p2)  ;;  %v361_v10 = vld [vmem:[%s686_s4 + $0x40] sm:$0xff] (!%p188_p2) }
   0x8   : > { %489 = vmatprep.subr.bf16.mxu0 (!%p188_p2), %v533_v1  ;;  %v360_v9 = vld [vmem:[%s686_s4 + $0x38] sm:$0xff] (!%p188_p2)  ;;  %v362_v11 = vld [vmem:[%s686_s4 + $0x48] sm:$0xff] (!%p188_p2)  ;;  %v363_v12 = vld [vmem:[%s686_s4 + $0x50] sm:$0xff] (!%p188_p2) }
   0x9   : > { %v364_v13 = vld [vmem:[%s686_s4 + $0x58] sm:$0xff] (!%p188_p2)  ;;  %v365_v14 = vld [vmem:[%s686_s4 + $0x60] sm:$0xff] (!%p188_p2)  ;;  %v366_v15 = vld [vmem:[%s686_s4 + $0x68] sm:$0xff] (!%p188_p2) }
   0xa   : > { %v367_v16 = vld [vmem:[%s686_s4 + $0x70] sm:$0xff] (!%p188_p2)  ;;  %v368_v17 = vld [vmem:[%s686_s4 + $0x78] sm:$0xff] (!%p188_p2)  ;;  %v521_v18 = vld [vmem:[%s683_s1 + $0x20] sm:$0xff] (!%p188_p2)  }
   0xb   : > { %490 = vmatpush3.bf16.msra.mxu0 (!%p188_p2), %v518_v2  ;;  %v522_v19 = vld [vmem:[%s683_s1 + $0x28] sm:$0xff] (!%p188_p2)   ;;  %v523_v20 = vld [vmem:[%s683_s1 + $0x30] sm:$0xff] (!%p188_p2)   ;;  %v524_v21 = vld [vmem:[%s683_s1 + $0x38] sm:$0xff] (!%p188_p2)  }
   0xc   : > { %491 = vmatprep.subr.bf16.mxu0 (!%p188_p2), %v533_v1  ;;  %v465_v25 = vld [vmem:[%s684_s2] ss:$0 sm:$0xff] (!%p188_p2)  ;;  %v354_v37 = vld [vmem:[%s686_s4 + $0x8] sm:$0xff] (!%p188_p2)  ;;  %v355_v38 = vld [vmem:[%s686_s4 + $0x10] sm:$0xff] (!%p188_p2) }
   0xd   : > { %s689_s19 = smov (!%p215_p3, %s456_s19), 1  ;;  %v341_v30 = vld [vmem:[%s685_s3] sm:$0x1] }
   0xe   : > { %s477_s26 = sshll.u32 %s689_s19, 7  ;;  %s476_s15 = sshll.u32 %s689_s19, 4  ;;  %v353_v33 = vld [vmem:[%s686_s4] sm:$0xff] }
   0xf   : > { %s591_s6 = scalar_lea.vmem %s687_s5, %s477_s26  ;;  %492 = vmatpush3.bf16.msra.mxu0 %v519_v3  ;;  %s219_s22 = scalar_lea.vmem %s682_s0, %s476_s15 }
  0x10   : > { %388 = vst [vmem:[%s591_s6 + $0x18] sm:$0xff] %v356_v5  ;;  %389 = vst [vmem:[%s591_s6 + $0x20] sm:$0xff] %v357_v6  ;;  %493 = vmatprep.subr.bf16.mxu0 %v533_v1  ;;  %v226_v22 = vld [vmem:[%s219_s22] sm:$0xff]  ;;  %v227_v23 = vld [vmem:[%s219_s22 + $0x8] sm:$0xff] }
  0x11   : > { %390 = vst [vmem:[%s591_s6 + $0x28] sm:$0xff] %v358_v7  ;;  %391 = vst [vmem:[%s591_s6 + $0x30] sm:$0xff] %v359_v8  ;;  %v228_v24 = vpack.c.bf16 %v227_v23, %v226_v22 }
  0x12   : > { %392 = vst [vmem:[%s591_s6 + $0x38] sm:$0xff] %v360_v9  ;;  %393 = vst [vmem:[%s591_s6 + $0x40] sm:$0xff] %v361_v10 }
  0x13   : > { %394 = vst [vmem:[%s591_s6 + $0x48] sm:$0xff] %v362_v11  ;;  %395 = vst [vmem:[%s591_s6 + $0x50] sm:$0xff] %v363_v12  ;;  %494 = vmatpush3.bf16.msra.mxu0 %v520_v4 }
  0x14   : > { %396 = vst [vmem:[%s591_s6 + $0x58] sm:$0xff] %v364_v13  ;;  %397 = vst [vmem:[%s591_s6 + $0x60] sm:$0xff] %v365_v14  ;;  %495 = vmatprep.subr.bf16.mxu0 %v533_v1 }
  0x15   : > { %398 = vst [vmem:[%s591_s6 + $0x68] sm:$0xff] %v366_v15  ;;  %399 = vst [vmem:[%s591_s6 + $0x70] sm:$0xff] %v367_v16 }
  0x16   : > { %400 = vst [vmem:[%s591_s6 + $0x78] sm:$0xff] %v368_v17 }
  0x17   : > { %496 = vmatpush3.bf16.msra.mxu0 %v521_v18 }
  0x18   : > { %497 = vmatprep.subr.bf16.mxu0 %v533_v1 }
  0x1b   : > { %498 = vmatpush3.bf16.msra.mxu0 %v522_v19 }
  0x1c   : > { %499 = vmatprep.subr.bf16.mxu0 %v533_v1 }
  0x1f   : > { %500 = vmatpush3.bf16.msra.mxu0 %v523_v20 }
  0x20   : > { %501 = vmatprep.subr.bf16.mxu0 %v533_v1 }
  0x23   : > { %502 = vmatpush3.bf16.msra.mxu0 %v524_v21 }
  0x26   : > { %504 = vmatmul.mubr.bf16.vlgmr.msra.gmra.mrb[0].mxu0 %v228_v24 }
  0xf9   : > { %v334_v26 = vpop.f32.mrb[0].mxu0 }
  0xfa   : > { %v335_v27 = vadd.f32 %v465_v25, %v334_v26  ;;  %v505_v28 = vpop.f32.mrb[1].mxu0 }
  0xfb   : > { %v337_v29 = vpop.f32.mrb[2].mxu0 }
  0xfc   : > { %v345_v31 = vrot.slane %v335_v27, 7  ;;  %v338_v32 = vadd.f32 %v465_v25, %v337_v29  ;;  %v506_v34 = vpop.f32.mrb[3].mxu0 }
  0xfe   : > { %v346_v35 = vrot.slane %v338_v32, 7  ;;  %v351_v36 = vsel %vm344_vm1, %v341_v30, %v345_v31 }
  0xff   : > { %v369_v39 = vadd.f32 %v353_v33, %v351_v36 }
 0x100   : > { %v347_v40 = vsel %vm344_vm1, %v345_v31, %v346_v35  ;;  %v352_v41 = vsel %vm344_vm1, %v346_v35, 0.0 }
 0x101   : > { %v370_v42 = vadd.f32 %v354_v37, %v347_v40  ;;  %v371_v43 = vadd.f32 %v355_v38, %v352_v41  ;;  %385 = vst [vmem:[%s591_s6] sm:$0xff] %v369_v39 }
 0x103   : > { %386 = vst [vmem:[%s591_s6 + $0x8] sm:$0xff] %v370_v42  ;;  %387 = vst [vmem:[%s591_s6 + $0x10] sm:$0xff] %v371_v43 }
 0x104 PF: > { %s15_s18 = sadd.s32 1, %s531_s18  }
 0x105   : > { %p12_p4 = scmp.ge.s32.totalorder %s15_s18, 4  }
 0x107   :  { %14 = sbr.rel (!%p12_p4) target bundleno = 1 (0x1), region = 70 }

// kernel: vit_forward.3
= control target key start
LH: loop header
LB: loop body
LE: loop exit
PB: predicated region body
PF: predicated region fallthrough
CT: control target
= control target key end

     0   :  { %s7618_s0 = inlined_call_operand.vmem [shape: f32[2,128,128], index: 0, kind: input, shape index: {}]   ;;  %s7619_s1 = inlined_call_operand.vmem [shape: f32[2,1,128], index: 1, kind: input, shape index: {}]   ;;  %s7620_s2 = inlined_call_operand.vmem [shape: f32[2,1,128], index: 2, kind: input, shape index: {}]   ;;  %s7621_s3 = inlined_call_operand.vmem [shape: bf16[2,128,384], index: 3, kind: input, shape index: {}]   ;;  %s7622_s4 = inlined_call_operand.vmem [shape: f32[2,1,384], index: 4, kind: input, shape index: {}]   ;;  %s7623_s5 = inlined_call_operand.vmem [shape: bf16[2,128,128], index: 5, kind: input, shape index: {}]   ;;  %s7624_s6 = inlined_call_operand.vmem [shape: f32[2,1,128], index: 6, kind: input, shape index: {}]   ;;  %s7625_s7 = inlined_call_operand.vmem [shape: f32[2,1,128], index: 7, kind: input, shape index: {}]   ;;  %s7626_s8 = inlined_call_operand.vmem [shape: f32[2,1,128], index: 8, kind: input, shape index: {}]   ;;  %s7627_s9 = inlined_call_operand.vmem [shape: bf16[2,128,512], index: 9, kind: input, shape index: {}]   ;;  %s7628_s10 = inlined_call_operand.vmem [shape: f32[2,1,512], index: 10, kind: input, shape index: {}]   ;;  %s7629_s11 = inlined_call_operand.vmem [shape: bf16[2,512,128], index: 11, kind: input, shape index: {}]   ;;  %s7630_s12 = inlined_call_operand.vmem [shape: f32[2,1,128], index: 12, kind: input, shape index: {}]   ;;  %s7631_s13 = inlined_call_operand.vmem [shape: f32[1,128], index: 13, kind: input, shape index: {}]   ;;  %s7632_s14 = inlined_call_operand.vmem [shape: f32[1,128], index: 14, kind: input, shape index: {}]   ;;  %s7633_s15 = inlined_call_operand.vmem [shape: bf16[128,128], index: 15, kind: input, shape index: {}]   ;;  %s7634_s16 = inlined_call_operand.vmem [shape: f32[1,128], index: 16, kind: input, shape index: {}]   ;;  %s7635_s17 = inlined_call_operand.hbm [shape: f32[2,1,128], index: 17, kind: output, shape index: {}]  }
   0x1   :  { %7673 = sst [smem:[#allocation41_spill]] %s7618_s0 }
   0x2   :  { %7674 = sst [smem:[#allocation42_spill]] %s7619_s1 }
   0x3   :  { %7675 = sst [smem:[#allocation43_spill]] %s7621_s3 }
   0x4   :  { %7676 = sst [smem:[#allocation44_spill]] %s7623_s5 }
   0x5   :  { %7677 = sst [smem:[#allocation45_spill]] %s7631_s13 }
   0x6   :  { %7678 = sst [smem:[#allocation46_spill]] %s7632_s14 }
   0x7   :  { %7679 = sst [smem:[#allocation47_spill]] %s7633_s15 }
   0x8   :  { %7680 = sst [smem:[#allocation48_spill]] %s7634_s16 }
   0x9   :  { %7681 = sst [smem:[#allocation49_spill]] %s7635_s17 }
   0xa   :  { %22 = vsyncpa [#allocation4], 0 }
   0xb   :  { %24 = vsyncpa [#allocation4 + $0x1], 0  ;;  %s5847_s24 = smov 0   ;;  %s5849_s25 = smov 0  }
   0xc   :  { %s5851_s26 = smov 0   ;;  %s5853_s27 = smov 0  }
   0xd   :  { %s5855_s28 = smov 0   ;;  %s5857_s29 = smov 0  }
   0xe   :  { %s5859_s0 = smov 0   ;;  %s5861_s30 = smov 0  }
   0xf LB: > { %7682 = sst [smem:[#allocation6_spill]] %s5720_s24  ;;  %s4442_s18 = sadd.s32 4294967295, %s5748_s30   ;;  %s5748_s30 = sphi %s5861_s30, %s30_s30   ;;  %s5744_s0 = sphi %s5859_s0, %s7773_s0   ;;  %s5740_s29 = sphi %s5857_s29, %s7772_s29   ;;  %s5736_s28 = sphi %s5855_s28, %s7771_s28   ;;  %s5732_s27 = sphi %s5853_s27, %s7770_s27   ;;  %s5728_s26 = sphi %s5851_s26, %s7769_s26   ;;  %s5724_s25 = sphi %s5849_s25, %s7775_s25   ;;  %s5720_s24 = sphi %s5847_s24, %s7774_s24  }
  0x10   : > { %7683 = sst [smem:[#allocation7_spill]] %s5728_s26  ;;  %s4443_s19 = sadd.s32 4294967294, %s5748_s30  }
  0x11   : > { %7684 = sst [smem:[#allocation8_spill]] %s5732_s27  ;;  %s39_s1 = sadd.s32 1, %s5740_s29 }
  0x12   : > { %7685 = sst [smem:[#allocation9_spill]] %s5736_s28  ;;  %p40_p0 = scmp.ge.s32.totalorder %s39_s1, 2 }
  0x13   : > { %7686 = sst [smem:[#allocation10_spill]] %s5740_s29  ;;  %s42_s20 = sadd.s32 1, %s5744_s0 }
  0x14   : > { %7687 = sst [smem:[#allocation11_spill]] %s5744_s0  ;;  %p481_p1 = scmp.ne.s32.totalorder %s5728_s26, %s5724_s25 }
  0x15   : > { %7688 = sst [smem:[#allocation12_spill]] %s5748_s30  ;;  %p482_p2 = scmp.eq.s32.totalorder %s4442_s18, 3 }
  0x16   : > { %s7777_s1 = smov (%p40_p0, %s39_s1), 0  ;;  %s7779_s20 = smov (!%p40_p0, %s42_s20), %s5744_s0 }
  0x17   : > { %7689 = sst [smem:[#allocation13_spill]] %s7777_s1  ;;  %p5896_p3 = por %p482_p2, %p481_p1 }
  0x18   : > { %p487_p4 = scmp.ne.s32.totalorder %s5724_s25, %s5720_s24  ;;  %p44_p5 = scmp.ge.s32.totalorder %s7779_s20, 2 }
  0x19   : > { %s7690_s21 = scalar_select %p5896_p3, 1, 0 }
  0x1a   : > { %p488_p6 = scmp.eq.s32.totalorder %s4443_s19, 3  ;;  %p4446_p7 = scmp.ge.s32.totalorder %s5748_s30, 1 }
  0x1b   : > { %7691 = sst [smem:[#allocation14_spill]] %s7690_s21  ;;  %p608_p8 = scmp.lt.s32.totalorder %s5748_s30, 5 }
  0x1c   : > { %s7781_s20 = smov (%p44_p5, %s7779_s20), 0  ;;  %p5906_p9 = por %p488_p6, %p487_p4 }
  0x1d   : > { %7692 = sst [smem:[#allocation15_spill]] %s7781_s20  ;;  %p609_p10 = pnand %p4446_p7, %p608_p8 }
  0x1e   : > { %s7693_s22 = scalar_select %p5906_p9, 1, 0 }
  0x1f   : > { %s468_s23 = ssub.s32 %s5744_s0, %s7781_s20  ;;  %s471_s18 = sadd.s32 1, %s5728_s26 }
  0x20   : > { %7694 = sst [smem:[#allocation16_spill]] %s7693_s22  ;;  %p469_p11 = scmp.eq.s32.totalorder %s468_s23, 0 }
  0x21   : > { %612 = sbr.rel (%p609_p10) target bundleno = 3798 (0xed6), region = 88 }
  0x22   : > { %s5914_s1 = scalar_select %p469_p11, %s5728_s26, %s471_s18  }
  0x24   : > { %7695 = sst [smem:[#allocation17_spill]] %s5914_s1 }
  0x28   : > { %p705_p12 = scmp.lt.s32.totalorder %s5736_s28, 1  ;;  %p710_p13 = scmp.lt.s32.totalorder %s5732_s27, 1 }
  0x29   : > { %s7696_s0 = sld [smem:[#allocation41_spill]]  ;;  %s7698_s3 = sld [smem:[#allocation43_spill]] }
  0x2a   : > { %s706_s29 = scalar_select %p705_p12, %s5736_s28, 1 }
  0x2b   : > { %s5921_s24 = scalar_select %p710_p13, %s5732_s27, 1 }
  0x2c   : > { %s4588_s23 = sshll.u32 %s706_s29, 7  ;;  %s7699_s5 = sld [smem:[#allocation44_spill]] }
  0x2d   : > { %s5069_s16 = smul.u32 192, %s5921_s24  ;;  %s4589_s13 = sshll.u32 %s5921_s24, 6 }
  0x2e   : > { %s5070_s14 = smul.u32 3, %s5921_s24  ;;  %s755_s29 = scalar_lea.vmem %s7630_s12, %s5921_s24 }
  0x2f   : > { %s5926_s19 = scalar_lea.vmem %s7696_s0, %s4588_s23  ;;  %s5942_s27 = scalar_lea.vmem %s7698_s3, %s5069_s16 }
  0x30   : > { %s5952_s17 = scalar_lea.vmem %s7622_s4, %s5070_s14  ;;  %s4590_s0 = sshll.u32 %s5921_s24, 8 }
  0x31   : > { %s5971_s26 = scalar_lea.vmem %s7627_s9, %s4590_s0  ;;  %s5981_s28 = scalar_lea.vmem %s7629_s11, %s4590_s0 }
  0x32   : > { %s5947_s23 = scalar_lea.vmem %s7699_s5, %s4589_s13  ;;  %s4454_s13 = sshll.u32 %s5921_s24, 2 }
  0x33   : > { %s5976_s21 = scalar_lea.vmem %s7628_s10, %s4454_s13  ;;  %s7700_s3 = sand.u32 1, %s5724_s25  }
  0x34   : > { %s5989_s15 = scalar_lea.vmem [#allocation3], %s7700_s3  ;;  %s7701_s5 = sld [smem:[#allocation8_spill]] }
  0x3a   : > { %p4457_p0 = scmp.ne.s32.totalorder %s7701_s5, 0 }
  0x3b   : > { %v761_v0 = vld [vmem:[%s5926_s19] sm:$0xff] (!%p4457_p0)  ;;  %v762_v1 = vld [vmem:[%s5926_s19 + $0x8] sm:$0xff] (!%p4457_p0)  ;;  %v763_v2 = vld [vmem:[%s5926_s19 + $0x10] sm:$0xff] (!%p4457_p0)  ;;  %v5750_v6 = vmov (!%p4457_p0), 0.0  }
  0x3c   : > { %760 = sbr.rel (%p4457_p0) target bundleno = 69 (0x45), region = 92  ;;  %777 = vst [vmem:[#allocation2] sm:$0xff] (!%p4457_p0), %v761_v0  ;;  %778 = vst [vmem:[#allocation2 + $0x8] sm:$0xff] (!%p4457_p0), %v762_v1  ;;  %v764_v3 = vld [vmem:[%s5926_s19 + $0x18] sm:$0xff] (!%p4457_p0)  ;;  %v765_v4 = vld [vmem:[%s5926_s19 + $0x20] sm:$0xff] (!%p4457_p0) }
  0x3d   : > { %779 = vst [vmem:[#allocation2 + $0x10] sm:$0xff] (!%p4457_p0), %v763_v2  ;;  %v766_v5 = vld [vmem:[%s5926_s19 + $0x28] sm:$0xff] (!%p4457_p0)  ;;  %793 = vst [vmem:[%s5989_s15] sm:$0x1] (!%p4457_p0), %v5750_v6  ;;  %v767_v7 = vld [vmem:[%s5926_s19 + $0x30] sm:$0xff] (!%p4457_p0) }
  0x3e   : > { %780 = vst [vmem:[#allocation2 + $0x18] sm:$0xff] (!%p4457_p0), %v764_v3  ;;  %781 = vst [vmem:[#allocation2 + $0x20] sm:$0xff] (!%p4457_p0), %v765_v4  ;;  %v768_v8 = vld [vmem:[%s5926_s19 + $0x38] sm:$0xff] (!%p4457_p0)  ;;  %v769_v9 = vld [vmem:[%s5926_s19 + $0x40] sm:$0xff] (!%p4457_p0) }
  0x3f   : > { %782 = vst [vmem:[#allocation2 + $0x28] sm:$0xff] (!%p4457_p0), %v766_v5  ;;  %783 = vst [vmem:[#allocation2 + $0x30] sm:$0xff] (!%p4457_p0), %v767_v7  ;;  %v770_v10 = vld [vmem:[%s5926_s19 + $0x48] sm:$0xff] (!%p4457_p0)  ;;  %v771_v11 = vld [vmem:[%s5926_s19 + $0x50] sm:$0xff] (!%p4457_p0) }
  0x40   : > { %784 = vst [vmem:[#allocation2 + $0x38] sm:$0xff] (!%p4457_p0), %v768_v8  ;;  %785 = vst [vmem:[#allocation2 + $0x40] sm:$0xff] (!%p4457_p0), %v769_v9  ;;  %v772_v12 = vld [vmem:[%s5926_s19 + $0x58] sm:$0xff] (!%p4457_p0)  ;;  %v773_v13 = vld [vmem:[%s5926_s19 + $0x60] sm:$0xff] (!%p4457_p0) }
  0x41   : > { %786 = vst [vmem:[#allocation2 + $0x48] sm:$0xff] (!%p4457_p0), %v770_v10  ;;  %787 = vst [vmem:[#allocation2 + $0x50] sm:$0xff] (!%p4457_p0), %v771_v11  ;;  %v774_v14 = vld [vmem:[%s5926_s19 + $0x68] sm:$0xff] (!%p4457_p0)  ;;  %v775_v15 = vld [vmem:[%s5926_s19 + $0x70] sm:$0xff] (!%p4457_p0) }
  0x42   : > { %788 = vst [vmem:[#allocation2 + $0x58] sm:$0xff] (!%p4457_p0), %v772_v12  ;;  %789 = vst [vmem:[#allocation2 + $0x60] sm:$0xff] (!%p4457_p0), %v773_v13  ;;  %v776_v16 = vld [vmem:[%s5926_s19 + $0x78] sm:$0xff] (!%p4457_p0) }
  0x43   : > { %790 = vst [vmem:[#allocation2 + $0x68] sm:$0xff] %v774_v14  ;;  %791 = vst [vmem:[#allocation2 + $0x70] sm:$0xff] %v775_v15 }
  0x44   : > { %792 = vst [vmem:[#allocation2 + $0x78] sm:$0xff] %v776_v16 }
  0x45 PF: > { %v794_v17 = vld [vmem:[#allocation2] sm:$0xff]  ;;  %v795_v19 = vld [vmem:[#allocation2 + $0x8] sm:$0xff]  ;;  %s7702_s19 = sld [smem:[#allocation42_spill]]  ;;  %s7704_s20 = scalar_lea.vmem %s7620_s2, %s5921_s24  ;;  %vm1456_vm0 = vcmask 523264  }
  0x46   : > { %v796_v18 = vld [vmem:[#allocation2 + $0x10] sm:$0xff]  ;;  %812 = vadd.xlane.f32.xlu0 %v794_v17  ;;  %v5190_v34 = vld [vmem:[%s5942_s27] ss:$12 sps:$4 sm:$0xff]   ;;  %v5191_v35 = vld [vmem:[%s5942_s27 + $0x1c] ss:$12 sps:$4 sm:$0xff]   ;;  %s7705_s1 = scalar_lea.vmem %s7624_s6, %s5921_s24  ;;  %s7722_s30 = scalar_lea.vmem %s7625_s7, %s5921_s24 }
  0x47   : > { %816 = vadd.xlane.f32.xlu1 %v796_v18  ;;  %v797_v20 = vld [vmem:[#allocation2 + $0x18] sm:$0xff]  ;;  %v798_v21 = vld [vmem:[#allocation2 + $0x20] sm:$0xff]  ;;  %v5193_v36 = vld [vmem:[%s5942_s27 + $0x8] ss:$12 sps:$4 sm:$0xff]   ;;  %s7723_s3 = scalar_lea.vmem %s7626_s8, %s5921_s24 }
  0x48   : > { %v799_v22 = vld [vmem:[#allocation2 + $0x28] sm:$0xff]  ;;  %v6009_v23 = vld [vmem:[#allocation2 + $0x30] sm:$0xff]  ;;  %4825 = vmatprep.subr.bf16.mxu1 %v5193_v36  ;;  %v5194_v11 = vld [vmem:[%s5942_s27 + $0x18] ss:$12 sps:$4 sm:$0xff]  }
  0x49   : > { %v6011_v24 = vld [vmem:[#allocation2 + $0x38] sm:$0xff]  ;;  %v6013_v25 = vld [vmem:[#allocation2 + $0x40] sm:$0xff]  ;;  %4826 = vmatpush3.bf16.msra.mxu1 %v5193_v36 }
  0x4a   : > { %814 = vadd.xlane.f32.xlu0 %v795_v19  ;;  %v6015_v26 = vld [vmem:[#allocation2 + $0x48] sm:$0xff]  ;;  %v6019_v27 = vld [vmem:[#allocation2 + $0x50] sm:$0xff]  ;;  %v5201_v36 = vld [vmem:[%s5942_s27 + $0x38] ss:$12 sps:$4 sm:$0xff]  }
  0x4b   : > { %818 = vadd.xlane.f32.xlu1 %v797_v20  ;;  %v6021_v28 = vld [vmem:[#allocation2 + $0x58] sm:$0xff]  ;;  %v6025_v29 = vld [vmem:[#allocation2 + $0x60] sm:$0xff]  ;;  %s7703_s18 = scalar_lea.vmem %s7702_s19, %s5921_s24  ;;  %s7756_s24 = sld [smem:[#allocation8_spill]] }
  0x4c   : > { %v6027_v30 = vld [vmem:[#allocation2 + $0x68] sm:$0xff]  ;;  %v6031_v31 = vld [vmem:[#allocation2 + $0x70] sm:$0xff]  ;;  %v6033_v32 = vld [vmem:[#allocation2 + $0x78] sm:$0xff] }
  0x4d   : > { %v5188_v33 = vld [vmem:[%s5942_s27 + $0x4] ss:$12 sps:$4 sm:$0xff]  }
  0x4e   : > { %820 = vadd.xlane.f32.xlu0 %v798_v21  ;;  %1218 = vmatprep.subr.bf16.mxu0 %v5188_v33 }
  0x4f   : > { %822 = vadd.xlane.f32.xlu1 %v799_v22  ;;  %1219 = vmatpush1.bf16.msra.mxu0 %v5190_v34 }
  0x50   : > { %1220 = vmatprep.subr.bf16.mxu0 %v5191_v35  ;;  %v5199_v35 = vld [vmem:[%s5942_s27 + $0x4c] ss:$12 sps:$4 sm:$0xff]  }
  0x51   : > { %p4576_p1 = scmp.ne.s32.totalorder %s7756_s24, 1 }
  0x52   : > { %824 = vadd.xlane.f32.xlu0 %v6009_v23  ;;  %vm4114_vm2 = vcmask (!%p4576_p1), 1040384   ;;  %s7757_s19 = sld [smem:[#allocation47_spill]] (!%p4576_p1)  ;;  %vm5755_vm3 = vmmov (!%p4576_p1), 0   ;;  %s7758_s24 = sld [smem:[#allocation45_spill]] (!%p4576_p1) }
  0x53   : > { %826 = vadd.xlane.f32.xlu1 %v6011_v24  ;;  %1221 = vmatpush1.bf16.msra.mxu0 %v5194_v11 }
  0x56   : > { %828 = vadd.xlane.f32.xlu0 %v6013_v25 }
  0x57   : > { %830 = vadd.xlane.f32.xlu1 %v6015_v26 }
  0x5a   : > { %832 = vadd.xlane.f32.xlu0 %v6019_v27 }
  0x5b   : > { %834 = vadd.xlane.f32.xlu1 %v6021_v28 }
  0x5e   : > { %836 = vadd.xlane.f32.xlu0 %v6025_v29 }
  0x5f   : > { %838 = vadd.xlane.f32.xlu1 %v6027_v30 }
  0x62   : > { %840 = vadd.xlane.f32.xlu0 %v6031_v31 }
  0x63   : > { %842 = vadd.xlane.f32.xlu1 %v6033_v32 }
  0xd3   : > { %v813_v37 = vpop.xlane.xlu0 %812 }
  0xd4   : > { %v817_v38 = vpop.xlane.xlu1 %816  ;;  %v845_v39 = vmul.f32 0.0078125, %v813_v37 }
  0xd5   : > { %v847_v40 = vmul.f32 0.0078125, %v817_v38 }
  0xd6   : > { %v6043_v41 = vsub.f32 %v794_v17, %v845_v39  ;;  %v5195_v17 = vld [vmem:[%s5942_s27 + $0x34] ss:$12 sps:$4 sm:$0xff]  }
  0xd7   : > { %v6045_v42 = vsub.f32 %v796_v18, %v847_v40  ;;  %v815_v43 = vpop.xlane.xlu0 %814  ;;  %v5197_v18 = vld [vmem:[%s5942_s27 + $0x20] ss:$12 sps:$4 sm:$0xff]   ;;  %1222 = vmatprep.subr.bf16.mxu0 %v5195_v17  ;;  %v5202_v39 = vld [vmem:[%s5942_s27 + $0x48] ss:$12 sps:$4 sm:$0xff]  }
  0xd8   : > { %v819_v44 = vpop.xlane.xlu1 %818  ;;  %v846_v45 = vmul.f32 0.0078125, %v815_v43  ;;  %v877_v46 = vmul.f32 %v6043_v41, %v6043_v41  ;;  %4827 = vmatprep.subr.bf16.mxu1 %v5197_v18 }
  0xd9   : > { %v848_v47 = vmul.f32 0.0078125, %v819_v44  ;;  %v879_v48 = vmul.f32 %v6045_v42, %v6045_v42  ;;  %4828 = vmatpush3.bf16.msra.mxu1 %v5197_v18 }
  0xda   : > { %893 = vadd.xlane.f32.xlu0 %v877_v46  ;;  %v6051_v49 = vsub.f32 %v795_v19, %v846_v45  ;;  %4829 = vmatprep.subr.bf16.mxu1 %v5201_v36  ;;  %v5203_v46 = vld [vmem:[%s5942_s27 + $0x64] ss:$12 sps:$4 sm:$0xff]  }
  0xdb   : > { %v6053_v50 = vsub.f32 %v797_v20, %v848_v47  ;;  %v821_v51 = vpop.xlane.xlu0 %820  ;;  %v5205_v47 = vld [vmem:[%s5942_s27 + $0x50] ss:$12 sps:$4 sm:$0xff]  }
  0xdc   : > { %v823_v52 = vpop.xlane.xlu1 %822  ;;  %v849_v53 = vmul.f32 0.0078125, %v821_v51  ;;  %v878_v54 = vmul.f32 %v6051_v49, %v6051_v49 }
  0xdd   : > { %v850_v55 = vmul.f32 0.0078125, %v823_v52  ;;  %v880_v56 = vmul.f32 %v6053_v50, %v6053_v50  ;;  %4830 = vmatpush3.bf16.msra.mxu1 %v5201_v36  ;;  %v5209_v52 = vld [vmem:[%s5942_s27 + $0x68] ss:$12 sps:$4 sm:$0xff]  }
  0xde   : > { %897 = vadd.xlane.f32.xlu0 %v879_v48  ;;  %895 = vadd.xlane.f32.xlu1 %v878_v54  ;;  %v6059_v57 = vsub.f32 %v798_v21, %v849_v53  ;;  %v5206_v48 = vld [vmem:[%s5942_s27 + $0x60] ss:$12 sps:$4 sm:$0xff]   ;;  %v5210_v53 = vld [vmem:[%s5942_s27 + $0x78] ss:$12 sps:$4 sm:$0xff]  }
  0xdf   : > { %v6061_v58 = vsub.f32 %v799_v22, %v850_v55  ;;  %v825_v59 = vpop.xlane.xlu0 %824  ;;  %4831 = vmatprep.subr.bf16.mxu1 %v5205_v47  ;;  %v5211_v54 = vld [vmem:[%s5942_s27 + $0x94] ss:$12 sps:$4 sm:$0xff]  }
  0xe0   : > { %v827_v60 = vpop.xlane.xlu1 %826  ;;  %v851_v61 = vmul.f32 0.0078125, %v825_v59  ;;  %v881_v62 = vmul.f32 %v6059_v57, %v6059_v57  ;;  %v5213_v55 = vld [vmem:[%s5942_s27 + $0x80] ss:$12 sps:$4 sm:$0xff]  }
  0xe1   : > { %v852_v63 = vmul.f32 0.0078125, %v827_v60  ;;  %v882_v0 = vmul.f32 %v6061_v58, %v6061_v58  ;;  %4832 = vmatpush3.bf16.msra.mxu1 %v5205_v47  ;;  %v5215_v59 = vld [vmem:[%s5942_s27 + $0xac] ss:$12 sps:$4 sm:$0xff]  }
  0xe2   : > { %899 = vadd.xlane.f32.xlu1 %v880_v56  ;;  %901 = vadd.xlane.f32.xlu0 %v881_v62  ;;  %v6068_v1 = vsub.f32 %v6009_v23, %v851_v61  ;;  %v5214_v56 = vld [vmem:[%s5942_s27 + $0x90] ss:$12 sps:$4 sm:$0xff]   ;;  %v5217_v60 = vld [vmem:[%s5942_s27 + $0x98] ss:$12 sps:$4 sm:$0xff]   ;;  %v5218_v61 = vld [vmem:[%s5942_s27 + $0xa8] ss:$12 sps:$4 sm:$0xff]  }
  0xe3   : > { %v6071_v2 = vsub.f32 %v6011_v24, %v852_v63  ;;  %v829_v3 = vpop.xlane.xlu0 %828  ;;  %v5198_v24 = vld [vmem:[%s5942_s27 + $0x30] ss:$12 sps:$4 sm:$0xff]   ;;  %4833 = vmatprep.subr.bf16.mxu1 %v5209_v52  ;;  %v5751_v63 = vmov 0  }
  0xe4   : > { %v831_v4 = vpop.xlane.xlu1 %830  ;;  %v853_v5 = vmul.f32 0.0078125, %v829_v3  ;;  %v883_v6 = vmul.f32 %v6068_v1, %v6068_v1  ;;  %1223 = vmatpush1.bf16.msra.mxu0 %v5198_v24  ;;  %v5219_v62 = vld [vmem:[%s5942_s27 + $0xb0] ss:$12 sps:$4 sm:$0xff]   ;;  %1250 = vmatprep.mubr.bf16.mxu0 %v5751_v63 }
  0xe5   : > { %v854_v7 = vmul.f32 0.0078125, %v831_v4  ;;  %v884_v8 = vmul.f32 %v6071_v2, %v6071_v2  ;;  %1224 = vmatprep.subr.bf16.mxu0 %v5199_v35  ;;  %4834 = vmatpush3.bf16.msra.mxu1 %v5209_v52 }
  0xe6   : > { %903 = vadd.xlane.f32.xlu1 %v882_v0  ;;  %905 = vadd.xlane.f32.xlu0 %v883_v6  ;;  %v6078_v9 = vsub.f32 %v6013_v25, %v853_v5 }
  0xe7   : > { %v6081_v10 = vsub.f32 %v6015_v26, %v854_v7  ;;  %v833_v12 = vpop.xlane.xlu0 %832  ;;  %4835 = vmatprep.subr.bf16.mxu1 %v5213_v55 }
  0xe8   : > { %v835_v13 = vpop.xlane.xlu1 %834  ;;  %v855_v14 = vmul.f32 0.0078125, %v833_v12  ;;  %v885_v15 = vmul.f32 %v6078_v9, %v6078_v9  ;;  %1225 = vmatpush1.bf16.msra.mxu0 %v5202_v39  ;;  %v6144_v39 = vld [vmem:[%s7703_s18] ss:$0 sm:$0xff]  ;;  %s7759_s18 = sld [smem:[#allocation46_spill]] (!%p4576_p1) }
  0xe9   : > { %v856_v16 = vmul.f32 0.0078125, %v835_v13  ;;  %v886_v19 = vmul.f32 %v6081_v10, %v6081_v10  ;;  %1226 = vmatprep.subr.bf16.mxu0 %v5203_v46  ;;  %4836 = vmatpush3.bf16.msra.mxu1 %v5213_v55 }
  0xea   : > { %907 = vadd.xlane.f32.xlu1 %v884_v8  ;;  %909 = vadd.xlane.f32.xlu0 %v885_v15  ;;  %v6091_v20 = vsub.f32 %v6019_v27, %v855_v14 }
  0xeb   : > { %v6094_v21 = vsub.f32 %v6021_v28, %v856_v16  ;;  %v837_v22 = vpop.xlane.xlu0 %836  ;;  %4837 = vmatprep.subr.bf16.mxu1 %v5217_v60 }
  0xec   : > { %v839_v23 = vpop.xlane.xlu1 %838  ;;  %v857_v25 = vmul.f32 0.0078125, %v837_v22  ;;  %v887_v26 = vmul.f32 %v6091_v20, %v6091_v20  ;;  %1227 = vmatpush1.bf16.msra.mxu0 %v5206_v48 }
  0xed   : > { %v858_v33 = vmul.f32 0.0078125, %v839_v23  ;;  %v888_v27 = vmul.f32 %v6094_v21, %v6094_v21  ;;  %4838 = vmatpush3.bf16.msra.mxu1 %v5217_v60 }
  0xee   : > { %911 = vadd.xlane.f32.xlu1 %v886_v19  ;;  %913 = vadd.xlane.f32.xlu0 %v887_v26  ;;  %v6102_v28 = vsub.f32 %v6025_v29, %v857_v25 }
  0xef   : > { %v6105_v34 = vsub.f32 %v6027_v30, %v858_v33  ;;  %v841_v37 = vpop.xlane.xlu0 %840  ;;  %4839 = vmatprep.subr.bf16.mxu1 %v5219_v62 }
  0xf0   : > { %v843_v38 = vpop.xlane.xlu1 %842  ;;  %v859_v40 = vmul.f32 0.0078125, %v841_v37  ;;  %v889_v43 = vmul.f32 %v6102_v28, %v6102_v28 }
  0xf1   : > { %v860_v44 = vmul.f32 0.0078125, %v843_v38  ;;  %v890_v29 = vmul.f32 %v6105_v34, %v6105_v34  ;;  %4840 = vmatpush3.bf16.msra.mxu1 %v5219_v62 }
  0xf2   : > { %915 = vadd.xlane.f32.xlu1 %v888_v27  ;;  %917 = vadd.xlane.f32.xlu0 %v889_v43  ;;  %v6115_v30 = vsub.f32 %v6031_v31, %v859_v40 }
  0xf3   : > { %v6118_v45 = vsub.f32 %v6033_v32, %v860_v44  ;;  %v5207_v32 = vld [vmem:[%s5942_s27 + $0x7c] ss:$12 sps:$4 sm:$0xff]  }
  0xf4   : > { %v891_v51 = vmul.f32 %v6115_v30, %v6115_v30  ;;  %1228 = vmatprep.subr.bf16.mxu0 %v5207_v32  ;;  %v6153_v32 = vld [vmem:[%s7704_s20] ss:$0 sm:$0xff]  ;;  %s7760_s20 = sld [smem:[#allocation48_spill]] (!%p4576_p1) }
  0xf5   : > { %v892_v31 = vmul.f32 %v6118_v45, %v6118_v45  ;;  %1229 = vmatpush1.bf16.msra.mxu0 %v5210_v53 }
  0xf6   : > { %919 = vadd.xlane.f32.xlu1 %v890_v29  ;;  %921 = vadd.xlane.f32.xlu0 %v891_v51 }
  0xf7   : > { %1230 = vmatprep.subr.bf16.mxu0 %v5211_v54 }
  0xf9   : > { %1231 = vmatpush1.bf16.msra.mxu0 %v5214_v56 }
  0xfa   : > { %923 = vadd.xlane.f32.xlu1 %v892_v31  ;;  %1232 = vmatprep.subr.bf16.mxu0 %v5215_v59 }
  0xfd   : > { %1233 = vmatpush1.bf16.msra.mxu0 %v5218_v61 }
 0x167   : > { %v894_v0 = vpop.xlane.xlu0 %893 }
 0x168   : > { %v925_v3 = vmul.f32 0.0078125, %v894_v0 }
 0x16a   : > { %v941_v4 = vadd.f32 1e-12, %v925_v3 }
 0x16b   : > { %v896_v5 = vpop.xlane.xlu1 %895  ;;  %v898_v6 = vpop.xlane.xlu0 %897 }
 0x16c   : > { %5308 = vrsqrt.f32 %v941_v4  ;;  %v926_v7 = vmul.f32 0.0078125, %v896_v5  ;;  %v927_v8 = vmul.f32 0.0078125, %v898_v6 }
 0x16e   : > { %v942_v11 = vadd.f32 1e-12, %v926_v7  ;;  %v943_v12 = vadd.f32 1e-12, %v927_v8 }
 0x16f   : > { %v900_v13 = vpop.xlane.xlu1 %899  ;;  %v902_v14 = vpop.xlane.xlu0 %901 }
 0x170   : > { %5310 = vrsqrt.f32 %v942_v11  ;;  %v928_v15 = vmul.f32 0.0078125, %v900_v13  ;;  %v929_v16 = vmul.f32 0.0078125, %v902_v14 }
 0x171   : > { %5312 = vrsqrt.f32 %v943_v12 }
 0x172   : > { %v944_v17 = vadd.f32 1e-12, %v928_v15  ;;  %v945_v18 = vadd.f32 1e-12, %v929_v16 }
 0x173   : > { %v904_v19 = vpop.xlane.xlu1 %903  ;;  %v906_v22 = vpop.xlane.xlu0 %905 }
 0x174   : > { %5314 = vrsqrt.f32 %v944_v17  ;;  %v930_v23 = vmul.f32 0.0078125, %v904_v19  ;;  %v931_v24 = vmul.f32 0.0078125, %v906_v22 }
 0x175   : > { %5316 = vrsqrt.f32 %v945_v18 }
 0x176   : > { %v5309_v25 = vpop.eup %5308  ;;  %v946_v26 = vadd.f32 1e-12, %v930_v23  ;;  %v947_v33 = vadd.f32 1e-12, %v931_v24 }
 0x177   : > { %v908_v27 = vpop.xlane.xlu1 %907  ;;  %v910_v35 = vpop.xlane.xlu0 %909  ;;  %v973_v36 = vmul.f32 %v5309_v25, %v6043_v41 }
 0x178   : > { %5318 = vrsqrt.f32 %v946_v26  ;;  %v932_v37 = vmul.f32 0.0078125, %v908_v27  ;;  %v933_v38 = vmul.f32 0.0078125, %v910_v35 }
 0x179   : > { %5320 = vrsqrt.f32 %v947_v33  ;;  %v995_v41 = vmul.f32 %v6144_v39, %v973_v36 }
 0x17a   : > { %v5311_v40 = vpop.eup %5310  ;;  %v948_v43 = vadd.f32 1e-12, %v932_v37  ;;  %v949_v44 = vadd.f32 1e-12, %v933_v38 }
 0x17b   : > { %v5313_v29 = vpop.eup %5312  ;;  %v912_v46 = vpop.xlane.xlu1 %911  ;;  %v974_v48 = vmul.f32 %v5311_v40, %v6051_v49  ;;  %v1017_v62 = vadd.f32 %v6153_v32, %v995_v41 }
 0x17c   : > { %v914_v47 = vpop.xlane.xlu0 %913  ;;  %5322 = vrsqrt.f32 %v948_v43  ;;  %v934_v51 = vmul.f32 0.0078125, %v912_v46  ;;  %v975_v52 = vmul.f32 %v5313_v29, %v6045_v42 }
 0x17d   : > { %v935_v31 = vmul.f32 0.0078125, %v914_v47  ;;  %5324 = vrsqrt.f32 %v949_v44  ;;  %v996_v53 = vmul.f32 %v6144_v39, %v974_v48 }
 0x17e   : > { %v5315_v54 = vpop.eup %5314  ;;  %v950_v55 = vadd.f32 1e-12, %v934_v51  ;;  %v997_v49 = vmul.f32 %v6144_v39, %v975_v52 }
 0x17f   : > { %v951_v56 = vadd.f32 1e-12, %v935_v31  ;;  %v5317_v59 = vpop.eup %5316  ;;  %v916_v60 = vpop.xlane.xlu1 %915  ;;  %v1018_v0 = vadd.f32 %v6153_v32, %v996_v53  ;;  %v976_v3 = vmul.f32 %v5315_v54, %v6053_v50 }
 0x180   : > { %v918_v61 = vpop.xlane.xlu0 %917  ;;  %5326 = vrsqrt.f32 %v950_v55  ;;  %v936_v4 = vmul.f32 0.0078125, %v916_v60  ;;  %v977_v7 = vmul.f32 %v5317_v59, %v6059_v57  ;;  %v1019_v13 = vadd.f32 %v6153_v32, %v997_v49 }
 0x181   : > { %v937_v42 = vmul.f32 0.0078125, %v918_v61  ;;  %5328 = vrsqrt.f32 %v951_v56  ;;  %v1033_v5 = vpack.c.bf16 %v1018_v0, %v1017_v62  ;;  %v998_v6 = vmul.f32 %v6144_v39, %v976_v3 }
 0x182   : > { %v5319_v8 = vpop.eup %5318  ;;  %v952_v11 = vadd.f32 1e-12, %v936_v4  ;;  %v999_v18 = vmul.f32 %v6144_v39, %v977_v7 }
 0x183   : > { %v953_v12 = vadd.f32 1e-12, %v937_v42  ;;  %v5321_v14 = vpop.eup %5320  ;;  %v920_v15 = vpop.xlane.xlu1 %919  ;;  %1251 = vmatmul.mubr.bf16.vlgmr.msra.gmra.mrb[0].mxu0 %v1033_v5  ;;  %4841 = vmatprep.mubr.bf16.mxu1 %v1033_v5  ;;  %v1020_v50 = vadd.f32 %v6153_v32, %v998_v6  ;;  %v978_v17 = vmul.f32 %v5319_v8, %v6061_v58 }
 0x184   : > { %v922_v16 = vpop.xlane.xlu0 %921  ;;  %5330 = vrsqrt.f32 %v952_v11  ;;  %v938_v19 = vmul.f32 0.0078125, %v920_v15  ;;  %1260 = vmatprep.mubr.bf16.mxu0 %v5751_v63  ;;  %v979_v57 = vmul.f32 %v5321_v14, %v6068_v1  ;;  %v1021_v36 = vadd.f32 %v6153_v32, %v999_v18 }
 0x185   : > { %v939_v22 = vmul.f32 0.0078125, %v922_v16  ;;  %5332 = vrsqrt.f32 %v953_v12  ;;  %v1034_v23 = vpack.c.bf16 %v1020_v50, %v1019_v13  ;;  %v1000_v24 = vmul.f32 %v6144_v39, %v978_v17  ;;  %v1073_v16 = vld [vmem:[%s5952_s17] sm:$0x7]  ;;  %s5752_s17 = smov 64  }
 0x186   : > { %v5323_v25 = vpop.eup %5322  ;;  %v954_v26 = vadd.f32 1e-12, %v938_v19  ;;  %v1001_v27 = vmul.f32 %v6144_v39, %v979_v57 }
 0x187   : > { %v955_v33 = vadd.f32 1e-12, %v939_v22  ;;  %v5325_v35 = vpop.eup %5324  ;;  %v924_v58 = vpop.xlane.xlu1 %923  ;;  %4842 = vmatmul.mubr.bf16.vlgmr.msra.gmra.mrb[0].mxu1 %v1034_v23  ;;  %v1022_v37 = vadd.f32 %v6153_v32, %v1000_v24  ;;  %v980_v38 = vmul.f32 %v5323_v25, %v6071_v2 }
 0x188   : > { %5334 = vrsqrt.f32 %v954_v26  ;;  %v940_v1 = vmul.f32 0.0078125, %v924_v58  ;;  %v981_v40 = vmul.f32 %v5325_v35, %v6078_v9  ;;  %v1023_v47 = vadd.f32 %v6153_v32, %v1001_v27 }
 0x189   : > { %5336 = vrsqrt.f32 %v955_v33  ;;  %v1035_v43 = vpack.c.bf16 %v1022_v37, %v1021_v36  ;;  %v1002_v44 = vmul.f32 %v6144_v39, %v980_v38 }
 0x18a   : > { %v5327_v29 = vpop.eup %5326  ;;  %v956_v46 = vadd.f32 1e-12, %v940_v1  ;;  %v1003_v2 = vmul.f32 %v6144_v39, %v981_v40 }
 0x18b   : > { %v5329_v48 = vpop.eup %5328  ;;  %1261 = vmatmul.mubr.bf16.gmra.mrb[4].mxu0 %v1034_v23  ;;  %4845 = vmatprep.mubr.bf16.mxu1 %v1035_v43  ;;  %v1024_v41 = vadd.f32 %v6153_v32, %v1002_v44  ;;  %v982_v51 = vmul.f32 %v5327_v29, %v6081_v10 }
 0x18c   : > { %5338 = vrsqrt.f32 %v956_v46  ;;  %1270 = vmatprep.mubr.bf16.mxu0 %v5751_v63  ;;  %v983_v9 = vmul.f32 %v5329_v48, %v6091_v20  ;;  %v1025_v56 = vadd.f32 %v6153_v32, %v1003_v2 }
 0x18d   : > { %v1036_v31 = vpack.c.bf16 %v1024_v41, %v1023_v47  ;;  %v1004_v52 = vmul.f32 %v6144_v39, %v982_v51 }
 0x18e   : > { %v5331_v53 = vpop.eup %5330  ;;  %v1005_v54 = vmul.f32 %v6144_v39, %v983_v9 }
 0x18f   : > { %v5333_v55 = vpop.eup %5332  ;;  %4846 = vmatmul.mubr.bf16.gmra.mrb[4].mxu1 %v1036_v31  ;;  %v1026_v49 = vadd.f32 %v6153_v32, %v1004_v52  ;;  %v984_v10 = vmul.f32 %v5331_v53, %v6094_v21 }
 0x190   : > { %v985_v59 = vmul.f32 %v5333_v55, %v6102_v28  ;;  %v1027_v62 = vadd.f32 %v6153_v32, %v1005_v54 }
 0x191   : > { %v1037_v60 = vpack.c.bf16 %v1026_v49, %v1025_v56  ;;  %v1006_v61 = vmul.f32 %v6144_v39, %v984_v10 }
 0x192   : > { %v5335_v20 = vpop.eup %5334  ;;  %v1007_v42 = vmul.f32 %v6144_v39, %v985_v59 }
 0x193   : > { %v5337_v0 = vpop.eup %5336  ;;  %1271 = vmatmul.mubr.bf16.gmra.mrb[8].mxu0 %v1035_v43  ;;  %4849 = vmatprep.mubr.bf16.mxu1 %v1037_v60  ;;  %v1028_v3 = vadd.f32 %v6153_v32, %v1006_v61  ;;  %v986_v4 = vmul.f32 %v5335_v20, %v6105_v34 }
 0x194   : > { %1280 = vmatprep.mubr.bf16.mxu0 %v5751_v63  ;;  %v987_v21 = vmul.f32 %v5337_v0, %v6115_v30  ;;  %v1029_v7 = vadd.f32 %v6153_v32, %v1007_v42 }
 0x195   : > { %v1038_v28 = vpack.c.bf16 %v1028_v3, %v1027_v62  ;;  %v1008_v5 = vmul.f32 %v6144_v39, %v986_v4 }
 0x196   : > { %v5339_v6 = vpop.eup %5338  ;;  %v1009_v12 = vmul.f32 %v6144_v39, %v987_v21 }
 0x197   : > { %4850 = vmatmul.mubr.bf16.gmra.mrb[8].mxu1 %v1038_v28  ;;  %v1030_v8 = vadd.f32 %v6153_v32, %v1008_v5  ;;  %v988_v11 = vmul.f32 %v5339_v6, %v6118_v45  ;;  %v1075_v45 = vlaneseq }
 0x198   : > { %v1031_v30 = vadd.f32 %v6153_v32, %v1009_v12 }
 0x199   : > { %v1039_v34 = vpack.c.bf16 %v1030_v8, %v1029_v7  ;;  %v1010_v13 = vmul.f32 %v6144_v39, %v988_v11  ;;  %v6208_v39 = vshrl.u32 %v1075_v45, 7 }
 0x19b   : > { %1281 = vmatmul.mubr.bf16.gmra.mrb[12].mxu0 %v1036_v31  ;;  %4853 = vmatprep.mubr.bf16.mxu1 %v1039_v34  ;;  %v1032_v14 = vadd.f32 %v6153_v32, %v1010_v13  ;;  %v1077_v32 = vsub.s32 0, %v6208_v39  ;;  %v1081_v50 = vsub.s32 1, %v6208_v39  ;;  %v1085_v18 = vsub.s32 2, %v6208_v39 }
 0x19c   : > { %1290 = vmatprep.mubr.bf16.mxu0 %v5751_v63 }
 0x19d   : > { %v1040_v15 = vpack.c.bf16 %v1032_v14, %v1031_v30  ;;  %v6215_v17 = vrot.slane %v1073_v16, %v1077_v32  ;;  %v6220_v22 = vrot.slane %v1073_v16, %v1081_v50  ;;  %v6226_v33 = vrot.slane %v1073_v16, %v1085_v18 }
 0x19f   : > { %4854 = vmatmul.mubr.bf16.gmra.mrb[12].mxu1 %v1040_v15 }
 0x1a3   : > { %1291 = vmatmul.mubr.bf16.gmra.mrb[16].mxu0 %v1037_v60 }
 0x1a4   : > { %1300 = vmatprep.mubr.bf16.mxu0 %v5751_v63 }
 0x1ab   : > { %1301 = vmatmul.mubr.bf16.gmra.mrb[20].mxu0 %v1038_v28 }
 0x1ac   : > { %1310 = vmatprep.mubr.bf16.mxu0 %v5751_v63 }
 0x1b3   : > { %1311 = vmatmul.mubr.bf16.gmra.mrb[24].mxu0 %v1039_v34 }
 0x1b4   : > { %1320 = vmatprep.mubr.bf16.mxu0 %v5751_v63 }
 0x1bb   : > { %1321 = vmatmul.mubr.bf16.gmra.mrb[28].mxu0 %v1040_v15 }
 0x256   : > { %v1252_v19 = vpop.f32.mrb[0].mxu0 }
 0x257   : > { %v1254_v57 = vpop.f32.mrb[1].mxu0  ;;  %v1253_v24 = vadd.f32 %v1252_v19, %v6215_v17 }
 0x258   : > { %v1256_v23 = vpop.f32.mrb[2].mxu0  ;;  %v1255_v27 = vadd.f32 %v1254_v57, %v6220_v22 }
 0x259   : > { %v1257_v25 = vadd.f32 %v1256_v23, %v6215_v17  ;;  %v1258_v26 = vpop.f32.mrb[3].mxu0 }
 0x25a   : > { %v1259_v35 = vadd.f32 %v1258_v26, %v6220_v22  ;;  %v4843_v58 = vpop.f32.mrb[0].mxu1 }
 0x25b   : > { %v6230_v36 = vpack.c.bf16 %v1257_v25, %v1253_v24  ;;  %v1365_v37 = vpop.f32.mrb[1].mxu1  ;;  %v1374_v40 = vadd.f32 %v4843_v58, %v6226_v33 }
 0x25c   : > { %v1440_v38 = vpack.c.bf16 %v1259_v35, %v1255_v27  ;;  %v4844_v1 = vpop.f32.mrb[2].mxu1  ;;  %v1366_v29 = vadd.f32 %v1365_v37, %v6226_v33 }
 0x25d   : > { %v1377_v43 = vadd.f32 %v4844_v1, %v6226_v33  ;;  %v1368_v44 = vpop.f32.mrb[3].mxu1  ;;  %4873 = vmatprep.mubr.msk.bf16.mxu0 %vm1456_vm0, %v6230_v36 }
 0x25e   : > { %v1369_v46 = vadd.f32 %v1368_v44, %v6226_v33  ;;  %1883 = vrot.lane.b32.xlu0 %v1440_v38, %s5752_s17  ;;  %v1262_v47 = vpop.f32.mrb[4].mxu0  ;;  %5053 = vmatprep.subr.msk.bf16.mxu0 %vm1456_vm0, %v1440_v38  ;;  %v1482_v48 = vsel %vm1456_vm0, %v1440_v38, 0 }
 0x25f   : > { %v6241_v41 = vpack.c.bf16 %v1377_v43, %v1374_v40  ;;  %v1263_v51 = vadd.f32 %v1262_v47, %v6215_v17  ;;  %v1264_v2 = vpop.f32.mrb[5].mxu0  ;;  %4858 = vmatpush3.bf16.xpose.msra.mxu0 %v1482_v48 }
 0x260   : > { %v6244_v9 = vpack.c.bf16 %v1369_v46, %v1366_v29  ;;  %v1266_v31 = vpop.f32.mrb[6].mxu0  ;;  %v1265_v54 = vadd.f32 %v1264_v2, %v6220_v22 }
 0x261   : > { %v1267_v52 = vadd.f32 %v1266_v31, %v6215_v17  ;;  %v1268_v53 = vpop.f32.mrb[7].mxu0 }
 0x262   : > { %v1269_v55 = vadd.f32 %v1268_v53, %v6220_v22  ;;  %v4847_v56 = vpop.f32.mrb[4].mxu1  ;;  %4889 = vmatprep.subr.bf16.mxu1 %v6244_v9 }
 0x263   : > { %v6250_v49 = vpack.c.bf16 %v1267_v52, %v1263_v51  ;;  %v1381_v10 = vpop.f32.mrb[5].mxu1  ;;  %4890 = vmatpush3.bf16.msra.mxu1 %v6244_v9  ;;  %v1390_v61 = vadd.f32 %v4847_v56, %v6226_v33 }
 0x264   : > { %v1441_v59 = vpack.c.bf16 %v1269_v55, %v1265_v54  ;;  %v4848_v60 = vpop.f32.mrb[6].mxu1  ;;  %4891 = vmatprep.subr.bf16.mxu1 %v6241_v41  ;;  %v1382_v0 = vadd.f32 %v1381_v10, %v6226_v33 }
 0x265   : > { %v1393_v20 = vadd.f32 %v4848_v60, %v6226_v33  ;;  %v1384_v62 = vpop.f32.mrb[7].mxu1 }
 0x266   : > { %v1385_v3 = vadd.f32 %v1384_v62, %v6226_v33  ;;  %1885 = vrot.lane.b32.xlu1 %v1441_v59, %s5752_s17  ;;  %v1272_v4 = vpop.f32.mrb[8].mxu0  ;;  %5054 = vmatprep.subr.msk.bf16.mxu0 %vm1456_vm0, %v1441_v59  ;;  %v1485_v42 = vsel %vm1456_vm0, %v1441_v59, 0 }
 0x267   : > { %v6261_v21 = vpack.c.bf16 %v1393_v20, %v1390_v61  ;;  %v1273_v28 = vadd.f32 %v1272_v4, %v6215_v17  ;;  %v1274_v5 = vpop.f32.mrb[9].mxu0  ;;  %4860 = vmatpush3.bf16.xpose.msra.mxu0 %v1485_v42  ;;  %4892 = vmatpush3.bf16.msra.mxu1 %v6241_v41 }
 0x268   : > { %v6265_v6 = vpack.c.bf16 %v1385_v3, %v1382_v0  ;;  %v1276_v7 = vpop.f32.mrb[10].mxu0  ;;  %v1275_v12 = vadd.f32 %v1274_v5, %v6220_v22 }
 0x269   : > { %v1277_v8 = vadd.f32 %v1276_v7, %v6215_v17  ;;  %v1278_v11 = vpop.f32.mrb[11].mxu0 }
 0x26a   : > { %v1279_v34 = vadd.f32 %v1278_v11, %v6220_v22  ;;  %v4851_v13 = vpop.f32.mrb[8].mxu1  ;;  %4893 = vmatprep.subr.bf16.mxu1 %v6265_v6 }
 0x26b   : > { %v6271_v30 = vpack.c.bf16 %v1277_v8, %v1273_v28  ;;  %v1397_v14 = vpop.f32.mrb[9].mxu1  ;;  %4894 = vmatpush3.bf16.msra.mxu1 %v6265_v6  ;;  %v1406_v19 = vadd.f32 %v4851_v13, %v6226_v33 }
 0x26c   : > { %v6274_v15 = vpack.c.bf16 %v1279_v34, %v1275_v12  ;;  %v4852_v16 = vpop.f32.mrb[10].mxu1  ;;  %4895 = vmatprep.subr.bf16.mxu1 %v6261_v21  ;;  %v1398_v24 = vadd.f32 %v1397_v14, %v6226_v33 }
 0x26d   : > { %v1409_v57 = vadd.f32 %v4852_v16, %v6226_v33  ;;  %v1400_v23 = vpop.f32.mrb[11].mxu1 }
 0x26e   : > { %v1401_v25 = vadd.f32 %v1400_v23, %v6226_v33  ;;  %v1282_v26 = vpop.f32.mrb[12].mxu0  ;;  %5055 = vmatprep.subr.msk.bf16.mxu0 %vm1456_vm0, %v6274_v15  ;;  %v1488_v27 = vsel %vm1456_vm0, %v6274_v15, 0 }
 0x26f   : > { %v6285_v35 = vpack.c.bf16 %v1409_v57, %v1406_v19  ;;  %v1283_v58 = vadd.f32 %v1282_v26, %v6215_v17  ;;  %v1284_v37 = vpop.f32.mrb[13].mxu0  ;;  %4862 = vmatpush3.bf16.xpose.msra.mxu0 %v1488_v27  ;;  %4896 = vmatpush3.bf16.msra.mxu1 %v6261_v21 }
 0x270   : > { %v6289_v38 = vpack.c.bf16 %v1401_v25, %v1398_v24  ;;  %v1286_v1 = vpop.f32.mrb[14].mxu0  ;;  %v1285_v44 = vadd.f32 %v1284_v37, %v6220_v22 }
 0x271   : > { %v1287_v40 = vadd.f32 %v1286_v1, %v6215_v17  ;;  %v1288_v43 = vpop.f32.mrb[15].mxu0 }
 0x272   : > { %v1289_v29 = vadd.f32 %v1288_v43, %v6220_v22  ;;  %v4855_v46 = vpop.f32.mrb[12].mxu1  ;;  %4897 = vmatprep.subr.bf16.mxu1 %v6289_v38 }
 0x273   : > { %v6295_v47 = vpack.c.bf16 %v1287_v40, %v1283_v58  ;;  %v1413_v48 = vpop.f32.mrb[13].mxu1  ;;  %4898 = vmatpush3.bf16.msra.mxu1 %v6289_v38  ;;  %v1422_v31 = vadd.f32 %v4855_v46, %v6226_v33 }
 0x274   : > { %v6298_v51 = vpack.c.bf16 %v1289_v29, %v1285_v44  ;;  %v4856_v2 = vpop.f32.mrb[14].mxu1  ;;  %4899 = vmatprep.subr.bf16.mxu1 %v6285_v35  ;;  %v1414_v54 = vadd.f32 %v1413_v48, %v6226_v33 }
 0x275   : > { %v1425_v52 = vadd.f32 %v4856_v2, %v6226_v33  ;;  %v1416_v53 = vpop.f32.mrb[15].mxu1 }
 0x276   : > { %v1417_v55 = vadd.f32 %v1416_v53, %v6226_v33  ;;  %v1292_v56 = vpop.f32.mrb[16].mxu0  ;;  %5056 = vmatprep.subr.msk.bf16.mxu0 %vm1456_vm0, %v6298_v51  ;;  %v1491_v10 = vsel %vm1456_vm0, %v6298_v51, 0 }
 0x277   : > { %v6309_v59 = vpack.c.bf16 %v1425_v52, %v1422_v31  ;;  %v1293_v60 = vadd.f32 %v1292_v56, %v6215_v17  ;;  %v1294_v61 = vpop.f32.mrb[17].mxu0  ;;  %4864 = vmatpush3.bf16.xpose.msra.mxu0 %v1491_v10  ;;  %4900 = vmatpush3.bf16.msra.mxu1 %v6285_v35 }
 0x278   : > { %v6313_v20 = vpack.c.bf16 %v1417_v55, %v1414_v54  ;;  %v1296_v62 = vpop.f32.mrb[18].mxu0  ;;  %v1295_v3 = vadd.f32 %v1294_v61, %v6220_v22  ;;  %v5753_v61 = vmov -1e+30  }
 0x279   : > { %v1297_v33 = vadd.f32 %v1296_v62, %v6215_v17  ;;  %v1298_v0 = vpop.f32.mrb[19].mxu0 }
 0x27a   : > { %v1299_v4 = vadd.f32 %v1298_v0, %v6220_v22  ;;  %4901 = vmatprep.subr.bf16.mxu1 %v6313_v20 }
 0x27b   : > { %v6319_v42 = vpack.c.bf16 %v1297_v33, %v1293_v60  ;;  %4902 = vmatpush3.bf16.msra.mxu1 %v6313_v20 }
 0x27c   : > { %v6322_v28 = vpack.c.bf16 %v1299_v4, %v1295_v3  ;;  %4903 = vmatprep.subr.bf16.mxu1 %v6309_v59 }
 0x27e   : > { %v1302_v5 = vpop.f32.mrb[20].mxu0  ;;  %5057 = vmatprep.subr.msk.bf16.mxu0 %vm1456_vm0, %v6322_v28  ;;  %v1494_v7 = vsel %vm1456_vm0, %v6322_v28, 0 }
 0x27f   : > { %v1303_v8 = vadd.f32 %v1302_v5, %v6215_v17  ;;  %v1304_v11 = vpop.f32.mrb[21].mxu0  ;;  %4866 = vmatpush3.bf16.xpose.msra.mxu0 %v1494_v7  ;;  %4904 = vmatpush3.bf16.msra.mxu1 %v6309_v59 }
 0x280   : > { %v1306_v12 = vpop.f32.mrb[22].mxu0  ;;  %v1305_v14 = vadd.f32 %v1304_v11, %v6220_v22 }
 0x281   : > { %v1307_v34 = vadd.f32 %v1306_v12, %v6215_v17  ;;  %v1308_v13 = vpop.f32.mrb[23].mxu0 }
 0x282   : > { %v1309_v16 = vadd.f32 %v1308_v13, %v6220_v22 }
 0x283   : > { %v6334_v19 = vpack.c.bf16 %v1307_v34, %v1303_v8 }
 0x284   : > { %v6336_v57 = vpack.c.bf16 %v1309_v16, %v1305_v14 }
 0x286   : > { %v1312_v23 = vpop.f32.mrb[24].mxu0  ;;  %5058 = vmatprep.subr.msk.bf16.mxu0 %vm1456_vm0, %v6336_v57  ;;  %v1497_v24 = vsel %vm1456_vm0, %v6336_v57, 0 }
 0x287   : > { %v1313_v25 = vadd.f32 %v1312_v23, %v6215_v17  ;;  %v1314_v26 = vpop.f32.mrb[25].mxu0  ;;  %4868 = vmatpush3.bf16.xpose.msra.mxu0 %v1497_v24 }
 0x288   : > { %v1316_v27 = vpop.f32.mrb[26].mxu0  ;;  %v1315_v1 = vadd.f32 %v1314_v26, %v6220_v22 }
 0x289   : > { %v1317_v58 = vadd.f32 %v1316_v27, %v6215_v17  ;;  %v1318_v37 = vpop.f32.mrb[27].mxu0 }
 0x28a   : > { %v1319_v40 = vadd.f32 %v1318_v37, %v6220_v22 }
 0x28b   : > { %v6346_v43 = vpack.c.bf16 %v1317_v58, %v1313_v25 }
 0x28c   : > { %v6348_v44 = vpack.c.bf16 %v1319_v40, %v1315_v1 }
 0x28e   : > { %v1322_v29 = vpop.f32.mrb[28].mxu0  ;;  %5059 = vmatprep.subr.msk.bf16.mxu0 %vm1456_vm0, %v6348_v44  ;;  %v1500_v46 = vsel %vm1456_vm0, %v6348_v44, 0 }
 0x28f   : > { %v1323_v48 = vadd.f32 %v1322_v29, %v6215_v17  ;;  %v1324_v2 = vpop.f32.mrb[29].mxu0  ;;  %4870 = vmatpush3.bf16.xpose.msra.mxu0 %v1500_v46 }
 0x290   : > { %v1326_v31 = vpop.f32.mrb[30].mxu0  ;;  %v1325_v54 = vadd.f32 %v1324_v2, %v6220_v22 }
 0x291   : > { %v1327_v52 = vadd.f32 %v1326_v31, %v6215_v17  ;;  %v1328_v53 = vpop.f32.mrb[31].mxu0 }
 0x292   : > { %v1329_v55 = vadd.f32 %v1328_v53, %v6220_v22  ;;  %v1429_v22 = vand.u32 127, %v1075_v45 }
 0x293   : > { %v6358_v56 = vpack.c.bf16 %v1327_v52, %v1323_v48 }
 0x294   : > { %v6360_v10 = vpack.c.bf16 %v1329_v55, %v1325_v54  ;;  %vm1430_vm1 = vcmp.lt.s32.totalorder %v1429_v22, 17 }
 0x295   : > { %v6385_v62 = vsel %vm1430_vm1, 0.0, %v5753_v61 }
 0x296   : > { %5060 = vmatprep.subr.msk.bf16.mxu0 %vm1456_vm0, %v6360_v10  ;;  %v1503_v60 = vsel %vm1456_vm0, %v6360_v10, 0 }
 0x297   : > { %4872 = vmatpush3.bf16.xpose.msra.mxu0 %v1503_v60 }
 0x29e   : > { %4874 = vmatmul.mubr.msk.bf16.vlgmr.msra.gmra.mrb[32].mxu0 %vm1456_vm0, %v6250_v49 }
 0x29f   : > { %4877 = vmatprep.mubr.msk.bf16.mxu0 %vm1456_vm0, %v6271_v30 }
 0x2a6   : > { %4878 = vmatmul.mubr.msk.bf16.gmra.mrb[36].mxu0 %vm1456_vm0, %v6295_v47 }
 0x2a7   : > { %4881 = vmatprep.mubr.msk.bf16.mxu0 %vm1456_vm0, %v6319_v42 }
 0x2ae   : > { %4882 = vmatmul.mubr.msk.bf16.gmra.mrb[40].mxu0 %vm1456_vm0, %v6334_v19 }
 0x2af   : > { %4885 = vmatprep.mubr.msk.bf16.mxu0 %vm1456_vm0, %v6346_v43 }
 0x2b6   : > { %4886 = vmatmul.mubr.msk.bf16.gmra.mrb[44].mxu0 %vm1456_vm0, %v6358_v56 }
 0x2d0   : > { %v6380_v17 = vpop.permute.xlu0 %1883 }
 0x2d1   : > { %5061 = vmatprep.subr.msk.bf16.mxu1 %vm1456_vm0, %v6380_v17 }
 0x2d8   : > { %v6443_v60 = vpop.permute.xlu1 %1885 }
 0x371   : > { %v4875_v33 = vpop.f32.mrb[32].mxu0 }
 0x372   : > { %v1548_v0 = vadd.f32 %v4875_v33, %v6385_v62  ;;  %v1539_v3 = vpop.f32.mrb[33].mxu0 }
 0x373   : > { %v4876_v4 = vpop.f32.mrb[34].mxu0  ;;  %v1540_v8 = vadd.f32 %v1539_v3, %v6385_v62 }
 0x374   : > { %v1551_v5 = vadd.f32 %v4876_v4, %v6385_v62  ;;  %1606 = vmax.xlane.f32.xlu0 %v1548_v0  ;;  %v1542_v7 = vpop.f32.mrb[35].mxu0 }
 0x375   : > { %v1543_v11 = vadd.f32 %v1542_v7, %v6385_v62 }
 0x376   : > { %1608 = vmax.xlane.f32.xlu1 %v1551_v5 }
 0x378   : > { %1602 = vmax.xlane.f32.xlu0 %v1540_v8 }
 0x379   : > { %v4879_v45 = vpop.f32.mrb[36].mxu0 }
 0x37a   : > { %v6392_v12 = vadd.f32 %v4879_v45, %v6385_v62  ;;  %v1555_v34 = vpop.f32.mrb[37].mxu0  ;;  %1604 = vmax.xlane.f32.xlu1 %v1543_v11 }
 0x37b   : > { %v4880_v13 = vpop.f32.mrb[38].mxu0  ;;  %v6399_v23 = vadd.f32 %v1555_v34, %v6385_v62 }
 0x37c   : > { %v6395_v14 = vadd.f32 %v4880_v13, %v6385_v62  ;;  %v1558_v16 = vpop.f32.mrb[39].mxu0  ;;  %1614 = vmax.xlane.f32.xlu0 %v6392_v12 }
 0x37d   : > { %v6403_v24 = vadd.f32 %v1558_v16, %v6385_v62 }
 0x37e   : > { %1616 = vmax.xlane.f32.xlu1 %v6395_v14 }
 0x380   : > { %1610 = vmax.xlane.f32.xlu0 %v6399_v23 }
 0x381   : > { %v4883_v25 = vpop.f32.mrb[40].mxu0 }
 0x382   : > { %v6407_v26 = vadd.f32 %v4883_v25, %v6385_v62  ;;  %v1571_v27 = vpop.f32.mrb[41].mxu0  ;;  %1612 = vmax.xlane.f32.xlu1 %v6403_v24 }
 0x383   : > { %v4884_v58 = vpop.f32.mrb[42].mxu0  ;;  %v6415_v40 = vadd.f32 %v1571_v27, %v6385_v62 }
 0x384   : > { %v6411_v37 = vadd.f32 %v4884_v58, %v6385_v62  ;;  %v1574_v1 = vpop.f32.mrb[43].mxu0  ;;  %1622 = vmax.xlane.f32.xlu0 %v6407_v26 }
 0x385   : > { %v6419_v29 = vadd.f32 %v1574_v1, %v6385_v62 }
 0x386   : > { %1624 = vmax.xlane.f32.xlu1 %v6411_v37 }
 0x388   : > { %1618 = vmax.xlane.f32.xlu0 %v6415_v40 }
 0x389   : > { %v4887_v46 = vpop.f32.mrb[44].mxu0 }
 0x38a   : > { %v6423_v48 = vadd.f32 %v4887_v46, %v6385_v62  ;;  %1620 = vmax.xlane.f32.xlu1 %v6419_v29  ;;  %v1587_v2 = vpop.f32.mrb[45].mxu0 }
 0x38b   : > { %v4888_v31 = vpop.f32.mrb[46].mxu0  ;;  %v6428_v53 = vadd.f32 %v1587_v2, %v6385_v62 }
 0x38c   : > { %1630 = vmax.xlane.f32.xlu0 %v6423_v48  ;;  %v1590_v52 = vpop.f32.mrb[47].mxu0  ;;  %v6436_v54 = vadd.f32 %v4888_v31, %v6385_v62 }
 0x38d   : > { %v6440_v55 = vadd.f32 %v1590_v52, %v6385_v62 }
 0x390   : > { %1626 = vmax.xlane.f32.xlu0 %v6428_v53 }
 0x39b   : > { %1889 = vrot.lane.b32.xlu1 %v6298_v51, %s5752_s17 }
 0x3a6   : > { %1887 = vrot.lane.b32.xlu0 %v6274_v15, %s5752_s17 }
 0x3bf   : > { %1632 = vmax.xlane.f32.xlu1 %v6436_v54 }
 0x3c3   : > { %1628 = vmax.xlane.f32.xlu1 %v6440_v55 }
 0x401   : > { %v1607_v22 = vpop.xlane.xlu0 %1606 }
 0x402   : > { %v1636_v61 = vsub.f32 %v1548_v0, %v1607_v22 }
 0x403   : > { %v1609_v33 = vpop.xlane.xlu1 %1608 }
 0x404   : > { %v1654_v3 = vmul.f32 1.442695, %v1636_v61  ;;  %v1637_v51 = vsub.f32 %v1551_v5, %v1609_v33 }
 0x405   : > { %v1603_v4 = vpop.xlane.xlu0 %1602 }
 0x406   : > { %5340 = vpow2.f32 %v1654_v3  ;;  %v1656_v15 = vmul.f32 1.442695, %v1637_v51  ;;  %v1634_v7 = vsub.f32 %v1540_v8, %v1603_v4 }
 0x407   : > { %v1605_v45 = vpop.xlane.xlu1 %1604 }
 0x408   : > { %5342 = vpow2.f32 %v1656_v15  ;;  %v1650_v34 = vmul.f32 1.442695, %v1634_v7  ;;  %v1635_v13 = vsub.f32 %v1543_v11, %v1605_v45 }
 0x409   : > { %v1615_v8 = vpop.xlane.xlu0 %1614 }
 0x40a   : > { %5344 = vpow2.f32 %v1650_v34  ;;  %v1652_v16 = vmul.f32 1.442695, %v1635_v13  ;;  %v1640_v31 = vsub.f32 %v6392_v12, %v1615_v8 }
 0x40b   : > { %v1617_v1 = vpop.xlane.xlu1 %1616 }
 0x40c   : > { %5346 = vpow2.f32 %v1652_v16  ;;  %v1662_v61 = vmul.f32 1.442695, %v1640_v31  ;;  %v1641_v51 = vsub.f32 %v6395_v14, %v1617_v1 }
 0x40d   : > { %v1611_v11 = vpop.xlane.xlu0 %1610 }
 0x40e   : > { %v1638_v52 = vsub.f32 %v6399_v23, %v1611_v11  ;;  %5348 = vpow2.f32 %v1662_v61  ;;  %v1664_v7 = vmul.f32 1.442695, %v1641_v51 }
 0x40f   : > { %v1613_v2 = vpop.xlane.xlu1 %1612 }
 0x410   : > { %v6445_v25 = vpop.eup %5340  ;;  %v1639_v33 = vsub.f32 %v6403_v24, %v1613_v2  ;;  %v1658_v4 = vmul.f32 1.442695, %v1638_v52 }
 0x411   : > { %1686 = vadd.xlane.f32.xlu0 %v6445_v25  ;;  %v1623_v58 = vpop.xlane.xlu0 %1622 }
 0x412   : > { %v6448_v27 = vpop.eup %5342  ;;  %5350 = vpow2.f32 %v1658_v4  ;;  %v1644_v45 = vsub.f32 %v6407_v26, %v1623_v58 }
 0x413   : > { %1688 = vadd.xlane.f32.xlu1 %v6448_v27  ;;  %v1625_v3 = vpop.xlane.xlu1 %1624 }
 0x414   : > { %v6451_v0 = vpop.eup %5344  ;;  %v1670_v24 = vmul.f32 1.442695, %v1644_v45  ;;  %v1645_v16 = vsub.f32 %v6411_v37, %v1625_v3 }
 0x415   : > { %1682 = vadd.xlane.f32.xlu0 %v6451_v0  ;;  %v1619_v46 = vpop.xlane.xlu0 %1618 }
 0x416   : > { %v6454_v5 = vpop.eup %5346  ;;  %v1642_v13 = vsub.f32 %v6415_v40, %v1619_v46 }
 0x417   : > { %1684 = vadd.xlane.f32.xlu1 %v6454_v5  ;;  %v1621_v12 = vpop.xlane.xlu1 %1620 }
 0x418   : > { %v1666_v11 = vmul.f32 1.442695, %v1642_v13  ;;  %v1643_v37 = vsub.f32 %v6419_v29, %v1621_v12 }
 0x419   : > { %v1631_v22 = vpop.xlane.xlu0 %1630 }
 0x41b   : > { %v6470_v8 = vpop.permute.xlu1 %1889 }
 0x41d   : > { %v1627_v15 = vpop.xlane.xlu0 %1626 }
 0x41e   : > { %v1646_v34 = vsub.f32 %v6428_v53, %v1627_v15  ;;  %v1672_v53 = vmul.f32 1.442695, %v1645_v16  ;;  %v1924_v15 = vsel %vm1456_vm0, %v6380_v17, 0 }
 0x420   : > { %v1674_v14 = vmul.f32 1.442695, %v1646_v34 }
 0x428   : > { %1893 = vrot.lane.b32.xlu1 %v6336_v57, %s5752_s17  ;;  %v1660_v57 = vmul.f32 1.442695, %v1639_v33 }
 0x42a   : > { %5352 = vpow2.f32 %v1660_v57 }
 0x42b   : > { %1891 = vrot.lane.b32.xlu0 %v6322_v28, %s5752_s17  ;;  %v1648_v28 = vsub.f32 %v6423_v48, %v1631_v22  ;;  %5354 = vpow2.f32 %v1664_v7  ;;  %v6472_v48 = vpop.eup %5348  ;;  %v1668_v22 = vmul.f32 1.442695, %v1643_v37 }
 0x42c   : > { %v6475_v26 = vpop.eup %5350 }
 0x42d   : > { %v1678_v23 = vmul.f32 1.442695, %v1648_v28 }
 0x42f   : > { %5356 = vpow2.f32 %v1678_v23 }
 0x430   : > { %5358 = vpow2.f32 %v1670_v24 }
 0x431   : > { %5360 = vpow2.f32 %v1674_v14 }
 0x432   : > { %5362 = vpow2.f32 %v1666_v11 }
 0x433   : > { %5364 = vpow2.f32 %v1672_v53 }
 0x434   : > { %v6478_v40 = vpop.eup %5352 }
 0x435   : > { %v6483_v46 = vpop.eup %5354 }
 0x439   : > { %v6486_v52 = vpop.eup %5356 }
 0x43a   : > { %v6490_v29 = vpop.eup %5358 }
 0x44a   : > { %1694 = vadd.xlane.f32.xlu0 %v6472_v48 }
 0x44c   : > { %v1633_v58 = vpop.xlane.xlu1 %1632  ;;  %1690 = vadd.xlane.f32.xlu1 %v6475_v26 }
 0x44d   : > { %v1649_v1 = vsub.f32 %v6436_v54, %v1633_v58  ;;  %v6493_v54 = vpop.eup %5360 }
 0x44e   : > { %1692 = vadd.xlane.f32.xlu0 %v6478_v40  ;;  %v6496_v3 = vpop.eup %5362 }
 0x44f   : > { %v1680_v2 = vmul.f32 1.442695, %v1649_v1  ;;  %v6499_v51 = vpop.eup %5364 }
 0x450   : > { %v1629_v31 = vpop.xlane.xlu1 %1628  ;;  %1696 = vadd.xlane.f32.xlu1 %v6483_v46 }
 0x451   : > { %5366 = vpow2.f32 %v1680_v2  ;;  %v1647_v61 = vsub.f32 %v6440_v55, %v1629_v31 }
 0x452   : > { %1710 = vadd.xlane.f32.xlu0 %v6486_v52  ;;  %5368 = vpow2.f32 %v1668_v22 }
 0x453   : > { %v1676_v33 = vmul.f32 1.442695, %v1647_v61 }
 0x454   : > { %1702 = vadd.xlane.f32.xlu1 %v6490_v29 }
 0x455   : > { %5370 = vpow2.f32 %v1676_v33 }
 0x456   : > { %1706 = vadd.xlane.f32.xlu0 %v6493_v54 }
 0x458   : > { %1698 = vadd.xlane.f32.xlu1 %v6496_v3 }
 0x45b   : > { %v6501_v55 = vpop.eup %5366 }
 0x45c   : > { %1704 = vadd.xlane.f32.xlu1 %v6499_v51  ;;  %1712 = vadd.xlane.f32.xlu0 %v6501_v55  ;;  %v6505_v4 = vpop.eup %5368 }
 0x45f   : > { %v6508_v57 = vpop.eup %5370 }
 0x460   : > { %1700 = vadd.xlane.f32.xlu1 %v6505_v4 }
 0x464   : > { %1708 = vadd.xlane.f32.xlu1 %v6508_v57 }
 0x472   : > { %1895 = vrot.lane.b32.xlu0 %v6348_v44, %s5752_s17 }
 0x475   : > { %1897 = vrot.lane.b32.xlu1 %v6360_v10, %s5752_s17 }
 0x476   : > { %1859 = vrot.lane.b32.xlu0 %v6230_v36, %s5752_s17  ;;  %v1888_v36 = vpop.permute.xlu0 %1887 }
 0x479   : > { %1861 = vrot.lane.b32.xlu1 %v6250_v49, %s5752_s17 }
 0x47a   : > { %1863 = vrot.lane.b32.xlu0 %v6271_v30, %s5752_s17 }
 0x47d   : > { %1865 = vrot.lane.b32.xlu1 %v6295_v47, %s5752_s17 }
 0x47e   : > { %1867 = vrot.lane.b32.xlu0 %v6319_v42, %s5752_s17 }
 0x481   : > { %1869 = vrot.lane.b32.xlu1 %v6334_v19, %s5752_s17 }
 0x482   : > { %1871 = vrot.lane.b32.xlu0 %v6346_v43, %s5752_s17 }
 0x485   : > { %1873 = vrot.lane.b32.xlu1 %v6358_v56, %s5752_s17 }
 0x486   : > { %2204 = vrot.lane.b32.xlu0 %v6244_v9, %s5752_s17 }
 0x489   : > { %2206 = vrot.lane.b32.xlu1 %v6241_v41, %s5752_s17 }
 0x48a   : > { %2208 = vrot.lane.b32.xlu0 %v6265_v6, %s5752_s17 }
 0x48e   : > { %2210 = vrot.lane.b32.xlu0 %v6261_v21, %s5752_s17 }
 0x49e   : > { %v1687_v49 = vpop.xlane.xlu0 %1686 }
 0x4a0   : > { %v1689_v30 = vpop.xlane.xlu1 %1688 }
 0x4a1   : > { %5372 = vrcp.f32 %v1689_v30 }
 0x4a2   : > { %v1683_v47 = vpop.xlane.xlu0 %1682 }
 0x4a3   : > { %5374 = vrcp.f32 %v1683_v47 }
 0x4a4   : > { %5376 = vrcp.f32 %v1687_v49  ;;  %v1685_v42 = vpop.xlane.xlu1 %1684 }
 0x4a5   : > { %5378 = vrcp.f32 %v1685_v42 }
 0x4a6   : > { %v1892_v17 = vpop.permute.xlu0 %1891 }
 0x4a7   : > { %v1936_v7 = vsel %vm1456_vm0, %v1892_v17, 0 }
 0x4ab   : > { %v5373_v19 = vpop.eup %5372 }
 0x4ac   : > { %v1733_v41 = vmul.f32 %v5373_v19, %v6448_v27  ;;  %v1927_v27 = vsel %vm1456_vm0, %v6443_v60, 0 }
 0x4ad   : > { %v5375_v9 = vpop.eup %5374 }
 0x4ae   : > { %v5377_v43 = vpop.eup %5376  ;;  %v1730_v6 = vmul.f32 %v5375_v9, %v6451_v0  ;;  %v1930_v0 = vsel %vm1456_vm0, %v1888_v36, 0 }
 0x4af   : > { %v5379_v44 = vpop.eup %5378  ;;  %v1732_v21 = vmul.f32 %v5377_v43, %v6445_v25  ;;  %v1933_v25 = vsel %vm1456_vm0, %v6470_v8, 0 }
 0x4b0   : > { %v1731_v56 = vmul.f32 %v5379_v44, %v6454_v5  ;;  %v1894_v5 = vpop.permute.xlu1 %1893 }
 0x4b1   : > { %v1747_v28 = vpack.c.bf16 %v1733_v41, %v1732_v21  ;;  %v1939_v34 = vsel %vm1456_vm0, %v1894_v5, 0 }
 0x4b2   : > { %v1746_v10 = vpack.c.bf16 %v1731_v56, %v1730_v6 }
 0x4b4   : > { %4905 = vmatprep.mubr.bf16.mxu1 %v1746_v10 }
 0x4b5   : > { %4906 = vmatmul.mubr.bf16.vlgmr.msra.gmra.mrb[16].mxu1 %v1747_v28 }
 0x4b6   : > { %4922 = vmatpush3.bf16.xpose.msra.mxu1 %v1924_v15 }
 0x4b7   : > { %5062 = vmatprep.subr.msk.bf16.mxu1 %vm1456_vm0, %v6443_v60 }
 0x4be   : > { %4924 = vmatpush3.bf16.xpose.msra.mxu1 %v1927_v27 }
 0x4bf   : > { %5063 = vmatprep.subr.msk.bf16.mxu1 %vm1456_vm0, %v1888_v36 }
 0x4c6   : > { %4926 = vmatpush3.bf16.xpose.msra.mxu1 %v1930_v0 }
 0x4c7   : > { %5064 = vmatprep.subr.msk.bf16.mxu1 %vm1456_vm0, %v6470_v8 }
 0x4ce   : > { %4928 = vmatpush3.bf16.xpose.msra.mxu1 %v1933_v25 }
 0x4cf   : > { %5065 = vmatprep.subr.msk.bf16.mxu1 %vm1456_vm0, %v1892_v17 }
 0x4d6   : > { %4930 = vmatpush3.bf16.xpose.msra.mxu1 %v1936_v7 }
 0x4d7   : > { %5066 = vmatprep.subr.msk.bf16.mxu1 %vm1456_vm0, %v1894_v5  ;;  %v1695_v60 = vpop.xlane.xlu0 %1694 }
 0x4d9   : > { %v1691_v45 = vpop.xlane.xlu1 %1690 }
 0x4da   : > { %5380 = vrcp.f32 %v1691_v45 }
 0x4db   : > { %5382 = vrcp.f32 %v1695_v60  ;;  %v1693_v12 = vpop.xlane.xlu0 %1692 }
 0x4dc   : > { %5384 = vrcp.f32 %v1693_v12 }
 0x4dd   : > { %v1697_v23 = vpop.xlane.xlu1 %1696 }
 0x4de   : > { %5386 = vrcp.f32 %v1697_v23  ;;  %4932 = vmatpush3.bf16.xpose.msra.mxu1 %v1939_v34 }
 0x4df   : > { %v1711_v24 = vpop.xlane.xlu0 %1710 }
 0x4e1   : > { %v1703_v13 = vpop.xlane.xlu1 %1702 }
 0x4e3   : > { %v1707_v8 = vpop.xlane.xlu0 %1706 }
 0x4e4   : > { %v5381_v14 = vpop.eup %5380 }
 0x4e5   : > { %v5383_v16 = vpop.eup %5382  ;;  %v1699_v11 = vpop.xlane.xlu1 %1698  ;;  %v1734_v58 = vmul.f32 %v5381_v14, %v6475_v26 }
 0x4e6   : > { %v5385_v53 = vpop.eup %5384  ;;  %v1736_v61 = vmul.f32 %v5383_v16, %v6472_v48 }
 0x4e7   : > { %v1735_v37 = vmul.f32 %v5385_v53, %v6478_v40 }
 0x4e8   : > { %v5387_v1 = vpop.eup %5386 }
 0x4e9   : > { %v1705_v2 = vpop.xlane.xlu1 %1704  ;;  %v1713_v31 = vpop.xlane.xlu0 %1712  ;;  %v1748_v22 = vpack.c.bf16 %v1735_v37, %v1734_v58  ;;  %v1737_v33 = vmul.f32 %v5387_v1, %v6483_v46 }
 0x4ea   : > { %5388 = vrcp.f32 %v1705_v2 }
 0x4eb   : > { %4909 = vmatprep.mubr.bf16.mxu1 %v1748_v22  ;;  %v1749_v36 = vpack.c.bf16 %v1737_v33, %v1736_v61  ;;  %5390 = vrcp.f32 %v1699_v11 }
 0x4ec   : > { %5392 = vrcp.f32 %v1703_v13 }
 0x4ed   : > { %v1701_v49 = vpop.xlane.xlu1 %1700  ;;  %4910 = vmatmul.mubr.bf16.gmra.mrb[20].mxu1 %v1749_v36  ;;  %v1896_v30 = vpop.permute.xlu0 %1895 }
 0x4ee   : > { %5394 = vrcp.f32 %v1701_v49  ;;  %v1942_v26 = vsel %vm1456_vm0, %v1896_v30, 0  ;;  %5067 = vmatprep.subr.msk.bf16.mxu1 %vm1456_vm0, %v1896_v30 }
 0x4ef   : > { %4934 = vmatpush3.bf16.xpose.msra.mxu1 %v1942_v26  ;;  %5396 = vrcp.f32 %v1707_v8 }
 0x4f1   : > { %v1709_v40 = vpop.xlane.xlu1 %1708  ;;  %v1860_v47 = vpop.permute.xlu0 %1859 }
 0x4f2   : > { %5398 = vrcp.f32 %v1709_v40 }
 0x4f3   : > { %5400 = vrcp.f32 %v1713_v31 }
 0x4f4   : > { %v5389_v48 = vpop.eup %5388  ;;  %5402 = vrcp.f32 %v1711_v24 }
 0x4f5   : > { %v1898_v46 = vpop.permute.xlu1 %1897  ;;  %v1864_v42 = vpop.permute.xlu0 %1863  ;;  %v1741_v41 = vmul.f32 %v5389_v48, %v6499_v51 }
 0x4f6   : > { %v5391_v19 = vpop.eup %5390  ;;  %v1945_v9 = vsel %vm1456_vm0, %v1898_v46, 0  ;;  %5068 = vmatprep.subr.msk.bf16.mxu1 %vm1456_vm0, %v1898_v46 }
 0x4f7   : > { %v5393_v43 = vpop.eup %5392  ;;  %4936 = vmatpush3.bf16.xpose.msra.mxu1 %v1945_v9  ;;  %v1738_v21 = vmul.f32 %v5391_v19, %v6496_v3 }
 0x4f8   : > { %v5395_v44 = vpop.eup %5394  ;;  %v1740_v15 = vmul.f32 %v5393_v43, %v6490_v29 }
 0x4f9   : > { %v1862_v6 = vpop.permute.xlu1 %1861  ;;  %v1868_v56 = vpop.permute.xlu0 %1867  ;;  %v1739_v10 = vmul.f32 %v5395_v44, %v6505_v4 }
 0x4fa   : > { %v5397_v28 = vpop.eup %5396  ;;  %v1751_v25 = vpack.c.bf16 %v1741_v41, %v1740_v15 }
 0x4fb   : > { %v1750_v27 = vpack.c.bf16 %v1739_v10, %v1738_v21  ;;  %v1742_v60 = vmul.f32 %v5397_v28, %v6493_v54 }
 0x4fc   : > { %v5399_v0 = vpop.eup %5398 }
 0x4fd   : > { %v5401_v17 = vpop.eup %5400  ;;  %v1866_v5 = vpop.permute.xlu1 %1865  ;;  %4913 = vmatprep.mubr.bf16.mxu1 %v1750_v27  ;;  %v1743_v51 = vmul.f32 %v5399_v0, %v6508_v57 }
 0x4fe   : > { %v1872_v7 = vpop.permute.xlu0 %1871  ;;  %4914 = vmatmul.mubr.bf16.gmra.mrb[24].mxu1 %v1751_v25  ;;  %v5403_v45 = vpop.eup %5402  ;;  %v1745_v3 = vmul.f32 %v5401_v17, %v6501_v55 }
 0x4ff   : > { %v1752_v12 = vpack.c.bf16 %v1743_v51, %v1742_v60  ;;  %v1744_v29 = vmul.f32 %v5403_v45, %v6486_v52 }
 0x501   : > { %v1870_v4 = vpop.permute.xlu1 %1869  ;;  %4917 = vmatprep.mubr.bf16.mxu1 %v1752_v12  ;;  %v1753_v34 = vpack.c.bf16 %v1745_v3, %v1744_v29 }
 0x502   : > { %v2205_v23 = vpop.permute.xlu0 %2204 }
 0x503   : > { %4953 = vmatprep.subr.bf16.mxu0 %v2205_v23 }
 0x504   : > { %4954 = vmatpush3.bf16.msra.mxu0 %v2205_v23 }
 0x505   : > { %v1874_v24 = vpop.permute.xlu1 %1873 }
 0x506   : > { %4918 = vmatmul.mubr.bf16.gmra.mrb[28].mxu1 %v1753_v34  ;;  %v2209_v54 = vpop.permute.xlu0 %2208 }
 0x507   : > { %4937 = vmatprep.mubr.msk.bf16.mxu1 %vm1456_vm0, %v1860_v47 }
 0x509   : > { %v2207_v13 = vpop.permute.xlu1 %2206 }
 0x50a   : > { %4955 = vmatprep.subr.bf16.mxu0 %v2207_v13  ;;  %v2211_v55 = vpop.permute.xlu0 %2210 }
 0x50b   : > { %4956 = vmatpush3.bf16.msra.mxu0 %v2207_v13 }
 0x50c   : > { %4957 = vmatprep.subr.bf16.mxu0 %v2209_v54 }
 0x50e   : > { %4938 = vmatmul.mubr.msk.bf16.vlgmr.msra.gmra.mrb[32].mxu1 %vm1456_vm0, %v1862_v6 }
 0x50f   : > { %4941 = vmatprep.mubr.msk.bf16.mxu1 %vm1456_vm0, %v1864_v42  ;;  %4958 = vmatpush3.bf16.msra.mxu0 %v2209_v54 }
 0x510   : > { %4959 = vmatprep.subr.bf16.mxu0 %v2211_v55 }
 0x513   : > { %4960 = vmatpush3.bf16.msra.mxu0 %v2211_v55 }
 0x516   : > { %4942 = vmatmul.mubr.msk.bf16.gmra.mrb[36].mxu1 %vm1456_vm0, %v1866_v5 }
 0x517   : > { %4945 = vmatprep.mubr.msk.bf16.mxu1 %vm1456_vm0, %v1868_v56 }
 0x51e   : > { %4946 = vmatmul.mubr.msk.bf16.gmra.mrb[40].mxu1 %vm1456_vm0, %v1870_v4 }
 0x51f   : > { %4949 = vmatprep.mubr.msk.bf16.mxu1 %vm1456_vm0, %v1872_v7 }
 0x526   : > { %4950 = vmatmul.mubr.msk.bf16.gmra.mrb[44].mxu1 %vm1456_vm0, %v1874_v24 }
 0x527   : > { %3073 = vmatprep.mubr.bf16.mxu1 %v5751_v63 }
 0x588   : > { %v6584_v52 = vpop.f32.mrb[16].mxu1 }
 0x589   : > { %v6586_v57 = vpop.f32.mrb[17].mxu1 }
 0x58a   : > { %v6588_v14 = vpop.f32.mrb[18].mxu1 }
 0x58b   : > { %v6590_v16 = vpop.f32.mrb[19].mxu1 }
 0x5c0   : > { %v6592_v8 = vpop.f32.mrb[20].mxu1 }
 0x5c1   : > { %v6594_v11 = vpop.f32.mrb[21].mxu1 }
 0x5c2   : > { %v6596_v53 = vpop.f32.mrb[22].mxu1 }
 0x5c3   : > { %v6598_v58 = vpop.f32.mrb[23].mxu1 }
 0x5d1   : > { %v6600_v37 = vpop.f32.mrb[24].mxu1 }
 0x5d2   : > { %v6602_v1 = vpop.f32.mrb[25].mxu1 }
 0x5d3   : > { %v6604_v2 = vpop.f32.mrb[26].mxu1 }
 0x5d4   : > { %v6606_v31 = vpop.f32.mrb[27].mxu1 }
 0x5d9   : > { %v6608_v22 = vpop.f32.mrb[28].mxu1 }
 0x5da   : > { %v6610_v61 = vpop.f32.mrb[29].mxu1 }
 0x5db   : > { %v6612_v33 = vpop.f32.mrb[30].mxu1 }
 0x5dc   : > { %v6614_v36 = vpop.f32.mrb[31].mxu1 }
 0x5e1   : > { %v4939_v49 = vpop.f32.mrb[32].mxu1 }
 0x5e2   : > { %v1990_v30 = vadd.f32 %v4939_v49, %v6385_v62  ;;  %v1981_v26 = vpop.f32.mrb[33].mxu1 }
 0x5e3   : > { %v4940_v40 = vpop.f32.mrb[34].mxu1  ;;  %v1982_v46 = vadd.f32 %v1981_v26, %v6385_v62 }
 0x5e4   : > { %2048 = vmax.xlane.f32.xlu0 %v1990_v30  ;;  %v1984_v47 = vpop.f32.mrb[35].mxu1  ;;  %v1993_v19 = vadd.f32 %v4940_v40, %v6385_v62 }
 0x5e5   : > { %v1985_v48 = vadd.f32 %v1984_v47, %v6385_v62 }
 0x5e7   : > { %2046 = vmax.xlane.f32.xlu1 %v1985_v48 }
 0x5e8   : > { %2044 = vmax.xlane.f32.xlu0 %v1982_v46 }
 0x5e9   : > { %v4943_v42 = vpop.f32.mrb[36].mxu1 }
 0x5ea   : > { %v1997_v9 = vpop.f32.mrb[37].mxu1  ;;  %v2006_v6 = vadd.f32 %v4943_v42, %v6385_v62 }
 0x5eb   : > { %v4944_v43 = vpop.f32.mrb[38].mxu1  ;;  %v1998_v10 = vadd.f32 %v1997_v9, %v6385_v62 }
 0x5ec   : > { %v2009_v44 = vadd.f32 %v4944_v43, %v6385_v62  ;;  %2050 = vmax.xlane.f32.xlu0 %v1993_v19  ;;  %v2000_v41 = vpop.f32.mrb[39].mxu1 }
 0x5ed   : > { %v6623_v56 = vadd.f32 %v2000_v41, %v6385_v62 }
 0x5ee   : > { %2058 = vmax.xlane.f32.xlu1 %v2009_v44 }
 0x5f0   : > { %2056 = vmax.xlane.f32.xlu0 %v2006_v6 }
 0x5f1   : > { %v4947_v21 = vpop.f32.mrb[40].mxu1 }
 0x5f2   : > { %2054 = vmax.xlane.f32.xlu1 %v6623_v56  ;;  %v2013_v28 = vpop.f32.mrb[41].mxu1  ;;  %v6631_v25 = vadd.f32 %v4947_v21, %v6385_v62 }
 0x5f3   : > { %v4948_v15 = vpop.f32.mrb[42].mxu1  ;;  %v6639_v7 = vadd.f32 %v2013_v28, %v6385_v62 }
 0x5f4   : > { %v6628_v27 = vadd.f32 %v4948_v15, %v6385_v62  ;;  %2052 = vmax.xlane.f32.xlu0 %v1998_v10  ;;  %v2016_v0 = vpop.f32.mrb[43].mxu1 }
 0x5f5   : > { %v6635_v17 = vadd.f32 %v2016_v0, %v6385_v62 }
 0x5f6   : > { %2066 = vmax.xlane.f32.xlu1 %v6628_v27 }
 0x5f8   : > { %2064 = vmax.xlane.f32.xlu0 %v6631_v25 }
 0x5f9   : > { %v4951_v5 = vpop.f32.mrb[44].mxu1 }
 0x5fa   : > { %2062 = vmax.xlane.f32.xlu1 %v6635_v17  ;;  %v2029_v60 = vpop.f32.mrb[45].mxu1  ;;  %v6644_v12 = vadd.f32 %v4951_v5, %v6385_v62 }
 0x5fb   : > { %v4952_v51 = vpop.f32.mrb[46].mxu1  ;;  %v6648_v3 = vadd.f32 %v2029_v60, %v6385_v62 }
 0x5fc   : > { %2060 = vmax.xlane.f32.xlu0 %v6639_v7  ;;  %v2032_v45 = vpop.f32.mrb[47].mxu1  ;;  %v6656_v4 = vadd.f32 %v4952_v51, %v6385_v62 }
 0x5fd   : > { %v6660_v23 = vadd.f32 %v2032_v45, %v6385_v62 }
 0x600   : > { %2072 = vmax.xlane.f32.xlu0 %v6644_v12 }
 0x604   : > { %2068 = vmax.xlane.f32.xlu0 %v6648_v3 }
 0x60b   : > { %2214 = vrot.lane.b32.xlu1 %v6285_v35, %s5752_s17 }
 0x61a   : > { %2212 = vrot.lane.b32.xlu0 %v6289_v38, %s5752_s17 }
 0x62f   : > { %2074 = vmax.xlane.f32.xlu1 %v6656_v4 }
 0x633   : > { %2070 = vmax.xlane.f32.xlu1 %v6660_v23 }
 0x671   : > { %v2049_v29 = vpop.xlane.xlu0 %2048 }
 0x672   : > { %v2078_v34 = vsub.f32 %v1990_v30, %v2049_v29 }
 0x674   : > { %v2096_v24 = vmul.f32 1.442695, %v2078_v34  ;;  %v2047_v13 = vpop.xlane.xlu1 %2046 }
 0x675   : > { %v2045_v54 = vpop.xlane.xlu0 %2044  ;;  %v2077_v49 = vsub.f32 %v1985_v48, %v2047_v13 }
 0x676   : > { %5404 = vpow2.f32 %v2096_v24  ;;  %v2076_v35 = vsub.f32 %v1982_v46, %v2045_v54 }
 0x677   : > { %v2094_v42 = vmul.f32 1.442695, %v2077_v49 }
 0x678   : > { %v2092_v55 = vmul.f32 1.442695, %v2076_v35 }
 0x679   : > { %v2051_v38 = vpop.xlane.xlu0 %2050 }
 0x67a   : > { %5406 = vpow2.f32 %v2092_v55  ;;  %v2079_v26 = vsub.f32 %v1993_v19, %v2051_v38 }
 0x67b   : > { %v2059_v40 = vpop.xlane.xlu1 %2058 }
 0x67c   : > { %v2098_v47 = vmul.f32 1.442695, %v2079_v26  ;;  %v2083_v9 = vsub.f32 %v2009_v44, %v2059_v40 }
 0x67d   : > { %v2057_v62 = vpop.xlane.xlu0 %2056 }
 0x67e   : > { %5408 = vpow2.f32 %v2098_v47  ;;  %v2082_v43 = vsub.f32 %v2006_v6, %v2057_v62  ;;  %v2106_v28 = vmul.f32 1.442695, %v2083_v9 }
 0x67f   : > { %v2055_v41 = vpop.xlane.xlu1 %2054  ;;  %5410 = vpow2.f32 %v2094_v42 }
 0x680   : > { %v6663_v21 = vpop.eup %5404  ;;  %v2104_v30 = vmul.f32 1.442695, %v2082_v43  ;;  %v2081_v48 = vsub.f32 %v6623_v56, %v2055_v41 }
 0x681   : > { %2128 = vadd.xlane.f32.xlu1 %v6663_v21  ;;  %v2053_v46 = vpop.xlane.xlu0 %2052 }
 0x682   : > { %5412 = vpow2.f32 %v2104_v30  ;;  %v2080_v19 = vsub.f32 %v1998_v10, %v2053_v46  ;;  %v2102_v6 = vmul.f32 1.442695, %v2081_v48 }
 0x683   : > { %5414 = vpow2.f32 %v2106_v28  ;;  %v2067_v45 = vpop.xlane.xlu1 %2066 }
 0x684   : > { %v6667_v15 = vpop.eup %5406  ;;  %v2100_v0 = vmul.f32 1.442695, %v2080_v19  ;;  %v2087_v38 = vsub.f32 %v6628_v27, %v2067_v45 }
 0x685   : > { %2124 = vadd.xlane.f32.xlu1 %v6667_v15  ;;  %v2065_v44 = vpop.xlane.xlu0 %2064 }
 0x686   : > { %5416 = vpow2.f32 %v2100_v0  ;;  %v2114_v47 = vmul.f32 1.442695, %v2087_v38  ;;  %v2086_v42 = vsub.f32 %v6631_v25, %v2065_v44 }
 0x687   : > { %5418 = vpow2.f32 %v2102_v6  ;;  %v2063_v24 = vpop.xlane.xlu1 %2062 }
 0x688   : > { %v6670_v5 = vpop.eup %5408  ;;  %v2085_v26 = vsub.f32 %v6635_v17, %v2063_v24  ;;  %v2112_v43 = vmul.f32 1.442695, %v2086_v42 }
 0x689   : > { %2130 = vadd.xlane.f32.xlu1 %v6670_v5  ;;  %v2061_v60 = vpop.xlane.xlu0 %2060  ;;  %v6673_v51 = vpop.eup %5410 }
 0x68a   : > { %v2084_v49 = vsub.f32 %v6639_v7, %v2061_v60  ;;  %v2110_v9 = vmul.f32 1.442695, %v2085_v26 }
 0x68b   : > { %v2215_v55 = vpop.permute.xlu1 %2214 }
 0x68c   : > { %v6675_v56 = vpop.eup %5412  ;;  %v2108_v40 = vmul.f32 1.442695, %v2084_v49 }
 0x68d   : > { %2126 = vadd.xlane.f32.xlu1 %v6673_v51  ;;  %2136 = vadd.xlane.f32.xlu0 %v6675_v56  ;;  %v2073_v10 = vpop.xlane.xlu0 %2072  ;;  %v6679_v29 = vpop.eup %5414 }
 0x68e   : > { %5420 = vpow2.f32 %v2108_v40  ;;  %v2090_v27 = vsub.f32 %v6644_v12, %v2073_v10 }
 0x68f   : > { %5422 = vpow2.f32 %v2114_v47 }
 0x690   : > { %v6681_v34 = vpop.eup %5416  ;;  %5424 = vpow2.f32 %v2110_v9  ;;  %v2120_v46 = vmul.f32 1.442695, %v2090_v27 }
 0x691   : > { %2138 = vadd.xlane.f32.xlu0 %v6679_v29  ;;  %2132 = vadd.xlane.f32.xlu1 %v6681_v34  ;;  %v2069_v54 = vpop.xlane.xlu0 %2068  ;;  %v6685_v13 = vpop.eup %5418  ;;  %5426 = vpow2.f32 %v2112_v43 }
 0x695   : > { %2134 = vadd.xlane.f32.xlu0 %v6685_v13  ;;  %v2213_v35 = vpop.permute.xlu0 %2212 }
 0x696   : > { %4961 = vmatprep.subr.bf16.mxu0 %v2213_v35 }
 0x697   : > { %4962 = vmatpush3.bf16.msra.mxu0 %v2213_v35 }
 0x698   : > { %4963 = vmatprep.subr.bf16.mxu0 %v2215_v55  ;;  %v6700_v28 = vpop.eup %5420 }
 0x699   : > { %v6703_v48 = vpop.eup %5422 }
 0x69b   : > { %4964 = vmatpush3.bf16.msra.mxu0 %v2215_v55 }
 0x6a2   : > { %2218 = vrot.lane.b32.xlu1 %v6309_v59, %s5752_s17  ;;  %v2088_v59 = vsub.f32 %v6648_v3, %v2069_v54  ;;  %v6705_v3 = vpop.eup %5424 }
 0x6a3   : > { %v6709_v12 = vpop.eup %5426 }
 0x6a4   : > { %v2116_v17 = vmul.f32 1.442695, %v2088_v59 }
 0x6ab   : > { %2216 = vrot.lane.b32.xlu0 %v6313_v20, %s5752_s17 }
 0x6bc   : > { %v2075_v62 = vpop.xlane.xlu1 %2074 }
 0x6bd   : > { %v2091_v20 = vsub.f32 %v6656_v4, %v2075_v62 }
 0x6bf   : > { %v2122_v25 = vmul.f32 1.442695, %v2091_v20 }
 0x6c0   : > { %v2071_v41 = vpop.xlane.xlu1 %2070 }
 0x6c1   : > { %v2089_v7 = vsub.f32 %v6660_v23, %v2071_v41 }
 0x6c3   : > { %v2118_v30 = vmul.f32 1.442695, %v2089_v7 }
 0x6c5   : > { %5428 = vpow2.f32 %v2118_v30 }
 0x6c6   : > { %2140 = vadd.xlane.f32.xlu1 %v6700_v28  ;;  %5430 = vpow2.f32 %v2116_v17 }
 0x6c7   : > { %5432 = vpow2.f32 %v2122_v25 }
 0x6c8   : > { %5434 = vpow2.f32 %v2120_v46 }
 0x6ca   : > { %2142 = vadd.xlane.f32.xlu0 %v6705_v3  ;;  %2146 = vadd.xlane.f32.xlu1 %v6703_v48 }
 0x6ce   : > { %2144 = vadd.xlane.f32.xlu0 %v6709_v12 }
 0x6cf   : > { %v6712_v4 = vpop.eup %5428 }
 0x6d0   : > { %2150 = vadd.xlane.f32.xlu1 %v6712_v4  ;;  %v6715_v23 = vpop.eup %5430 }
 0x6d1   : > { %v6718_v19 = vpop.eup %5432 }
 0x6d2   : > { %2148 = vadd.xlane.f32.xlu0 %v6715_v23  ;;  %v6721_v0 = vpop.eup %5434 }
 0x6d4   : > { %2154 = vadd.xlane.f32.xlu1 %v6718_v19 }
 0x6d6   : > { %2152 = vadd.xlane.f32.xlu0 %v6721_v0 }
 0x70e   : > { %v2129_v44 = vpop.xlane.xlu1 %2128 }
 0x712   : > { %v2125_v6 = vpop.xlane.xlu1 %2124 }
 0x713   : > { %5436 = vrcp.f32 %v2125_v6 }
 0x716   : > { %v2131_v60 = vpop.xlane.xlu1 %2130 }
 0x71a   : > { %v2127_v45 = vpop.xlane.xlu1 %2126  ;;  %v2137_v10 = vpop.xlane.xlu0 %2136 }
 0x71b   : > { %5438 = vrcp.f32 %v2127_v45 }
 0x71c   : > { %5440 = vrcp.f32 %v2131_v60 }
 0x71d   : > { %5442 = vrcp.f32 %v2129_v44  ;;  %v5437_v55 = vpop.eup %5436 }
 0x71e   : > { %v2133_v24 = vpop.xlane.xlu1 %2132  ;;  %v2139_v54 = vpop.xlane.xlu0 %2138  ;;  %v2172_v40 = vmul.f32 %v5437_v55, %v6667_v15 }
 0x71f   : > { %5444 = vrcp.f32 %v2133_v24 }
 0x722   : > { %v2135_v35 = vpop.xlane.xlu0 %2134  ;;  %v2219_v9 = vpop.permute.xlu1 %2218 }
 0x723   : > { %5446 = vrcp.f32 %v2135_v35 }
 0x724   : > { %5448 = vrcp.f32 %v2139_v54 }
 0x725   : > { %v5439_v49 = vpop.eup %5438  ;;  %5450 = vrcp.f32 %v2137_v10 }
 0x726   : > { %v5441_v38 = vpop.eup %5440  ;;  %v2217_v26 = vpop.permute.xlu0 %2216  ;;  %v2173_v47 = vmul.f32 %v5439_v49, %v6673_v51 }
 0x727   : > { %4965 = vmatprep.subr.bf16.mxu0 %v2217_v26  ;;  %v5443_v42 = vpop.eup %5442  ;;  %v2175_v43 = vmul.f32 %v5441_v38, %v6670_v5 }
 0x728   : > { %4966 = vmatpush3.bf16.msra.mxu0 %v2217_v26  ;;  %v2188_v62 = vpack.c.bf16 %v2173_v47, %v2172_v40  ;;  %v2174_v41 = vmul.f32 %v5443_v42, %v6663_v21 }
 0x729   : > { %4967 = vmatprep.subr.bf16.mxu0 %v2219_v9  ;;  %v5445_v59 = vpop.eup %5444 }
 0x72a   : > { %4969 = vmatprep.mubr.bf16.mxu0 %v2188_v62  ;;  %v2189_v7 = vpack.c.bf16 %v2175_v43, %v2174_v41  ;;  %v2176_v15 = vmul.f32 %v5445_v59, %v6681_v34  ;;  %v5220_v41 = vld [vmem:[%s5947_s23] sm:$0xff]  }
 0x72c   : > { %4968 = vmatpush3.bf16.msra.mxu0 %v2219_v9 }
 0x72d   : > { %v5447_v20 = vpop.eup %5446  ;;  %4985 = vmatprep.subr.bf16.mxu0 %v5220_v41 }
 0x72e   : > { %v5449_v27 = vpop.eup %5448  ;;  %v2177_v51 = vmul.f32 %v5447_v20, %v6685_v13  ;;  %v5221_v20 = vld [vmem:[%s5947_s23 + $0x8] sm:$0xff]  }
 0x72f   : > { %4970 = vmatmul.mubr.bf16.vlgmr.msra.gmra.mrb[48].mxu0 %v2189_v7  ;;  %v5451_v17 = vpop.eup %5450  ;;  %v2179_v25 = vmul.f32 %v5449_v27, %v6679_v29  ;;  %v5224_v7 = vld [vmem:[%s5947_s23 + $0x20] sm:$0xff]   ;;  %v5227_v27 = vld [vmem:[%s5947_s23 + $0x38] sm:$0xff]  }
 0x730   : > { %v2190_v30 = vpack.c.bf16 %v2177_v51, %v2176_v15  ;;  %v2178_v5 = vmul.f32 %v5451_v17, %v6675_v56  ;;  %4986 = vmatpush3.bf16.msra.mxu0 %v5220_v41 }
 0x731   : > { %4987 = vmatprep.subr.bf16.mxu0 %v5221_v20 }
 0x732   : > { %4973 = vmatprep.mubr.bf16.mxu0 %v2190_v30  ;;  %v2191_v46 = vpack.c.bf16 %v2179_v25, %v2178_v5 }
 0x734   : > { %4988 = vmatpush3.bf16.msra.mxu0 %v5221_v20 }
 0x737   : > { %4974 = vmatmul.mubr.bf16.gmra.mrb[52].mxu0 %v2191_v46 }
 0x753   : > { %v2141_v44 = vpop.xlane.xlu1 %2140 }
 0x754   : > { %5452 = vrcp.f32 %v2141_v44 }
 0x757   : > { %v2147_v21 = vpop.xlane.xlu1 %2146  ;;  %v2143_v6 = vpop.xlane.xlu0 %2142 }
 0x758   : > { %5454 = vrcp.f32 %v2143_v6 }
 0x759   : > { %5456 = vrcp.f32 %v2147_v21 }
 0x75b   : > { %v2145_v60 = vpop.xlane.xlu0 %2144 }
 0x75c   : > { %5458 = vrcp.f32 %v2145_v60 }
 0x75d   : > { %v2151_v34 = vpop.xlane.xlu1 %2150 }
 0x75e   : > { %5460 = vrcp.f32 %v2151_v34  ;;  %v5453_v45 = vpop.eup %5452 }
 0x75f   : > { %v2149_v13 = vpop.xlane.xlu0 %2148  ;;  %v2180_v54 = vmul.f32 %v5453_v45, %v6700_v28 }
 0x760   : > { %5462 = vrcp.f32 %v2149_v13 }
 0x761   : > { %v2155_v10 = vpop.xlane.xlu1 %2154 }
 0x762   : > { %5464 = vrcp.f32 %v2155_v10  ;;  %v5455_v29 = vpop.eup %5454 }
 0x763   : > { %v2153_v24 = vpop.xlane.xlu0 %2152  ;;  %v5457_v56 = vpop.eup %5456  ;;  %v2181_v35 = vmul.f32 %v5455_v29, %v6705_v3 }
 0x764   : > { %5466 = vrcp.f32 %v2153_v24  ;;  %v2183_v26 = vmul.f32 %v5457_v56, %v6703_v48 }
 0x765   : > { %v2192_v49 = vpack.c.bf16 %v2181_v35, %v2180_v54 }
 0x766   : > { %v5459_v55 = vpop.eup %5458 }
 0x767   : > { %v2182_v38 = vmul.f32 %v5459_v55, %v6709_v12  ;;  %4977 = vmatprep.mubr.bf16.mxu0 %v2192_v49 }
 0x768   : > { %v5461_v40 = vpop.eup %5460 }
 0x769   : > { %v2193_v47 = vpack.c.bf16 %v2183_v26, %v2182_v38  ;;  %v2185_v28 = vmul.f32 %v5461_v40, %v6712_v4  ;;  %v5222_v4 = vld [vmem:[%s5947_s23 + $0x10] sm:$0xff]  }
 0x76a   : > { %v5463_v42 = vpop.eup %5462  ;;  %4989 = vmatprep.subr.bf16.mxu0 %v5222_v4 }
 0x76b   : > { %4978 = vmatmul.mubr.bf16.gmra.mrb[56].mxu0 %v2193_v47  ;;  %v2184_v9 = vmul.f32 %v5463_v42, %v6715_v23  ;;  %v5223_v23 = vld [vmem:[%s5947_s23 + $0x18] sm:$0xff]  }
 0x76c   : > { %v5465_v62 = vpop.eup %5464  ;;  %4990 = vmatpush3.bf16.msra.mxu0 %v5222_v4 }
 0x76d   : > { %v2194_v3 = vpack.c.bf16 %v2185_v28, %v2184_v9  ;;  %v2187_v12 = vmul.f32 %v5465_v62, %v6718_v19  ;;  %4991 = vmatprep.subr.bf16.mxu0 %v5223_v23  ;;  %v5225_v19 = vld [vmem:[%s5947_s23 + $0x28] sm:$0xff]  }
 0x76e   : > { %v5467_v43 = vpop.eup %5466 }
 0x76f   : > { %4981 = vmatprep.mubr.bf16.mxu0 %v2194_v3  ;;  %v2186_v48 = vmul.f32 %v5467_v43, %v6721_v0  ;;  %v5226_v0 = vld [vmem:[%s5947_s23 + $0x30] sm:$0xff]  }
 0x770   : > { %4992 = vmatpush3.bf16.msra.mxu0 %v5223_v23 }
 0x771   : > { %v2195_v59 = vpack.c.bf16 %v2187_v12, %v2186_v48  ;;  %4993 = vmatprep.subr.bf16.mxu0 %v5224_v7 }
 0x773   : > { %4982 = vmatmul.mubr.bf16.gmra.mrb[60].mxu0 %v2195_v59 }
 0x774   : > { %4994 = vmatpush3.bf16.msra.mxu0 %v5224_v7 }
 0x775   : > { %4995 = vmatprep.subr.bf16.mxu0 %v5225_v19 }
 0x778   : > { %4996 = vmatpush3.bf16.msra.mxu0 %v5225_v19 }
 0x779   : > { %4997 = vmatprep.subr.bf16.mxu0 %v5226_v0 }
 0x77c   : > { %4998 = vmatpush3.bf16.msra.mxu0 %v5226_v0 }
 0x77d   : > { %4999 = vmatprep.subr.bf16.mxu0 %v5227_v27 }
 0x780   : > { %5000 = vmatpush3.bf16.msra.mxu0 %v5227_v27 }
 0x802   : > { %v4971_v15 = vpop.f32.mrb[48].mxu0 }
 0x803   : > { %v2262_v51 = vpop.f32.mrb[49].mxu0 }
 0x804   : > { %v4972_v17 = vpop.f32.mrb[50].mxu0 }
 0x805   : > { %v5153_v30 = vpack.i.bf16 %v4972_v17, %v4971_v15  ;;  %v2265_v25 = vpop.f32.mrb[51].mxu0 }
 0x806   : > { %v5148_v5 = vpack.i.bf16 %v2265_v25, %v2262_v51 }
 0x807   : > { %5154 = vrot.lane.b32.xlu1 %v5153_v30, %s5752_s17 }
 0x808   : > { %5149 = vrot.lane.b32.xlu0 %v5148_v5, %s5752_s17 }
 0x80a   : > { %v4975_v46 = vpop.f32.mrb[52].mxu0 }
 0x80b   : > { %v2278_v44 = vpop.f32.mrb[53].mxu0 }
 0x80c   : > { %v4976_v21 = vpop.f32.mrb[54].mxu0 }
 0x80d   : > { %v5163_v6 = vpack.i.bf16 %v4976_v21, %v4975_v46  ;;  %v2281_v60 = vpop.f32.mrb[55].mxu0 }
 0x80e   : > { %v5158_v34 = vpack.i.bf16 %v2281_v60, %v2278_v44 }
 0x810   : > { %5159 = vrot.lane.b32.xlu1 %v5158_v34, %s5752_s17 }
 0x814   : > { %5164 = vrot.lane.b32.xlu1 %v5163_v6, %s5752_s17 }
 0x83e   : > { %v4979_v13 = vpop.f32.mrb[56].mxu0 }
 0x83f   : > { %v2294_v45 = vpop.f32.mrb[57].mxu0 }
 0x840   : > { %v4980_v10 = vpop.f32.mrb[58].mxu0 }
 0x841   : > { %v5173_v29 = vpack.i.bf16 %v4980_v10, %v4979_v13  ;;  %v2297_v24 = vpop.f32.mrb[59].mxu0 }
 0x842   : > { %v5168_v56 = vpack.i.bf16 %v2297_v24, %v2294_v45 }
 0x843   : > { %5174 = vrot.lane.b32.xlu1 %v5173_v29, %s5752_s17 }
 0x844   : > { %5169 = vrot.lane.b32.xlu0 %v5168_v56, %s5752_s17 }
 0x846   : > { %v4983_v54 = vpop.f32.mrb[60].mxu0 }
 0x847   : > { %v2310_v35 = vpop.f32.mrb[61].mxu0 }
 0x848   : > { %v4984_v55 = vpop.f32.mrb[62].mxu0 }
 0x849   : > { %v5183_v49 = vpack.i.bf16 %v4984_v55, %v4983_v54  ;;  %v2313_v38 = vpop.f32.mrb[63].mxu0  ;;  %v5628_v55 = vld [vmem:[#allocation2] sm:$0xff] }
 0x84a   : > { %v5178_v26 = vpack.i.bf16 %v2313_v38, %v2310_v35 }
 0x84b   : > { %5184 = vrot.lane.b32.xlu1 %v5183_v49, %s5752_s17 }
 0x84c   : > { %5179 = vrot.lane.b32.xlu0 %v5178_v26, %s5752_s17  ;;  %v5629_v26 = vld [vmem:[#allocation2 + $0x8] sm:$0xff] }
 0x879   : > { %v5155_v40 = vpop.permute.xlu1 %5154 }
 0x87a   : > { %v5157_v47 = vunpack.i.h.bf16 %v5155_v40  ;;  %v5156_v42 = vunpack.i.l.bf16 %v5155_v40  ;;  %v5150_v9 = vpop.permute.xlu0 %5149 }
 0x87b   : > { %v5152_v28 = vunpack.i.h.bf16 %v5150_v9  ;;  %v5151_v62 = vunpack.i.l.bf16 %v5150_v9 }
 0x87c   : > { %v2392_v3 = vsel %vm1456_vm0, %v6588_v14, %v5157_v47  ;;  %v2391_v43 = vsel %vm1456_vm0, %v6584_v52, %v5156_v42  ;;  %v5630_v47 = vld [vmem:[#allocation2 + $0x10] sm:$0xff] }
 0x87d   : > { %v2406_v48 = vpack.c.bf16 %v2392_v3, %v2391_v43  ;;  %v2389_v12 = vsel %vm1456_vm0, %v6586_v57, %v5151_v62  ;;  %v2390_v59 = vsel %vm1456_vm0, %v6590_v16, %v5152_v28  ;;  %v5631_v62 = vld [vmem:[#allocation2 + $0x18] sm:$0xff] }
 0x87e   : > { %v2405_v41 = vpack.c.bf16 %v2390_v59, %v2389_v12 }
 0x880   : > { %5001 = vmatprep.mubr.bf16.mxu0 %v2405_v41  ;;  %v5632_v41 = vld [vmem:[#allocation2 + $0x20] sm:$0xff] }
 0x881   : > { %5002 = vmatmul.mubr.bf16.vlgmr.msra.gmra.mrb[64].mxu0 %v2406_v48 }
 0x882   : > { %v5160_v20 = vpop.permute.xlu1 %5159 }
 0x883   : > { %v5162_v4 = vunpack.i.h.bf16 %v5160_v20  ;;  %v5161_v23 = vunpack.i.l.bf16 %v5160_v20 }
 0x885   : > { %v2393_v7 = vsel %vm1456_vm0, %v6594_v11, %v5161_v23  ;;  %v2394_v14 = vsel %vm1456_vm0, %v6598_v58, %v5162_v4 }
 0x886   : > { %v5165_v52 = vpop.permute.xlu1 %5164  ;;  %v2407_v19 = vpack.c.bf16 %v2394_v14, %v2393_v7  ;;  %v5633_v14 = vld [vmem:[#allocation2 + $0x28] sm:$0xff] }
 0x887   : > { %v5167_v0 = vunpack.i.h.bf16 %v5165_v52  ;;  %v5166_v27 = vunpack.i.l.bf16 %v5165_v52 }
 0x888   : > { %5005 = vmatprep.mubr.bf16.mxu0 %v2407_v19  ;;  %v5634_v19 = vld [vmem:[#allocation2 + $0x30] sm:$0xff] }
 0x889   : > { %v2395_v57 = vsel %vm1456_vm0, %v6592_v8, %v5166_v27  ;;  %v2396_v16 = vsel %vm1456_vm0, %v6596_v53, %v5167_v0  ;;  %v5635_v27 = vld [vmem:[#allocation2 + $0x38] sm:$0xff] }
 0x88a   : > { %v2408_v15 = vpack.c.bf16 %v2396_v16, %v2395_v57 }
 0x88c   : > { %5006 = vmatmul.mubr.bf16.gmra.mrb[68].mxu0 %v2408_v15 }
 0x8b5   : > { %v5175_v51 = vpop.permute.xlu1 %5174 }
 0x8b6   : > { %v5177_v17 = vunpack.i.h.bf16 %v5175_v51  ;;  %v5176_v30 = vunpack.i.l.bf16 %v5175_v51  ;;  %v5170_v11 = vpop.permute.xlu0 %5169 }
 0x8b7   : > { %v5172_v25 = vunpack.i.h.bf16 %v5170_v11  ;;  %v5171_v5 = vunpack.i.l.bf16 %v5170_v11 }
 0x8b8   : > { %v2399_v58 = vsel %vm1456_vm0, %v6600_v37, %v5176_v30  ;;  %v2400_v46 = vsel %vm1456_vm0, %v6604_v2, %v5177_v17 }
 0x8b9   : > { %v2397_v8 = vsel %vm1456_vm0, %v6602_v1, %v5171_v5  ;;  %v2398_v53 = vsel %vm1456_vm0, %v6606_v31, %v5172_v25  ;;  %v2410_v44 = vpack.c.bf16 %v2400_v46, %v2399_v58  ;;  %v5636_v25 = vld [vmem:[#allocation2 + $0x40] sm:$0xff] }
 0x8ba   : > { %v2409_v21 = vpack.c.bf16 %v2398_v53, %v2397_v8  ;;  %v5637_v8 = vld [vmem:[#allocation2 + $0x48] sm:$0xff] }
 0x8bc   : > { %5009 = vmatprep.mubr.bf16.mxu0 %v2409_v21 }
 0x8bd   : > { %v5185_v6 = vpop.permute.xlu1 %5184  ;;  %5010 = vmatmul.mubr.bf16.gmra.mrb[72].mxu0 %v2410_v44  ;;  %v5638_v44 = vld [vmem:[#allocation2 + $0x50] sm:$0xff] }
 0x8be   : > { %v5187_v60 = vunpack.i.h.bf16 %v5185_v6  ;;  %v5186_v34 = vunpack.i.l.bf16 %v5185_v6  ;;  %v5180_v13 = vpop.permute.xlu0 %5179 }
 0x8bf   : > { %v5182_v45 = vunpack.i.h.bf16 %v5180_v13  ;;  %v5181_v37 = vunpack.i.l.bf16 %v5180_v13 }
 0x8c0   : > { %v2403_v2 = vsel %vm1456_vm0, %v6608_v22, %v5186_v34  ;;  %v2404_v1 = vsel %vm1456_vm0, %v6612_v33, %v5187_v60  ;;  %v6794_v22 = vld [vmem:[%s7705_s1] ss:$0 sm:$0xff]  ;;  %v5639_v34 = vld [vmem:[#allocation2 + $0x58] sm:$0xff] }
 0x8c1   : > { %v2401_v31 = vsel %vm1456_vm0, %v6610_v61, %v5181_v37  ;;  %v2402_v10 = vsel %vm1456_vm0, %v6614_v36, %v5182_v45  ;;  %v2412_v29 = vpack.c.bf16 %v2404_v1, %v2403_v2 }
 0x8c2   : > { %v2411_v24 = vpack.c.bf16 %v2402_v10, %v2401_v31  ;;  %v5640_v31 = vld [vmem:[#allocation2 + $0x60] sm:$0xff] }
 0x8c4   : > { %5013 = vmatprep.mubr.bf16.mxu0 %v2411_v24 }
 0x8c5   : > { %5014 = vmatmul.mubr.bf16.gmra.mrb[76].mxu0 %v2412_v29 }
 0x8c6   : > { %3186 = vmatprep.mubr.bf16.mxu0 %v5751_v63 }
 0x954   : > { %v5003_v56 = vpop.f32.mrb[64].mxu0 }
 0x955   : > { %v2518_v33 = vpop.f32.mrb[65].mxu0  ;;  %v2527_v36 = vadd.f32 %v5003_v56, %v6794_v22  ;;  %v5641_v56 = vld [vmem:[#allocation2 + $0x68] sm:$0xff] }
 0x956   : > { %v2519_v54 = vadd.f32 %v6794_v22, %v2518_v33  ;;  %v5004_v61 = vpop.f32.mrb[66].mxu0 }
 0x957   : > { %v2521_v35 = vpop.f32.mrb[67].mxu0  ;;  %v6804_v42 = vadd.f32 %v5630_v47, %v2527_v36  ;;  %v2530_v9 = vadd.f32 %v5004_v61, %v6794_v22  ;;  %v5236_v47 = vld [vmem:[%s5971_s26 + $0x24] ss:$16 sps:$4 sm:$0xff]  }
 0x958   : > { %v6798_v49 = vadd.f32 %v5628_v55, %v2519_v54  ;;  %v2522_v38 = vadd.f32 %v6794_v22, %v2521_v35  ;;  %v5642_v54 = vld [vmem:[#allocation2 + $0x70] sm:$0xff]  ;;  %v5643_v35 = vld [vmem:[#allocation2 + $0x78] sm:$0xff] }
 0x959   : > { %7708 = vst [vmem:[#allocation20_spill] sm:$0xff] %v6804_v42  ;;  %v6809_v3 = vadd.f32 %v5631_v62, %v2530_v9  ;;  %v5230_v55 = vld [vmem:[%s5971_s26 + $0x4] ss:$16 sps:$4 sm:$0xff]   ;;  %v5239_v9 = vld [vmem:[%s5971_s26 + $0x2c] ss:$16 sps:$4 sm:$0xff]  }
 0x95a   : > { %7706 = vst [vmem:[#allocation18_spill] sm:$0xff] %v6798_v49  ;;  %v6801_v40 = vadd.f32 %v5629_v26, %v2522_v38  ;;  %2599 = vadd.xlane.f32.xlu0 %v6798_v49  ;;  %v5231_v38 = vld [vmem:[%s5971_s26 + $0x8] ss:$16 sps:$4 sm:$0xff]   ;;  %v5233_v26 = vld [vmem:[%s5971_s26 + $0xc] ss:$16 sps:$4 sm:$0xff]   ;;  %3041 = vmatprep.subr.bf16.mxu1 %v5230_v55 }
 0x95b   : > { %7709 = vst [vmem:[#allocation21_spill] sm:$0xff] %v6809_v3  ;;  %3154 = vmatprep.subr.bf16.mxu0 %v5233_v26  ;;  %v5237_v62 = vld [vmem:[%s5971_s26 + $0x28] ss:$16 sps:$4 sm:$0xff]   ;;  %v5248_v55 = vld [vmem:[%s5971_s26 + $0x64] ss:$16 sps:$4 sm:$0xff]  }
 0x95c   : > { %7707 = vst [vmem:[#allocation19_spill] sm:$0xff] %v6801_v40  ;;  %2601 = vadd.xlane.f32.xlu1 %v6801_v40  ;;  %3155 = vmatpush1.bf16.msra.mxu0 %v5231_v38  ;;  %v5251_v38 = vld [vmem:[%s5971_s26 + $0x6c] ss:$16 sps:$4 sm:$0xff]   ;;  %v5246_v26 = vld [vmem:[%s5971_s26 + $0x60] ss:$16 sps:$4 sm:$0xff]  }
 0x95d   : > { %3156 = vmatprep.subr.bf16.mxu0 %v5239_v9  ;;  %v5254_v9 = vld [vmem:[%s5971_s26 + $0x84] ss:$16 sps:$4 sm:$0xff]  }
 0x95e   : > { %2603 = vadd.xlane.f32.xlu0 %v6804_v42 }
 0x95f   : > { %v5007_v28 = vpop.f32.mrb[68].mxu0 }
 0x960   : > { %v2534_v43 = vpop.f32.mrb[69].mxu0  ;;  %v2543_v23 = vadd.f32 %v5007_v28, %v6794_v22  ;;  %v5234_v28 = vld [vmem:[%s5971_s26 + $0x20] ss:$16 sps:$4 sm:$0xff]   ;;  %3157 = vmatpush1.bf16.msra.mxu0 %v5237_v62 }
 0x961   : > { %v2535_v48 = vadd.f32 %v6794_v22, %v2534_v43  ;;  %v5008_v12 = vpop.f32.mrb[70].mxu0  ;;  %v5252_v62 = vld [vmem:[%s5971_s26 + $0x80] ss:$16 sps:$4 sm:$0xff]  }
 0x962   : > { %v2537_v59 = vpop.f32.mrb[71].mxu0  ;;  %2605 = vadd.xlane.f32.xlu0 %v6809_v3  ;;  %v2546_v7 = vadd.f32 %v5008_v12, %v6794_v22  ;;  %v6822_v0 = vadd.f32 %v5634_v19, %v2543_v23 }
 0x963   : > { %v6813_v20 = vadd.f32 %v5632_v41, %v2535_v48  ;;  %v2538_v4 = vadd.f32 %v6794_v22, %v2537_v59 }
 0x964   : > { %7712 = vst [vmem:[#allocation24_spill] sm:$0xff] %v6822_v0  ;;  %v6824_v57 = vadd.f32 %v5635_v27, %v2546_v7 }
 0x965   : > { %7710 = vst [vmem:[#allocation22_spill] sm:$0xff] %v6813_v20  ;;  %v6818_v52 = vadd.f32 %v5633_v14, %v2538_v4 }
 0x966   : > { %2607 = vadd.xlane.f32.xlu0 %v6813_v20  ;;  %7713 = vst [vmem:[#allocation25_spill] sm:$0xff] %v6824_v57 }
 0x967   : > { %7711 = vst [vmem:[#allocation23_spill] sm:$0xff] %v6818_v52  ;;  %2609 = vadd.xlane.f32.xlu1 %v6818_v52 }
 0x96a   : > { %2611 = vadd.xlane.f32.xlu0 %v6822_v0 }
 0x96b   : > { %2613 = vadd.xlane.f32.xlu1 %v6824_v57 }
 0x990   : > { %v5011_v16 = vpop.f32.mrb[72].mxu0 }
 0x991   : > { %v2550_v15 = vpop.f32.mrb[73].mxu0  ;;  %v2559_v11 = vadd.f32 %v5011_v16, %v6794_v22 }
 0x992   : > { %v2551_v51 = vadd.f32 %v6794_v22, %v2550_v15  ;;  %v5012_v17 = vpop.f32.mrb[74].mxu0 }
 0x993   : > { %v2553_v30 = vpop.f32.mrb[75].mxu0  ;;  %v2562_v46 = vadd.f32 %v5012_v17, %v6794_v22  ;;  %v6837_v21 = vadd.f32 %v5638_v44, %v2559_v11 }
 0x994   : > { %v6830_v5 = vadd.f32 %v5636_v25, %v2551_v51  ;;  %v2554_v58 = vadd.f32 %v6794_v22, %v2553_v30 }
 0x995   : > { %7716 = vst [vmem:[#allocation28_spill] sm:$0xff] %v6837_v21  ;;  %v6840_v13 = vadd.f32 %v5639_v34, %v2562_v46 }
 0x996   : > { %7714 = vst [vmem:[#allocation26_spill] sm:$0xff] %v6830_v5  ;;  %v6834_v53 = vadd.f32 %v5637_v8, %v2554_v58  ;;  %2615 = vadd.xlane.f32.xlu0 %v6830_v5 }
 0x997   : > { %7717 = vst [vmem:[#allocation29_spill] sm:$0xff] %v6840_v13 }
 0x998   : > { %7715 = vst [vmem:[#allocation27_spill] sm:$0xff] %v6834_v53  ;;  %v5015_v6 = vpop.f32.mrb[76].mxu0  ;;  %2617 = vadd.xlane.f32.xlu1 %v6834_v53 }
 0x999   : > { %v2566_v60 = vpop.f32.mrb[77].mxu0  ;;  %v2575_v1 = vadd.f32 %v5015_v6, %v6794_v22 }
 0x99a   : > { %v2567_v45 = vadd.f32 %v6794_v22, %v2566_v60  ;;  %v5016_v37 = vpop.f32.mrb[78].mxu0  ;;  %2619 = vadd.xlane.f32.xlu0 %v6837_v21 }
 0x99b   : > { %v2569_v2 = vpop.f32.mrb[79].mxu0  ;;  %v2578_v24 = vadd.f32 %v5016_v37, %v6794_v22  ;;  %v6853_v61 = vadd.f32 %v5642_v54, %v2575_v1  ;;  %v5245_v54 = vld [vmem:[%s5971_s26 + $0x4c] ss:$16 sps:$4 sm:$0xff]  }
 0x99c   : > { %v6845_v10 = vadd.f32 %v5640_v31, %v2567_v45  ;;  %v2570_v29 = vadd.f32 %v6794_v22, %v2569_v2  ;;  %2621 = vadd.xlane.f32.xlu1 %v6840_v13  ;;  %v5228_v22 = vld [vmem:[%s5971_s26] ss:$16 sps:$4 sm:$0xff]   ;;  %3158 = vmatprep.subr.bf16.mxu0 %v5245_v54 }
 0x99d   : > { %7720 = vst [vmem:[#allocation32_spill] sm:$0xff] %v6853_v61  ;;  %v6856_v36 = vadd.f32 %v5643_v35, %v2578_v24  ;;  %3042 = vmatpush1.bf16.msra.mxu1 %v5228_v22  ;;  %v5240_v35 = vld [vmem:[%s5971_s26 + $0x40] ss:$16 sps:$4 sm:$0xff]   ;;  %v5243_v22 = vld [vmem:[%s5971_s26 + $0x48] ss:$16 sps:$4 sm:$0xff]  }
 0x99e   : > { %7718 = vst [vmem:[#allocation30_spill] sm:$0xff] %v6845_v10  ;;  %v6850_v33 = vadd.f32 %v5641_v56, %v2570_v29  ;;  %2623 = vadd.xlane.f32.xlu0 %v6845_v10  ;;  %3043 = vmatprep.subr.bf16.mxu1 %v5236_v47  ;;  %v5242_v56 = vld [vmem:[%s5971_s26 + $0x44] ss:$16 sps:$4 sm:$0xff]   ;;  %v5249_v47 = vld [vmem:[%s5971_s26 + $0x68] ss:$16 sps:$4 sm:$0xff]  }
 0x99f   : > { %7721 = vst [vmem:[#allocation33_spill] sm:$0xff] %v6856_v36  ;;  %3159 = vmatpush1.bf16.msra.mxu0 %v5243_v22 }
 0x9a0   : > { %7719 = vst [vmem:[#allocation31_spill] sm:$0xff] %v6850_v33  ;;  %2625 = vadd.xlane.f32.xlu1 %v6850_v33  ;;  %3160 = vmatprep.subr.bf16.mxu0 %v5251_v38 }
 0x9a1   : > { %3044 = vmatpush1.bf16.msra.mxu1 %v5234_v28  ;;  %v5257_v28 = vld [vmem:[%s5971_s26 + $0x8c] ss:$16 sps:$4 sm:$0xff]  }
 0x9a2   : > { %2627 = vadd.xlane.f32.xlu0 %v6853_v61  ;;  %3045 = vmatprep.subr.bf16.mxu1 %v5242_v56 }
 0x9a3   : > { %3161 = vmatpush1.bf16.msra.mxu0 %v5249_v47 }
 0x9a4   : > { %2629 = vadd.xlane.f32.xlu1 %v6856_v36  ;;  %3162 = vmatprep.subr.bf16.mxu0 %v5257_v28 }
 0x9a5   : > { %3046 = vmatpush1.bf16.msra.mxu1 %v5240_v35 }
 0x9a6   : > { %3047 = vmatprep.subr.bf16.mxu1 %v5248_v55 }
 0x9a9   : > { %3048 = vmatpush1.bf16.msra.mxu1 %v5246_v26 }
 0x9aa   : > { %3049 = vmatprep.subr.bf16.mxu1 %v5254_v9 }
 0x9ad   : > { %3050 = vmatpush1.bf16.msra.mxu1 %v5252_v62 }
 0x9e7   : > { %v2600_v43 = vpop.xlane.xlu0 %2599 }
 0x9e8   : > { %v2631_v48 = vmul.f32 0.0078125, %v2600_v43  ;;  %v5255_v43 = vld [vmem:[%s5971_s26 + $0x88] ss:$16 sps:$4 sm:$0xff]  }
 0x9e9   : > { %v2602_v12 = vpop.xlane.xlu1 %2601  ;;  %3163 = vmatpush1.bf16.msra.mxu0 %v5255_v43 }
 0x9ea   : > { %v6869_v59 = vsub.f32 %v6798_v49, %v2631_v48  ;;  %v2632_v41 = vmul.f32 0.0078125, %v2602_v12  ;;  %v5260_v48 = vld [vmem:[%s5971_s26 + $0xa4] ss:$16 sps:$4 sm:$0xff]   ;;  %v5263_v12 = vld [vmem:[%s5971_s26 + $0xac] ss:$16 sps:$4 sm:$0xff]  }
 0x9eb   : > { %v2604_v4 = vpop.xlane.xlu0 %2603  ;;  %3051 = vmatprep.subr.bf16.mxu1 %v5260_v48  ;;  %3164 = vmatprep.subr.bf16.mxu0 %v5263_v12 }
 0x9ec   : > { %v6872_v23 = vsub.f32 %v6801_v40, %v2632_v41  ;;  %v2633_v7 = vmul.f32 0.0078125, %v2604_v4  ;;  %v2663_v14 = vmul.f32 %v6869_v59, %v6869_v59  ;;  %v5258_v41 = vld [vmem:[%s5971_s26 + $0xa0] ss:$16 sps:$4 sm:$0xff]   ;;  %v5261_v4 = vld [vmem:[%s5971_s26 + $0xa8] ss:$16 sps:$4 sm:$0xff]  }
 0x9ed   : > { %3052 = vmatpush1.bf16.msra.mxu1 %v5258_v41  ;;  %3165 = vmatpush1.bf16.msra.mxu0 %v5261_v4 }
 0x9ee   : > { %v6877_v19 = vsub.f32 %v6804_v42, %v2633_v7  ;;  %2679 = vadd.xlane.f32.xlu0 %v2663_v14  ;;  %v2664_v27 = vmul.f32 %v6872_v23, %v6872_v23  ;;  %v5266_v7 = vld [vmem:[%s5971_s26 + $0xc4] ss:$16 sps:$4 sm:$0xff]   ;;  %v5269_v14 = vld [vmem:[%s5971_s26 + $0xcc] ss:$16 sps:$4 sm:$0xff]  }
 0x9ef   : > { %v2606_v16 = vpop.xlane.xlu0 %2605  ;;  %3053 = vmatprep.subr.bf16.mxu1 %v5266_v7  ;;  %3166 = vmatprep.subr.bf16.mxu0 %v5269_v14 }
 0x9f0   : > { %v2634_v15 = vmul.f32 0.0078125, %v2606_v16  ;;  %2681 = vadd.xlane.f32.xlu1 %v2664_v27  ;;  %v2665_v51 = vmul.f32 %v6877_v19, %v6877_v19  ;;  %v5264_v27 = vld [vmem:[%s5971_s26 + $0xc0] ss:$16 sps:$4 sm:$0xff]   ;;  %v5267_v16 = vld [vmem:[%s5971_s26 + $0xc8] ss:$16 sps:$4 sm:$0xff]  }
 0x9f1   : > { %3054 = vmatpush1.bf16.msra.mxu1 %v5264_v27  ;;  %3167 = vmatpush1.bf16.msra.mxu0 %v5267_v16 }
 0x9f2   : > { %v6884_v17 = vsub.f32 %v6809_v3, %v2634_v15  ;;  %2683 = vadd.xlane.f32.xlu0 %v2665_v51  ;;  %v5270_v15 = vld [vmem:[%s5971_s26 + $0xe0] ss:$16 sps:$4 sm:$0xff]   ;;  %v5272_v51 = vld [vmem:[%s5971_s26 + $0xe4] ss:$16 sps:$4 sm:$0xff]  }
 0x9f3   : > { %v2608_v30 = vpop.xlane.xlu0 %2607  ;;  %3055 = vmatprep.subr.bf16.mxu1 %v5272_v51  ;;  %v5276_v51 = vld [vmem:[%s5981_s28 + $0x40] sm:$0xff]  }
 0x9f4   : > { %v2635_v11 = vmul.f32 0.0078125, %v2608_v30  ;;  %v2610_v25 = vpop.xlane.xlu1 %2609  ;;  %v2666_v58 = vmul.f32 %v6884_v17, %v6884_v17  ;;  %v5273_v30 = vld [vmem:[%s5971_s26 + $0xe8] ss:$16 sps:$4 sm:$0xff]  }
 0x9f5   : > { %v2636_v46 = vmul.f32 0.0078125, %v2610_v25  ;;  %3056 = vmatpush1.bf16.msra.mxu1 %v5270_v15 }
 0x9f6   : > { %v6889_v8 = vsub.f32 %v6813_v20, %v2635_v11  ;;  %2685 = vadd.xlane.f32.xlu1 %v2666_v58  ;;  %v5275_v11 = vld [vmem:[%s5971_s26 + $0xec] ss:$16 sps:$4 sm:$0xff]   ;;  %4688 = vmatprep.subr.bf16.mxu1 %v5276_v51 }
 0x9f7   : > { %v6892_v44 = vsub.f32 %v6818_v52, %v2636_v46  ;;  %v2612_v6 = vpop.xlane.xlu0 %2611  ;;  %3168 = vmatprep.subr.bf16.mxu0 %v5275_v11 }
 0x9f8   : > { %v2637_v60 = vmul.f32 0.0078125, %v2612_v6  ;;  %v2614_v34 = vpop.xlane.xlu1 %2613  ;;  %v2667_v45 = vmul.f32 %v6889_v8, %v6889_v8  ;;  %3169 = vmatpush1.bf16.msra.mxu0 %v5273_v30  ;;  %v6974_v30 = vld [vmem:[%s5981_s28 + $0xc0] sm:$0xff]  }
 0x9f9   : > { %v2638_v37 = vmul.f32 0.0078125, %v2614_v34  ;;  %v2668_v2 = vmul.f32 %v6892_v44, %v6892_v44  ;;  %4752 = vmatprep.subr.bf16.mxu0 %v6974_v30 }
 0x9fa   : > { %v6899_v1 = vsub.f32 %v6822_v0, %v2637_v60  ;;  %2687 = vadd.xlane.f32.xlu0 %v2667_v45 }
 0x9fb   : > { %v6902_v31 = vsub.f32 %v6824_v57, %v2638_v37  ;;  %2689 = vadd.xlane.f32.xlu1 %v2668_v2 }
 0x9fc   : > { %v2669_v29 = vmul.f32 %v6899_v1, %v6899_v1 }
 0x9fd   : > { %v2670_v24 = vmul.f32 %v6902_v31, %v6902_v31 }
 0x9fe   : > { %2691 = vadd.xlane.f32.xlu0 %v2669_v29 }
 0x9ff   : > { %2693 = vadd.xlane.f32.xlu1 %v2670_v24 }
 0xa23   : > { %v2616_v25 = vpop.xlane.xlu0 %2615 }
 0xa24   : > { %v2639_v58 = vmul.f32 0.0078125, %v2616_v25 }
 0xa25   : > { %v2618_v46 = vpop.xlane.xlu1 %2617 }
 0xa26   : > { %v6933_v6 = vsub.f32 %v6830_v5, %v2639_v58  ;;  %v2640_v60 = vmul.f32 0.0078125, %v2618_v46 }
 0xa27   : > { %v2620_v34 = vpop.xlane.xlu0 %2619 }
 0xa28   : > { %v6936_v45 = vsub.f32 %v6834_v53, %v2640_v60  ;;  %v2641_v37 = vmul.f32 0.0078125, %v2620_v34  ;;  %v2671_v2 = vmul.f32 %v6933_v6, %v6933_v6 }
 0xa29   : > { %v2622_v29 = vpop.xlane.xlu1 %2621 }
 0xa2a   : > { %v6941_v24 = vsub.f32 %v6837_v21, %v2641_v37  ;;  %v2642_v56 = vmul.f32 0.0078125, %v2622_v29  ;;  %2695 = vadd.xlane.f32.xlu0 %v2671_v2  ;;  %v2672_v54 = vmul.f32 %v6936_v45, %v6936_v45 }
 0xa2b   : > { %v2624_v35 = vpop.xlane.xlu0 %2623 }
 0xa2c   : > { %v6946_v22 = vsub.f32 %v6840_v13, %v2642_v56  ;;  %v2643_v55 = vmul.f32 0.0078125, %v2624_v35  ;;  %2697 = vadd.xlane.f32.xlu1 %v2672_v54  ;;  %v2673_v38 = vmul.f32 %v6941_v24, %v6941_v24 }
 0xa2d   : > { %v2626_v26 = vpop.xlane.xlu1 %2625 }
 0xa2e   : > { %v6951_v47 = vsub.f32 %v6845_v10, %v2643_v55  ;;  %v2644_v9 = vmul.f32 0.0078125, %v2626_v26  ;;  %2699 = vadd.xlane.f32.xlu0 %v2673_v38  ;;  %v2674_v28 = vmul.f32 %v6946_v22, %v6946_v22 }
 0xa2f   : > { %v2628_v62 = vpop.xlane.xlu0 %2627 }
 0xa30   : > { %v6956_v43 = vsub.f32 %v6850_v33, %v2644_v9  ;;  %v2645_v48 = vmul.f32 0.0078125, %v2628_v62  ;;  %2701 = vadd.xlane.f32.xlu1 %v2674_v28  ;;  %v2675_v12 = vmul.f32 %v6951_v47, %v6951_v47  ;;  %v6982_v62 = vld [vmem:[%s7722_s30] ss:$0 sm:$0xff] }
 0xa31   : > { %v2630_v41 = vpop.xlane.xlu1 %2629 }
 0xa32   : > { %v6961_v4 = vsub.f32 %v6853_v61, %v2645_v48  ;;  %v2646_v7 = vmul.f32 0.0078125, %v2630_v41  ;;  %2703 = vadd.xlane.f32.xlu0 %v2675_v12  ;;  %v2676_v14 = vmul.f32 %v6956_v43, %v6956_v43 }
 0xa34   : > { %v6966_v27 = vsub.f32 %v6856_v36, %v2646_v7  ;;  %2705 = vadd.xlane.f32.xlu1 %v2676_v14  ;;  %v2677_v16 = vmul.f32 %v6961_v4, %v6961_v4 }
 0xa36   : > { %2707 = vadd.xlane.f32.xlu0 %v2677_v16  ;;  %v2678_v15 = vmul.f32 %v6966_v27, %v6966_v27 }
 0xa38   : > { %2709 = vadd.xlane.f32.xlu1 %v2678_v15 }
 0xa7b   : > { %v2680_v11 = vpop.xlane.xlu0 %2679 }
 0xa7c   : > { %v2711_v25 = vmul.f32 0.0078125, %v2680_v11 }
 0xa7d   : > { %v2682_v58 = vpop.xlane.xlu1 %2681 }
 0xa7e   : > { %v2727_v46 = vadd.f32 1e-12, %v2711_v25  ;;  %v2712_v60 = vmul.f32 0.0078125, %v2682_v58 }
 0xa7f   : > { %v2684_v34 = vpop.xlane.xlu0 %2683 }
 0xa80   : > { %5468 = vrsqrt.f32 %v2727_v46  ;;  %v2728_v37 = vadd.f32 1e-12, %v2712_v60  ;;  %v2713_v2 = vmul.f32 0.0078125, %v2684_v34 }
 0xa82   : > { %5470 = vrsqrt.f32 %v2728_v37  ;;  %v2729_v29 = vadd.f32 1e-12, %v2713_v2 }
 0xa83   : > { %v2686_v56 = vpop.xlane.xlu1 %2685 }
 0xa84   : > { %5472 = vrsqrt.f32 %v2729_v29  ;;  %v2714_v54 = vmul.f32 0.0078125, %v2686_v56 }
 0xa86   : > { %v2730_v35 = vadd.f32 1e-12, %v2714_v54 }
 0xa87   : > { %v2688_v55 = vpop.xlane.xlu0 %2687 }
 0xa88   : > { %5474 = vrsqrt.f32 %v2730_v35  ;;  %v2715_v38 = vmul.f32 0.0078125, %v2688_v55  ;;  %v2690_v26 = vpop.xlane.xlu1 %2689  ;;  %v5277_v35 = vld [vmem:[%s5981_s28] sm:$0xff]  }
 0xa89   : > { %v2716_v9 = vmul.f32 0.0078125, %v2690_v26  ;;  %v7001_v55 = vld [vmem:[%s5981_s28 + $0x80] sm:$0xff]   ;;  %v7005_v26 = vld [vmem:[%s5981_s28 + $0xc8] sm:$0xff]  }
 0xa8a   : > { %v5469_v28 = vpop.eup %5468  ;;  %v2731_v48 = vadd.f32 1e-12, %v2715_v38  ;;  %v5280_v38 = vld [vmem:[%s5981_s28 + $0x48] sm:$0xff]  }
 0xa8b   : > { %v2759_v12 = vmul.f32 %v5469_v28, %v6869_v59  ;;  %v2732_v41 = vadd.f32 1e-12, %v2716_v9  ;;  %v2692_v7 = vpop.xlane.xlu0 %2691  ;;  %v6992_v59 = vld [vmem:[%s7723_s3] ss:$0 sm:$0xff] }
 0xa8c   : > { %v5471_v14 = vpop.eup %5470  ;;  %5476 = vrsqrt.f32 %v2731_v48  ;;  %v2717_v16 = vmul.f32 0.0078125, %v2692_v7  ;;  %v2694_v15 = vpop.xlane.xlu1 %2693  ;;  %v7016_v7 = vld [vmem:[%s5981_s28 + $0x88] sm:$0xff]  }
 0xa8d   : > { %v2781_v51 = vmul.f32 %v6982_v62, %v2759_v12  ;;  %v2760_v11 = vmul.f32 %v5471_v14, %v6872_v23  ;;  %5478 = vrsqrt.f32 %v2732_v41  ;;  %v2718_v25 = vmul.f32 0.0078125, %v2694_v15  ;;  %v5282_v41 = vld [vmem:[%s5981_s28 + $0x8] sm:$0xff]  }
 0xa8e   : > { %v5473_v58 = vpop.eup %5472  ;;  %v2733_v46 = vadd.f32 1e-12, %v2717_v16 }
 0xa8f   : > { %v2782_v60 = vmul.f32 %v6982_v62, %v2760_v11  ;;  %v2734_v34 = vadd.f32 1e-12, %v2718_v25  ;;  %v2803_v23 = vadd.f32 %v6992_v59, %v2781_v51  ;;  %v2761_v2 = vmul.f32 %v5473_v58, %v6877_v19 }
 0xa90   : > { %5480 = vrsqrt.f32 %v2733_v46 }
 0xa91   : > { %v2804_v37 = vadd.f32 %v6992_v59, %v2782_v60  ;;  %5482 = vrsqrt.f32 %v2734_v34  ;;  %v2783_v9 = vmul.f32 %v6982_v62, %v2761_v2 }
 0xa92   : > { %v5475_v29 = vpop.eup %5474 }
 0xa93   : > { %v2819_v56 = vpack.c.bf16 %v2804_v37, %v2803_v23  ;;  %v2762_v54 = vmul.f32 %v5475_v29, %v6884_v17  ;;  %v2805_v16 = vadd.f32 %v6992_v59, %v2783_v9 }
 0xa95   : > { %3074 = vmatmul.mubr.bf16.vlgmr.msra.gmra.mrb[48].mxu1 %v2819_v56  ;;  %3187 = vmatmul.mubr.bf16.vlgmr.msra.gmra.mrb[80].mxu0 %v2819_v56  ;;  %v2784_v28 = vmul.f32 %v6982_v62, %v2762_v54 }
 0xa96   : > { %v5477_v19 = vpop.eup %5476  ;;  %3083 = vmatprep.mubr.bf16.mxu1 %v5751_v63  ;;  %3196 = vmatprep.mubr.bf16.mxu0 %v5751_v63 }
 0xa97   : > { %v5479_v17 = vpop.eup %5478  ;;  %v2806_v48 = vadd.f32 %v6992_v59, %v2784_v28  ;;  %v2763_v12 = vmul.f32 %v5477_v19, %v6889_v8  ;;  %4689 = vmatpush3.bf16.msra.mxu1 %v5277_v35  ;;  %4753 = vmatpush3.bf16.msra.mxu0 %v7001_v55 }
 0xa98   : > { %v2764_v14 = vmul.f32 %v5479_v17, %v6892_v44  ;;  %4690 = vmatprep.subr.bf16.mxu1 %v5280_v38  ;;  %4754 = vmatprep.subr.bf16.mxu0 %v7005_v26 }
 0xa99   : > { %v2820_v51 = vpack.c.bf16 %v2806_v48, %v2805_v16  ;;  %v2785_v11 = vmul.f32 %v6982_v62, %v2763_v12 }
 0xa9a   : > { %v5481_v15 = vpop.eup %5480  ;;  %v2786_v25 = vmul.f32 %v6982_v62, %v2764_v14 }
 0xa9b   : > { %4691 = vmatpush3.bf16.msra.mxu1 %v5282_v41  ;;  %4755 = vmatpush3.bf16.msra.mxu0 %v7016_v7  ;;  %v5483_v8 = vpop.eup %5482  ;;  %v2807_v44 = vadd.f32 %v6992_v59, %v2785_v11  ;;  %v2765_v46 = vmul.f32 %v5481_v15, %v6899_v1 }
 0xa9c   : > { %v2808_v58 = vadd.f32 %v6992_v59, %v2786_v25  ;;  %v2766_v60 = vmul.f32 %v5483_v8, %v6902_v31 }
 0xa9d   : > { %3084 = vmatmul.mubr.bf16.gmra.mrb[52].mxu1 %v2820_v51  ;;  %3197 = vmatmul.mubr.bf16.gmra.mrb[84].mxu0 %v2820_v51  ;;  %v2787_v23 = vmul.f32 %v6982_v62, %v2765_v46 }
 0xa9e   : > { %3093 = vmatprep.mubr.bf16.mxu1 %v5751_v63  ;;  %3206 = vmatprep.mubr.bf16.mxu0 %v5751_v63  ;;  %v2821_v34 = vpack.c.bf16 %v2808_v58, %v2807_v44  ;;  %v2788_v37 = vmul.f32 %v6982_v62, %v2766_v60 }
 0xa9f   : > { %v2809_v2 = vadd.f32 %v6992_v59, %v2787_v23 }
 0xaa0   : > { %v2810_v29 = vadd.f32 %v6992_v59, %v2788_v37 }
 0xaa2   : > { %v2822_v56 = vpack.c.bf16 %v2810_v29, %v2809_v2 }
 0xaa5   : > { %3094 = vmatmul.mubr.bf16.gmra.mrb[56].mxu1 %v2821_v34  ;;  %3207 = vmatmul.mubr.bf16.gmra.mrb[88].mxu0 %v2821_v34 }
 0xaa6   : > { %3103 = vmatprep.mubr.bf16.mxu1 %v5751_v63  ;;  %3216 = vmatprep.mubr.bf16.mxu0 %v5751_v63 }
 0xaad   : > { %3104 = vmatmul.mubr.bf16.gmra.mrb[60].mxu1 %v2822_v56  ;;  %3217 = vmatmul.mubr.bf16.gmra.mrb[92].mxu0 %v2822_v56 }
 0xaae   : > { %3113 = vmatprep.mubr.bf16.mxu1 %v5751_v63  ;;  %3226 = vmatprep.mubr.bf16.mxu0 %v5751_v63 }
 0xab7   : > { %v2696_v1 = vpop.xlane.xlu0 %2695 }
 0xab8   : > { %v2719_v31 = vmul.f32 0.0078125, %v2696_v1 }
 0xab9   : > { %v2698_v54 = vpop.xlane.xlu1 %2697 }
 0xaba   : > { %v2735_v35 = vadd.f32 1e-12, %v2719_v31  ;;  %v2720_v38 = vmul.f32 0.0078125, %v2698_v54 }
 0xabb   : > { %v2700_v9 = vpop.xlane.xlu0 %2699 }
 0xabc   : > { %5484 = vrsqrt.f32 %v2735_v35  ;;  %v2736_v28 = vadd.f32 1e-12, %v2720_v38  ;;  %v2721_v19 = vmul.f32 0.0078125, %v2700_v9 }
 0xabd   : > { %v2702_v17 = vpop.xlane.xlu1 %2701 }
 0xabe   : > { %5486 = vrsqrt.f32 %v2736_v28  ;;  %v2737_v48 = vadd.f32 1e-12, %v2721_v19  ;;  %v2722_v12 = vmul.f32 0.0078125, %v2702_v17 }
 0xabf   : > { %v2704_v41 = vpop.xlane.xlu0 %2703 }
 0xac0   : > { %5488 = vrsqrt.f32 %v2737_v48  ;;  %v2738_v14 = vadd.f32 1e-12, %v2722_v12  ;;  %v2723_v16 = vmul.f32 0.0078125, %v2704_v41 }
 0xac1   : > { %v2706_v15 = vpop.xlane.xlu1 %2705 }
 0xac2   : > { %5490 = vrsqrt.f32 %v2738_v14  ;;  %v2724_v51 = vmul.f32 0.0078125, %v2706_v15  ;;  %v2739_v11 = vadd.f32 1e-12, %v2723_v16 }
 0xac3   : > { %v2708_v8 = vpop.xlane.xlu0 %2707 }
 0xac4   : > { %v2740_v25 = vadd.f32 1e-12, %v2724_v51  ;;  %v2725_v23 = vmul.f32 0.0078125, %v2708_v8 }
 0xac5   : > { %v2710_v44 = vpop.xlane.xlu1 %2709 }
 0xac6   : > { %v5485_v58 = vpop.eup %5484  ;;  %5492 = vrsqrt.f32 %v2740_v25  ;;  %v2726_v46 = vmul.f32 0.0078125, %v2710_v44  ;;  %v2741_v54 = vadd.f32 1e-12, %v2725_v23  ;;  %v7070_v23 = vld [vmem:[%s5981_s28 + $0xd0] sm:$0xff]  }
 0xac7   : > { %v2767_v60 = vmul.f32 %v5485_v58, %v6933_v6  ;;  %5494 = vrsqrt.f32 %v2739_v11  ;;  %4756 = vmatprep.subr.bf16.mxu0 %v7070_v23 }
 0xac8   : > { %v5487_v34 = vpop.eup %5486  ;;  %v2742_v56 = vadd.f32 1e-12, %v2726_v46 }
 0xac9   : > { %v2768_v37 = vmul.f32 %v5487_v34, %v6936_v45  ;;  %v2789_v2 = vmul.f32 %v6982_v62, %v2767_v60  ;;  %v5284_v34 = vld [vmem:[%s5981_s28 + $0x50] sm:$0xff]  }
 0xaca   : > { %v5489_v29 = vpop.eup %5488  ;;  %5496 = vrsqrt.f32 %v2742_v56  ;;  %4692 = vmatprep.subr.bf16.mxu1 %v5284_v34  ;;  %v5292_v56 = vld [vmem:[%s5981_s28 + $0x60] sm:$0xff]  }
 0xacb   : > { %v2790_v1 = vmul.f32 %v6982_v62, %v2768_v37  ;;  %v2811_v35 = vadd.f32 %v6992_v59, %v2789_v2  ;;  %v2769_v9 = vmul.f32 %v5489_v29, %v6941_v24  ;;  %5498 = vrsqrt.f32 %v2741_v54  ;;  %v7080_v37 = vld [vmem:[%s5981_s28 + $0xd8] sm:$0xff]   ;;  %v7095_v54 = vld [vmem:[%s5981_s28 + $0xa0] sm:$0xff]  }
 0xacc   : > { %v5491_v31 = vpop.eup %5490  ;;  %v5290_v2 = vld [vmem:[%s5981_s28 + $0x18] sm:$0xff]   ;;  %7724 = vst [vmem:[#allocation34_spill] sm:$0xff] %v7095_v54 }
 0xacd   : > { %v2812_v38 = vadd.f32 %v6992_v59, %v2790_v1  ;;  %v2770_v6 = vmul.f32 %v5491_v31, %v6946_v22  ;;  %v2791_v17 = vmul.f32 %v6982_v62, %v2769_v9  ;;  %v7084_v29 = vld [vmem:[%s5981_s28 + $0x98] sm:$0xff]   ;;  %v7090_v1 = vld [vmem:[%s5981_s28 + $0xe0] sm:$0xff]   ;;  %v5298_v9 = vld [vmem:[%s5981_s28 + $0x28] sm:$0xff]  }
 0xace   : > { %v5294_v31 = vld [vmem:[%s5981_s28 + $0x20] sm:$0xff]  }
 0xacf   : > { %v2823_v28 = vpack.c.bf16 %v2812_v38, %v2811_v35  ;;  %v2792_v45 = vmul.f32 %v6982_v62, %v2770_v6  ;;  %v2813_v22 = vadd.f32 %v6992_v59, %v2791_v17  ;;  %v5296_v35 = vld [vmem:[%s5981_s28 + $0x68] sm:$0xff]   ;;  %v7115_v17 = vld [vmem:[%s5981_s28 + $0xb0] sm:$0xff]  }
 0xad0   : > { %v5493_v19 = vpop.eup %5492  ;;  %v7100_v38 = vld [vmem:[%s5981_s28 + $0xe8] sm:$0xff]   ;;  %7728 = vst [vmem:[#allocation38_spill] sm:$0xff] %v7115_v17 }
 0xad1   : > { %3114 = vmatmul.mubr.bf16.gmra.mrb[64].mxu1 %v2823_v28  ;;  %3227 = vmatmul.mubr.bf16.gmra.mrb[96].mxu0 %v2823_v28  ;;  %v5495_v48 = vpop.eup %5494  ;;  %v2814_v12 = vadd.f32 %v6992_v59, %v2792_v45  ;;  %v2772_v24 = vmul.f32 %v5493_v19, %v6956_v43  ;;  %7725 = vst [vmem:[#allocation35_spill] sm:$0xff] %v7100_v38  ;;  %v7104_v6 = vld [vmem:[%s5981_s28 + $0xa8] sm:$0xff]   ;;  %v5300_v28 = vld [vmem:[%s5981_s28 + $0x70] sm:$0xff]  }
 0xad2   : > { %3123 = vmatprep.mubr.bf16.mxu1 %v5751_v63  ;;  %3236 = vmatprep.mubr.bf16.mxu0 %v5751_v63  ;;  %v2771_v41 = vmul.f32 %v5495_v48, %v6951_v47  ;;  %7726 = vst [vmem:[#allocation36_spill] sm:$0xff] %v7104_v6  ;;  %v7110_v45 = vld [vmem:[%s5981_s28 + $0xf0] sm:$0xff]   ;;  %v5304_v48 = vld [vmem:[%s5981_s28 + $0x78] sm:$0xff]  }
 0xad3   : > { %v2824_v14 = vpack.c.bf16 %v2814_v12, %v2813_v22  ;;  %v2794_v16 = vmul.f32 %v6982_v62, %v2772_v24  ;;  %7727 = vst [vmem:[#allocation37_spill] sm:$0xff] %v7110_v45  ;;  %v5302_v19 = vld [vmem:[%s5981_s28 + $0x30] sm:$0xff]   ;;  %v7120_v12 = vld [vmem:[%s5981_s28 + $0xf8] sm:$0xff]  }
 0xad4   : > { %v5497_v15 = vpop.eup %5496  ;;  %v2793_v51 = vmul.f32 %v6982_v62, %v2771_v41  ;;  %7729 = vst [vmem:[#allocation39_spill] sm:$0xff] %v7120_v12  ;;  %v5306_v24 = vld [vmem:[%s5981_s28 + $0x38] sm:$0xff]   ;;  %v2859_v41 = vld [vmem:[%s5976_s21] sm:$0xf] }
 0xad5   : > { %v5499_v11 = vpop.eup %5498  ;;  %v2816_v25 = vadd.f32 %v6992_v59, %v2794_v16  ;;  %v2774_v43 = vmul.f32 %v5497_v15, %v6966_v27  ;;  %v7124_v22 = vld [vmem:[%s5981_s28 + $0xb8] sm:$0xff]   ;;  %v7133_v16 = vrot.slane %v2859_v41, %v1077_v32  ;;  %v7137_v15 = vrot.slane %v2859_v41, %v1085_v18 }
 0xad6   : > { %v2815_v47 = vadd.f32 %v6992_v59, %v2793_v51  ;;  %v2773_v8 = vmul.f32 %v5499_v11, %v6961_v4  ;;  %7730 = vst [vmem:[#allocation40_spill] sm:$0xff] %v7124_v22  ;;  %v7141_v51 = vrot.slane %v2859_v41, %v1081_v50 }
 0xad7   : > { %v2796_v58 = vmul.f32 %v6982_v62, %v2774_v43 }
 0xad8   : > { %v2825_v44 = vpack.c.bf16 %v2816_v25, %v2815_v47  ;;  %v2795_v46 = vmul.f32 %v6982_v62, %v2773_v8  ;;  %v5286_v62 = vld [vmem:[%s5981_s28 + $0x10] sm:$0xff]  }
 0xad9   : > { %3124 = vmatmul.mubr.bf16.gmra.mrb[68].mxu1 %v2824_v14  ;;  %3237 = vmatmul.mubr.bf16.gmra.mrb[100].mxu0 %v2824_v14  ;;  %v2818_v27 = vadd.f32 %v6992_v59, %v2796_v58  ;;  %v2875_v14 = vsub.s32 3, %v6208_v39 }
 0xada   : > { %3133 = vmatprep.mubr.bf16.mxu1 %v5751_v63  ;;  %3246 = vmatprep.mubr.bf16.mxu0 %v5751_v63  ;;  %v2817_v4 = vadd.f32 %v6992_v59, %v2795_v46  ;;  %v5288_v59 = vld [vmem:[%s5981_s28 + $0x58] sm:$0xff]  }
 0xadb   : > { %4693 = vmatpush3.bf16.msra.mxu1 %v5286_v62  ;;  %v7143_v11 = vrot.slane %v2859_v41, %v2875_v14 }
 0xadc   : > { %v2826_v60 = vpack.c.bf16 %v2818_v27, %v2817_v4  ;;  %4694 = vmatprep.subr.bf16.mxu1 %v5288_v59 }
 0xadf   : > { %4695 = vmatpush3.bf16.msra.mxu1 %v5290_v2 }
 0xae0   : > { %4696 = vmatprep.subr.bf16.mxu1 %v5292_v56 }
 0xae1   : > { %3134 = vmatmul.mubr.bf16.gmra.mrb[72].mxu1 %v2825_v44  ;;  %3247 = vmatmul.mubr.bf16.gmra.mrb[104].mxu0 %v2825_v44 }
 0xae2   : > { %3143 = vmatprep.mubr.bf16.mxu1 %v5751_v63  ;;  %3256 = vmatprep.mubr.bf16.mxu0 %v5751_v63  ;;  %v7075_v63 = vld [vmem:[%s5981_s28 + $0x90] sm:$0xff]  }
 0xae3   : > { %4757 = vmatpush3.bf16.msra.mxu0 %v7075_v63  ;;  %4697 = vmatpush3.bf16.msra.mxu1 %v5294_v31 }
 0xae4   : > { %4758 = vmatprep.subr.bf16.mxu0 %v7080_v37  ;;  %4698 = vmatprep.subr.bf16.mxu1 %v5296_v35 }
 0xae7   : > { %4759 = vmatpush3.bf16.msra.mxu0 %v7084_v29  ;;  %4699 = vmatpush3.bf16.msra.mxu1 %v5298_v9 }
 0xae8   : > { %4760 = vmatprep.subr.bf16.mxu0 %v7090_v1  ;;  %4700 = vmatprep.subr.bf16.mxu1 %v5300_v28 }
 0xae9   : > { %3144 = vmatmul.mubr.bf16.gmra.mrb[76].mxu1 %v2826_v60  ;;  %3257 = vmatmul.mubr.bf16.gmra.mrb[108].mxu0 %v2826_v60 }
 0xaeb   : > { %4761 = vmatpush3.bf16.msra.mxu0 %v7095_v54  ;;  %4701 = vmatpush3.bf16.msra.mxu1 %v5302_v19 }
 0xaec   : > { %4762 = vmatprep.subr.bf16.mxu0 %v7100_v38  ;;  %4702 = vmatprep.subr.bf16.mxu1 %v5304_v48 }
 0xaef   : > { %4763 = vmatpush3.bf16.msra.mxu0 %v7104_v6  ;;  %4703 = vmatpush3.bf16.msra.mxu1 %v5306_v24 }
 0xaf0   : > { %4764 = vmatprep.subr.bf16.mxu0 %v7110_v45  ;;  %5037 = vmatprep.subr.bf16.mxu1 %v6974_v30 }
 0xaf3   : > { %4765 = vmatpush3.bf16.msra.mxu0 %v7115_v17 }
 0xaf4   : > { %4766 = vmatprep.subr.bf16.mxu0 %v7120_v12 }
 0xaf7   : > { %4767 = vmatpush3.bf16.msra.mxu0 %v7124_v22 }
 0xb68   : > { %v3075_v25 = vpop.f32.mrb[48].mxu1  ;;  %v3188_v43 = vpop.f32.mrb[80].mxu0 }
 0xb69   : > { %v3076_v30 = vadd.f32 %v3075_v25, %v7133_v16  ;;  %v3189_v47 = vadd.f32 %v3188_v43, %v7137_v15  ;;  %v3077_v8 = vpop.f32.mrb[49].mxu1  ;;  %v3190_v44 = vpop.f32.mrb[81].mxu0 }
 0xb6a   : > { %v3078_v32 = vadd.f32 %v3077_v8, %v7141_v51  ;;  %v3191_v58 = vadd.f32 %v3190_v44, %v7143_v11  ;;  %v3079_v18 = vpop.f32.mrb[50].mxu1  ;;  %v3192_v46 = vpop.f32.mrb[82].mxu0 }
 0xb6b   : > { %v3331_v27 = vmul.f32 0.70710677, %v3076_v30  ;;  %v3333_v39 = vmul.f32 0.70710677, %v3189_v47  ;;  %v3080_v60 = vadd.f32 %v3079_v18, %v7133_v16  ;;  %v3193_v34 = vadd.f32 %v3192_v46, %v7137_v15  ;;  %v3081_v62 = vpop.f32.mrb[51].mxu1  ;;  %v3194_v59 = vpop.f32.mrb[83].mxu0 }
 0xb6c   : > { %v3332_v50 = vmul.f32 0.70710677, %v3078_v32  ;;  %v3334_v4 = vmul.f32 0.70710677, %v3191_v58  ;;  %v3082_v2 = vadd.f32 %v3081_v62, %v7141_v51  ;;  %v3195_v56 = vadd.f32 %v3194_v59, %v7143_v11 }
 0xb6d   : > { %5500 = verf.f32 %v3331_v27  ;;  %v3335_v31 = vmul.f32 0.70710677, %v3080_v60  ;;  %v3337_v35 = vmul.f32 0.70710677, %v3193_v34 }
 0xb6e   : > { %5502 = verf.f32 %v3333_v39  ;;  %v3336_v9 = vmul.f32 0.70710677, %v3082_v2  ;;  %v3338_v19 = vmul.f32 0.70710677, %v3195_v56  ;;  %v7164_v10 = vmul.f32 0.5, %v3082_v2 }
 0xb6f   : > { %5504 = verf.f32 %v3332_v50  ;;  %v7167_v13 = vmul.f32 0.5, %v3195_v56 }
 0xb70   : > { %5506 = verf.f32 %v3334_v4  ;;  %v3085_v28 = vpop.f32.mrb[52].mxu1  ;;  %v3198_v24 = vpop.f32.mrb[84].mxu0  ;;  %v3267_v4 = vmul.f32 0.5, %v3076_v30  ;;  %v3271_v30 = vmul.f32 0.5, %v3080_v60 }
 0xb71   : > { %5508 = verf.f32 %v3335_v31  ;;  %v3086_v48 = vadd.f32 %v3085_v28, %v7133_v16  ;;  %v3087_v41 = vpop.f32.mrb[53].mxu1  ;;  %v3199_v14 = vadd.f32 %v3198_v24, %v7137_v15  ;;  %v3200_v43 = vpop.f32.mrb[85].mxu0  ;;  %v3269_v24 = vmul.f32 0.5, %v3189_v47 }
 0xb72   : > { %5510 = verf.f32 %v3337_v35  ;;  %v3088_v25 = vadd.f32 %v3087_v41, %v7141_v51  ;;  %v3089_v8 = vpop.f32.mrb[54].mxu1  ;;  %v3201_v18 = vadd.f32 %v3200_v43, %v7143_v11  ;;  %v3202_v46 = vpop.f32.mrb[86].mxu0  ;;  %v7160_v41 = vmul.f32 0.5, %v3078_v32 }
 0xb73   : > { %5512 = verf.f32 %v3336_v9  ;;  %v3339_v44 = vmul.f32 0.70710677, %v3086_v48  ;;  %v3091_v27 = vpop.f32.mrb[55].mxu1  ;;  %v3341_v39 = vmul.f32 0.70710677, %v3199_v14  ;;  %v3204_v50 = vpop.f32.mrb[87].mxu0  ;;  %v3090_v31 = vadd.f32 %v3089_v8, %v7133_v16 }
 0xb74   : > { %5514 = verf.f32 %v3338_v19  ;;  %v3340_v62 = vmul.f32 0.70710677, %v3088_v25  ;;  %v3342_v59 = vmul.f32 0.70710677, %v3201_v18  ;;  %v3203_v35 = vadd.f32 %v3202_v46, %v7137_v15 }
 0xb75   : > { %5516 = verf.f32 %v3339_v44  ;;  %v3092_v28 = vadd.f32 %v3091_v27, %v7141_v51  ;;  %v7162_v43 = vmul.f32 0.5, %v3191_v58  ;;  %v3343_v44 = vmul.f32 0.70710677, %v3090_v31 }
 0xb76   : > { %5518 = verf.f32 %v3341_v39  ;;  %v3273_v8 = vmul.f32 0.5, %v3193_v34  ;;  %v3345_v46 = vmul.f32 0.70710677, %v3203_v35  ;;  %v3205_v27 = vadd.f32 %v3204_v50, %v7143_v11 }
 0xb77   : > { %v5501_v9 = vpop.eup %5500  ;;  %5520 = verf.f32 %v3340_v62  ;;  %v7169_v58 = vmul.f32 0.5, %v3086_v48  ;;  %v3344_v62 = vmul.f32 0.70710677, %v3092_v28  ;;  %v7171_v53 = vmul.f32 0.5, %v3199_v14 }
 0xb78   : > { %v5503_v19 = vpop.eup %5502  ;;  %v3459_v36 = vadd.f32 1.0, %v5501_v9  ;;  %5522 = verf.f32 %v3342_v59  ;;  %v3095_v61 = vpop.f32.mrb[56].mxu1  ;;  %v7173_v5 = vmul.f32 0.5, %v3088_v25  ;;  %v7175_v34 = vmul.f32 0.5, %v3201_v18 }
 0xb79   : > { %v3208_v39 = vpop.f32.mrb[88].mxu0  ;;  %v5505_v33 = vpop.eup %5504  ;;  %v3461_v21 = vadd.f32 1.0, %v5503_v19  ;;  %5524 = verf.f32 %v3343_v44  ;;  %v3346_v14 = vmul.f32 0.70710677, %v3205_v27  ;;  %v3096_v25 = vadd.f32 %v3095_v61, %v7133_v16 }
 0xb7a   : > { %v3097_v47 = vpop.f32.mrb[57].mxu1  ;;  %v5507_v32 = vpop.eup %5506  ;;  %v7179_v0 = vmul.f32 %v3459_v36, %v3267_v4  ;;  %v3460_v56 = vadd.f32 1.0, %v5505_v33  ;;  %5526 = verf.f32 %v3345_v46  ;;  %v3209_v40 = vadd.f32 %v3208_v39, %v7137_v15 }
 0xb7b   : > { %v3210_v9 = vpop.f32.mrb[89].mxu0  ;;  %v3099_v60 = vpop.f32.mrb[58].mxu1  ;;  %v3462_v18 = vadd.f32 1.0, %v5507_v32  ;;  %5528 = verf.f32 %v3344_v62  ;;  %v7187_v4 = vmul.f32 %v3461_v21, %v3269_v24  ;;  %v3347_v44 = vmul.f32 0.70710677, %v3096_v25 }
 0xb7c   : > { %v5509_v59 = vpop.eup %5508  ;;  %v3212_v2 = vpop.f32.mrb[90].mxu0  ;;  %v7194_v61 = vmul.f32 0.5, %v3090_v31  ;;  %v7196_v32 = vmul.f32 0.5, %v3203_v35  ;;  %v7202_v24 = vmul.f32 0.5, %v3205_v27  ;;  %5530 = verf.f32 %v3346_v14 }
 0xb7d   : > { %v7177_v57 = vpop.f32.mrb[59].mxu1  ;;  %v5511_v50 = vpop.eup %5510  ;;  %v3463_v48 = vadd.f32 1.0, %v5509_v59  ;;  %v3098_v59 = vadd.f32 %v3097_v47, %v7141_v51  ;;  %v7205_v31 = vmul.f32 %v3460_v56, %v7160_v41  ;;  %v7208_v35 = vmul.f32 %v3462_v18, %v7162_v43 }
 0xb7e   : > { %v7181_v52 = vpop.f32.mrb[91].mxu0  ;;  %v5513_v20 = vpop.eup %5512  ;;  %v3465_v3 = vadd.f32 1.0, %v5511_v50  ;;  %5532 = verf.f32 %v3347_v44  ;;  %v3211_v14 = vadd.f32 %v3210_v9, %v7143_v11  ;;  %v3100_v43 = vadd.f32 %v3099_v60, %v7133_v16 }
 0xb7f   : > { %v5515_v19 = vpop.eup %5514  ;;  %v7184_v42 = vmul.f32 %v3463_v48, %v3271_v30  ;;  %v7198_v30 = vmul.f32 0.5, %v3092_v28  ;;  %v3464_v21 = vadd.f32 1.0, %v5513_v20  ;;  %v3349_v28 = vmul.f32 0.70710677, %v3209_v40 }
 0xb80   : > { %v5517_v36 = vpop.eup %5516  ;;  %v7189_v33 = vmul.f32 %v3465_v3, %v3273_v8  ;;  %v3105_v62 = vpop.f32.mrb[60].mxu1  ;;  %v3466_v3 = vadd.f32 1.0, %v5515_v19  ;;  %v3348_v27 = vmul.f32 0.70710677, %v3098_v59  ;;  %v3213_v56 = vadd.f32 %v3212_v2, %v7137_v15 }
 0xb81   : > { %v5519_v50 = vpop.eup %5518  ;;  %v3218_v39 = vpop.f32.mrb[92].mxu0  ;;  %v3467_v20 = vadd.f32 1.0, %v5517_v36  ;;  %5534 = verf.f32 %v3349_v28  ;;  %v3528_v18 = vmul.f32 %v3464_v21, %v7164_v10  ;;  %v7222_v6 = vmul.f32 0.5, %v3096_v25 }
 0xb82   : > { %v5521_v48 = vpop.eup %5520  ;;  %v3107_v8 = vpop.f32.mrb[61].mxu1  ;;  %v3469_v41 = vadd.f32 1.0, %v5519_v50  ;;  %v7224_v36 = vmul.f32 0.5, %v3209_v40  ;;  %5536 = verf.f32 %v3348_v27  ;;  %v3350_v9 = vmul.f32 0.70710677, %v3211_v14 }
 0xb83   : > { %v3220_v47 = vpop.f32.mrb[93].mxu0  ;;  %v5523_v49 = vpop.eup %5522  ;;  %v3468_v44 = vadd.f32 1.0, %v5521_v48  ;;  %v3351_v38 = vmul.f32 0.70710677, %v3100_v43  ;;  %v3530_v50 = vmul.f32 %v3466_v3, %v7167_v13  ;;  %v7228_v28 = vmul.f32 %v3467_v20, %v7169_v58 }
 0xb84   : > { %v7210_v46 = vpop.f32.mrb[62].mxu1  ;;  %v7212_v22 = vpop.f32.mrb[94].mxu0  ;;  %v3470_v45 = vadd.f32 1.0, %v5523_v49  ;;  %v7230_v60 = vmul.f32 0.5, %v3098_v59  ;;  %v3353_v2 = vmul.f32 0.70710677, %v3213_v56  ;;  %v7233_v49 = vmul.f32 %v3469_v41, %v7171_v53 }
 0xb85   : > { %v7215_v12 = vpop.f32.mrb[63].mxu1  ;;  %v7217_v17 = vpop.f32.mrb[95].mxu0  ;;  %5538 = verf.f32 %v3350_v9  ;;  %v3102_v40 = vadd.f32 %v7177_v57, %v7141_v51  ;;  %v3215_v25 = vadd.f32 %v7181_v52, %v7143_v11  ;;  %v7240_v48 = vmul.f32 %v3468_v44, %v7173_v5 }
 0xb86   : > { %v5525_v19 = vpop.eup %5524  ;;  %v7243_v13 = vmul.f32 %v3470_v45, %v7175_v34  ;;  %5540 = verf.f32 %v3351_v38  ;;  %v7246_v58 = vadd.f32 %v3105_v62, %v7133_v16  ;;  %v7248_v53 = vmul.f32 0.5, %v3211_v14 }
 0xb87   : > { %v5527_v54 = vpop.eup %5526  ;;  %v3471_v59 = vadd.f32 1.0, %v5525_v19  ;;  %5542 = verf.f32 %v3353_v2  ;;  %v3352_v3 = vmul.f32 0.70710677, %v3102_v40  ;;  %v3287_v27 = vmul.f32 0.5, %v3100_v43 }
 0xb88   : > { %v5529_v10 = vpop.eup %5528  ;;  %v3473_v57 = vadd.f32 1.0, %v5527_v54  ;;  %v3354_v52 = vmul.f32 0.70710677, %v3215_v25  ;;  %v3355_v5 = vmul.f32 0.70710677, %v7246_v58  ;;  %v7252_v45 = vadd.f32 %v3218_v39, %v7137_v15 }
 0xb89   : > { %v5531_v21 = vpop.eup %5530  ;;  %v3472_v20 = vadd.f32 1.0, %v5529_v10  ;;  %5544 = verf.f32 %v3352_v3  ;;  %v7255_v38 = vadd.f32 %v3107_v8, %v7141_v51  ;;  %v7258_v34 = vadd.f32 %v3220_v47, %v7143_v11 }
 0xb8a   : > { %v5533_v41 = vpop.eup %5532  ;;  %5546 = verf.f32 %v3354_v52  ;;  %v3588_v62 = vpack.c.bf16 %v3528_v18, %v7205_v31  ;;  %v3590_v54 = vpack.c.bf16 %v3530_v50, %v7208_v35  ;;  %v3535_v43 = vmul.f32 %v3471_v59, %v7194_v61 }
 0xb8b   : > { %v5535_v14 = vpop.eup %5534  ;;  %v3474_v44 = vadd.f32 1.0, %v5531_v21  ;;  %v3289_v19 = vmul.f32 0.5, %v3213_v56  ;;  %v3357_v9 = vmul.f32 0.70710677, %v7252_v45  ;;  %v7265_v39 = vmul.f32 %v3473_v57, %v7196_v32 }
 0xb8c   : > { %v3536_v8 = vmul.f32 %v3472_v20, %v7198_v30  ;;  %v3475_v2 = vadd.f32 1.0, %v5533_v41  ;;  %v3356_v47 = vmul.f32 0.70710677, %v7255_v38  ;;  %3914 = vmatprep.mubr.bf16.mxu1 %v3588_v62  ;;  %4011 = vmatprep.mubr.bf16.mxu0 %v3590_v54  ;;  %v5537_v31 = vpop.eup %5536  ;;  %v3288_v18 = vmul.f32 0.5, %v3102_v40 }
 0xb8d   : > { %5548 = verf.f32 %v3355_v5  ;;  %v3358_v35 = vmul.f32 0.70710677, %v7258_v34  ;;  %v7272_v61 = vadd.f32 %v7210_v46, %v7133_v16  ;;  %v7731_v32 = vpack.c.bf16 %v7184_v42, %v7179_v0 }
 0xb8e   : > { %v7732_v30 = vpack.c.bf16 %v7189_v33, %v7187_v4  ;;  %v3477_v56 = vadd.f32 1.0, %v5535_v14  ;;  %5550 = verf.f32 %v3357_v9  ;;  %v7282_v50 = vadd.f32 %v7212_v22, %v7137_v15 }
 0xb8f   : > { %3915 = vmatmul.mubr.bf16.vlgmr.msra.gmra.mrb[80].mxu1 %v7731_v32  ;;  %v7286_v10 = vadd.f32 %v7215_v12, %v7141_v51  ;;  %v5539_v46 = vpop.eup %5538  ;;  %v3538_v42 = vmul.f32 %v3474_v44, %v7202_v24  ;;  %v3290_v0 = vmul.f32 0.5, %v3215_v25  ;;  %5552 = verf.f32 %v3356_v47 }
 0xb90   : > { %4012 = vmatmul.mubr.bf16.vlgmr.msra.gmra.mrb[112].mxu0 %v7732_v30  ;;  %5045 = vmatpush3.bf16.msra.mxu1 %v7001_v55  ;;  %v3359_v4 = vmul.f32 0.70710677, %v7272_v61  ;;  %v5541_v33 = vpop.eup %5540  ;;  %v7293_v40 = vmul.f32 %v3475_v2, %v7222_v6  ;;  %v3476_v22 = vadd.f32 1.0, %v5537_v31  ;;  %5554 = verf.f32 %v3358_v35 }
 0xb91   : > { %5038 = vmatprep.subr.bf16.mxu1 %v7005_v26  ;;  %v3361_v12 = vmul.f32 0.70710677, %v7282_v50  ;;  %v5543_v59 = vpop.eup %5542  ;;  %v3479_v3 = vadd.f32 1.0, %v5541_v33  ;;  %v3360_v55 = vmul.f32 0.70710677, %v7286_v10  ;;  %v7299_v24 = vadd.f32 %v7217_v17, %v7143_v11 }
 0xb92   : > { %5556 = verf.f32 %v3359_v4  ;;  %v7302_v25 = vmul.f32 %v3477_v56, %v7224_v36  ;;  %v3481_v26 = vadd.f32 1.0, %v5543_v59  ;;  %v3592_v6 = vpack.c.bf16 %v3536_v8, %v7240_v48  ;;  %v7734_v59 = vld [vmem:[#allocation35_spill] sm:$0xff] }
 0xb93   : > { %5558 = verf.f32 %v3361_v12  ;;  %v5545_v21 = vpop.eup %5544  ;;  %v3478_v57 = vadd.f32 1.0, %v5539_v46  ;;  %v3543_v20 = vmul.f32 %v3479_v3, %v3287_v27  ;;  %v3362_v52 = vmul.f32 0.70710677, %v7299_v24 }
 0xb94   : > { %5046 = vmatpush3.bf16.msra.mxu1 %v7016_v7  ;;  %5560 = verf.f32 %v3360_v55  ;;  %v5547_v41 = vpop.eup %5546  ;;  %v3545_v17 = vmul.f32 %v3481_v26, %v3289_v19  ;;  %v3480_v5 = vadd.f32 1.0, %v5545_v21  ;;  %3922 = vmatprep.mubr.bf16.mxu1 %v3592_v6  ;;  %v3594_v36 = vpack.c.bf16 %v3538_v42, %v7243_v13 }
 0xb95   : > { %5039 = vmatprep.subr.bf16.mxu1 %v7070_v23  ;;  %v3591_v62 = vpack.c.bf16 %v3535_v43, %v7228_v28  ;;  %v3482_v54 = vadd.f32 1.0, %v5547_v41  ;;  %5562 = verf.f32 %v3362_v52  ;;  %v3593_v7 = vpack.c.bf16 %v7265_v39, %v7233_v49 }
 0xb96   : > { %v3595_v48 = vpack.c.bf16 %v3543_v20, %v7293_v40  ;;  %v3540_v27 = vmul.f32 %v3476_v22, %v7230_v60  ;;  %v3544_v14 = vmul.f32 %v3480_v5, %v3288_v18  ;;  %4019 = vmatprep.mubr.bf16.mxu0 %v3594_v36  ;;  %v3597_v23 = vpack.c.bf16 %v3545_v17, %v7302_v25  ;;  %v7733_v40 = vld [vmem:[#allocation34_spill] sm:$0xff]  ;;  %v7735_v5 = vld [vmem:[#allocation36_spill] sm:$0xff] }
 0xb97   : > { %3923 = vmatmul.mubr.bf16.gmra.mrb[84].mxu1 %v3591_v62  ;;  %v5549_v44 = vpop.eup %5548  ;;  %v3542_v19 = vmul.f32 %v3478_v57, %v7248_v53  ;;  %v3546_v13 = vmul.f32 %v3482_v54, %v3290_v0  ;;  %v3291_v2 = vmul.f32 0.5, %v7246_v58  ;;  %v3293_v31 = vmul.f32 0.5, %v7252_v45 }
 0xb98   : > { %4020 = vmatmul.mubr.bf16.gmra.mrb[116].mxu0 %v3593_v7  ;;  %5047 = vmatpush3.bf16.msra.mxu1 %v7075_v63  ;;  %v5551_v28 = vpop.eup %5550  ;;  %v3596_v43 = vpack.c.bf16 %v3544_v14, %v3540_v27  ;;  %v3483_v60 = vadd.f32 1.0, %v5549_v44  ;;  %v3295_v18 = vmul.f32 0.5, %v7272_v61  ;;  %v3292_v32 = vmul.f32 0.5, %v7255_v38 }
 0xb99   : > { %5040 = vmatprep.subr.bf16.mxu1 %v7080_v37  ;;  %v5553_v49 = vpop.eup %5552  ;;  %v3598_v9 = vpack.c.bf16 %v3546_v13, %v3542_v19  ;;  %v3485_v47 = vadd.f32 1.0, %v5551_v28  ;;  %v3297_v56 = vmul.f32 0.5, %v7282_v50  ;;  %v3294_v61 = vmul.f32 0.5, %v7258_v34 }
 0xb9a   : > { %v5555_v39 = vpop.eup %5554  ;;  %3930 = vmatprep.mubr.bf16.mxu1 %v3596_v43  ;;  %v3484_v63 = vadd.f32 1.0, %v5553_v49  ;;  %v3547_v46 = vmul.f32 %v3483_v60, %v3291_v2  ;;  %v7737_v43 = vld [vmem:[#allocation38_spill] sm:$0xff] }
 0xb9b   : > { %4027 = vmatprep.mubr.bf16.mxu0 %v3598_v9  ;;  %v3486_v30 = vadd.f32 1.0, %v5555_v39  ;;  %v3549_v4 = vmul.f32 %v3485_v47, %v3293_v31  ;;  %v7738_v9 = vld [vmem:[#allocation39_spill] sm:$0xff] }
 0xb9c   : > { %v5557_v8 = vpop.eup %5556  ;;  %5048 = vmatpush3.bf16.msra.mxu1 %v7084_v29  ;;  %v3296_v29 = vmul.f32 0.5, %v7286_v10  ;;  %v3548_v38 = vmul.f32 %v3484_v63, %v3292_v32  ;;  %v7739_v32 = vld [vmem:[#allocation40_spill] sm:$0xff] }
 0xb9d   : > { %v5559_v53 = vpop.eup %5558  ;;  %v3487_v35 = vadd.f32 1.0, %v5557_v8  ;;  %5041 = vmatprep.subr.bf16.mxu1 %v7090_v1  ;;  %v3298_v1 = vmul.f32 0.5, %v7299_v24  ;;  %v3550_v3 = vmul.f32 %v3486_v30, %v3294_v61 }
 0xb9e   : > { %v5561_v37 = vpop.eup %5560  ;;  %v3489_v58 = vadd.f32 1.0, %v5559_v53 }
 0xb9f   : > { %v3551_v42 = vmul.f32 %v3487_v35, %v3295_v18  ;;  %v3488_v0 = vadd.f32 1.0, %v5561_v37  ;;  %3931 = vmatmul.mubr.bf16.gmra.mrb[88].mxu1 %v3595_v48  ;;  %v5563_v45 = vpop.eup %5562  ;;  %v7736_v48 = vld [vmem:[#allocation37_spill] sm:$0xff] }
 0xba0   : > { %v3553_v33 = vmul.f32 %v3489_v58, %v3297_v56  ;;  %4028 = vmatmul.mubr.bf16.gmra.mrb[120].mxu0 %v3597_v23  ;;  %5049 = vmatpush3.bf16.msra.mxu1 %v7733_v40  ;;  %v3490_v50 = vadd.f32 1.0, %v5563_v45 }
 0xba1   : > { %v3552_v22 = vmul.f32 %v3488_v0, %v3296_v29  ;;  %v3599_v12 = vpack.c.bf16 %v3551_v42, %v3547_v46  ;;  %5042 = vmatprep.subr.bf16.mxu1 %v7734_v59 }
 0xba2   : > { %v3601_v10 = vpack.c.bf16 %v3553_v33, %v3549_v4  ;;  %v3554_v26 = vmul.f32 %v3490_v50, %v3298_v1 }
 0xba3   : > { %v3600_v6 = vpack.c.bf16 %v3552_v22, %v3548_v38 }
 0xba4   : > { %v3115_v55 = vpop.f32.mrb[64].mxu1  ;;  %v3228_v25 = vpop.f32.mrb[96].mxu0  ;;  %5050 = vmatpush3.bf16.msra.mxu1 %v7735_v5  ;;  %v3602_v36 = vpack.c.bf16 %v3554_v26, %v3550_v3 }
 0xba5   : > { %v3116_v34 = vadd.f32 %v3115_v55, %v7133_v16  ;;  %v3229_v21 = vadd.f32 %v3228_v25, %v7137_v15  ;;  %v3117_v24 = vpop.f32.mrb[65].mxu1  ;;  %v3230_v57 = vpop.f32.mrb[97].mxu0  ;;  %3938 = vmatprep.mubr.bf16.mxu1 %v3600_v6  ;;  %5043 = vmatprep.subr.bf16.mxu1 %v7736_v48 }
 0xba6   : > { %v3118_v20 = vadd.f32 %v3117_v24, %v7141_v51  ;;  %v3231_v52 = vadd.f32 %v3230_v57, %v7143_v11  ;;  %v3119_v41 = vpop.f32.mrb[66].mxu1  ;;  %v3232_v17 = vpop.f32.mrb[98].mxu0  ;;  %4035 = vmatprep.mubr.bf16.mxu0 %v3602_v36 }
 0xba7   : > { %v3363_v62 = vmul.f32 0.70710677, %v3116_v34  ;;  %v3121_v54 = vpop.f32.mrb[67].mxu1  ;;  %v3234_v7 = vpop.f32.mrb[99].mxu0  ;;  %v3365_v27 = vmul.f32 0.70710677, %v3229_v21  ;;  %3939 = vmatmul.mubr.bf16.gmra.mrb[92].mxu1 %v3599_v12  ;;  %v3120_v44 = vadd.f32 %v3119_v41, %v7133_v16  ;;  %v3233_v19 = vadd.f32 %v3232_v17, %v7137_v15 }
 0xba8   : > { %v3364_v14 = vmul.f32 0.70710677, %v3118_v20  ;;  %v3366_v23 = vmul.f32 0.70710677, %v3231_v52  ;;  %4036 = vmatmul.mubr.bf16.gmra.mrb[124].mxu0 %v3601_v10  ;;  %v3122_v13 = vadd.f32 %v3121_v54, %v7141_v51  ;;  %v3235_v28 = vadd.f32 %v3234_v7, %v7143_v11  ;;  %5051 = vmatpush3.bf16.msra.mxu1 %v7737_v43 }
 0xba9   : > { %5564 = verf.f32 %v3363_v62  ;;  %v3367_v49 = vmul.f32 0.70710677, %v3120_v44  ;;  %5044 = vmatprep.subr.bf16.mxu1 %v7738_v9  ;;  %v3369_v39 = vmul.f32 0.70710677, %v3233_v19  ;;  %v3299_v0 = vmul.f32 0.5, %v3116_v34 }
 0xbaa   : > { %5566 = verf.f32 %v3365_v27  ;;  %v3368_v60 = vmul.f32 0.70710677, %v3122_v13  ;;  %v3370_v2 = vmul.f32 0.70710677, %v3235_v28  ;;  %v3301_v38 = vmul.f32 0.5, %v3229_v21 }
 0xbab   : > { %5568 = verf.f32 %v3364_v14  ;;  %v3300_v22 = vmul.f32 0.5, %v3118_v20  ;;  %v3302_v50 = vmul.f32 0.5, %v3231_v52  ;;  %v3303_v59 = vmul.f32 0.5, %v3120_v44 }
 0xbac   : > { %5570 = verf.f32 %v3366_v23  ;;  %v3125_v8 = vpop.f32.mrb[68].mxu1  ;;  %v3238_v53 = vpop.f32.mrb[100].mxu0  ;;  %5052 = vmatpush3.bf16.msra.mxu1 %v7739_v32  ;;  %v7350_v3 = vmul.f32 0.5, %v3233_v19  ;;  %v7353_v34 = vmul.f32 0.5, %v3122_v13  ;;  %v7355_v24 = vmul.f32 0.5, %v3235_v28 }
 0xbad   : > { %5572 = verf.f32 %v3367_v49  ;;  %v3126_v47 = vadd.f32 %v3125_v8, %v7133_v16  ;;  %v3127_v31 = vpop.f32.mrb[69].mxu1  ;;  %v3239_v63 = vadd.f32 %v3238_v53, %v7137_v15  ;;  %v3240_v35 = vpop.f32.mrb[101].mxu0 }
 0xbae   : > { %5574 = verf.f32 %v3369_v39  ;;  %v3128_v18 = vadd.f32 %v3127_v31, %v7141_v51  ;;  %v3129_v37 = vpop.f32.mrb[70].mxu1  ;;  %v3241_v56 = vadd.f32 %v3240_v35, %v7143_v11  ;;  %v3242_v58 = vpop.f32.mrb[102].mxu0 }
 0xbaf   : > { %5576 = verf.f32 %v3368_v60  ;;  %v3371_v30 = vmul.f32 0.70710677, %v3126_v47  ;;  %v3131_v46 = vpop.f32.mrb[71].mxu1  ;;  %v3373_v42 = vmul.f32 0.70710677, %v3239_v63  ;;  %v3244_v29 = vpop.f32.mrb[103].mxu0  ;;  %v3130_v61 = vadd.f32 %v3129_v37, %v7133_v16 }
 0xbb0   : > { %5578 = verf.f32 %v3370_v2  ;;  %v3372_v45 = vmul.f32 0.70710677, %v3128_v18  ;;  %v3374_v4 = vmul.f32 0.70710677, %v3241_v56  ;;  %v3243_v33 = vadd.f32 %v3242_v58, %v7137_v15 }
 0xbb1   : > { %5580 = verf.f32 %v3371_v30  ;;  %v3132_v1 = vadd.f32 %v3131_v46, %v7141_v51  ;;  %v3375_v10 = vmul.f32 0.70710677, %v3130_v61  ;;  %v3245_v55 = vadd.f32 %v3244_v29, %v7143_v11 }
 0xbb2   : > { %5582 = verf.f32 %v3373_v42  ;;  %v3377_v57 = vmul.f32 0.70710677, %v3243_v33  ;;  %v7357_v52 = vmul.f32 0.5, %v3126_v47  ;;  %v7359_v41 = vmul.f32 0.5, %v3239_v63 }
 0xbb3   : > { %v5565_v40 = vpop.eup %5564  ;;  %5584 = verf.f32 %v3372_v45  ;;  %v3376_v17 = vmul.f32 0.70710677, %v3132_v1  ;;  %v7361_v7 = vmul.f32 0.5, %v3128_v18  ;;  %v7363_v48 = vmul.f32 0.5, %v3241_v56 }
 0xbb4   : > { %v5567_v12 = vpop.eup %5566  ;;  %v3135_v25 = vpop.f32.mrb[72].mxu1  ;;  %5586 = verf.f32 %v3374_v4  ;;  %v3491_v54 = vadd.f32 1.0, %v5565_v40  ;;  %v3378_v13 = vmul.f32 0.70710677, %v3245_v55  ;;  %v7369_v2 = vmul.f32 0.5, %v3130_v61 }
 0xbb5   : > { %v3248_v26 = vpop.f32.mrb[104].mxu0  ;;  %v5569_v6 = vpop.eup %5568  ;;  %5588 = verf.f32 %v3375_v10  ;;  %v3493_v44 = vadd.f32 1.0, %v5567_v12  ;;  %v3136_v39 = vadd.f32 %v3135_v25, %v7133_v16  ;;  %v7371_v47 = vmul.f32 0.5, %v3243_v33 }
 0xbb6   : > { %v3137_v21 = vpop.f32.mrb[73].mxu1  ;;  %v5571_v20 = vpop.eup %5570  ;;  %5590 = verf.f32 %v3377_v57  ;;  %v3492_v19 = vadd.f32 1.0, %v5569_v6  ;;  %v3249_v60 = vadd.f32 %v3248_v26, %v7137_v15  ;;  %v7374_v63 = vmul.f32 %v3491_v54, %v3299_v0 }
 0xbb7   : > { %v3250_v5 = vpop.f32.mrb[105].mxu0  ;;  %v3139_v36 = vpop.f32.mrb[74].mxu1  ;;  %5592 = verf.f32 %v3376_v17  ;;  %v3494_v49 = vadd.f32 1.0, %v5571_v20  ;;  %v3138_v53 = vadd.f32 %v3137_v21, %v7141_v51  ;;  %v7376_v35 = vmul.f32 0.5, %v3132_v1 }
 0xbb8   : > { %v5573_v62 = vpop.eup %5572  ;;  %v3252_v27 = vpop.f32.mrb[106].mxu0  ;;  %5594 = verf.f32 %v3378_v13  ;;  %v3379_v37 = vmul.f32 0.70710677, %v3136_v39  ;;  %v7378_v30 = vmul.f32 %v3493_v44, %v3301_v38  ;;  %v7380_v56 = vmul.f32 %v3492_v19, %v3300_v22 }
 0xbb9   : > { %v3141_v14 = vpop.f32.mrb[75].mxu1  ;;  %v5575_v23 = vpop.eup %5574  ;;  %v3495_v9 = vadd.f32 1.0, %v5573_v62  ;;  %v7382_v58 = vmul.f32 0.5, %v3245_v55  ;;  %v3381_v46 = vmul.f32 0.70710677, %v3249_v60  ;;  %v7384_v4 = vmul.f32 %v3494_v49, %v3302_v50 }
 0xbba   : > { %v7365_v28 = vpop.f32.mrb[107].mxu0  ;;  %v5577_v43 = vpop.eup %5576  ;;  %v3497_v18 = vadd.f32 1.0, %v5575_v23  ;;  %5596 = verf.f32 %v3379_v37  ;;  %v3380_v38 = vmul.f32 0.70710677, %v3138_v53  ;;  %v3140_v26 = vadd.f32 %v3139_v36, %v7133_v16 }
 0xbbb   : > { %v5579_v8 = vpop.eup %5578  ;;  %v7386_v61 = vmul.f32 %v3495_v9, %v3303_v59  ;;  %v3496_v0 = vadd.f32 1.0, %v5577_v43  ;;  %5598 = verf.f32 %v3381_v46  ;;  %v3251_v59 = vadd.f32 %v3250_v5, %v7143_v11 }
 0xbbc   : > { %v5581_v31 = vpop.eup %5580  ;;  %v3145_v42 = vpop.f32.mrb[76].mxu1  ;;  %v3498_v40 = vadd.f32 1.0, %v5579_v8  ;;  %v7393_v25 = vmul.f32 %v3497_v18, %v7350_v3  ;;  %5600 = verf.f32 %v3380_v38  ;;  %v3253_v17 = vadd.f32 %v3252_v27, %v7137_v15 }
 0xbbd   : > { %v5583_v32 = vpop.eup %5582  ;;  %v3258_v29 = vpop.f32.mrb[108].mxu0  ;;  %v3499_v12 = vadd.f32 1.0, %v5581_v31  ;;  %v3142_v62 = vadd.f32 %v3141_v14, %v7141_v51  ;;  %v3560_v3 = vmul.f32 %v3496_v0, %v7353_v34  ;;  %v3315_v23 = vmul.f32 0.5, %v3136_v39 }
 0xbbe   : > { %v5585_v45 = vpop.eup %5584  ;;  %v3147_v33 = vpop.f32.mrb[77].mxu1  ;;  %v3501_v50 = vadd.f32 1.0, %v5583_v32  ;;  %v7404_v44 = vmul.f32 0.5, %v3249_v60  ;;  %v3382_v5 = vmul.f32 0.70710677, %v3251_v59  ;;  %v3562_v36 = vmul.f32 %v3498_v40, %v7355_v24 }
 0xbbf   : > { %v3260_v1 = vpop.f32.mrb[109].mxu0  ;;  %v7388_v22 = vpop.f32.mrb[78].mxu1  ;;  %v3500_v20 = vadd.f32 1.0, %v5585_v45  ;;  %v7408_v13 = vmul.f32 %v3499_v12, %v7357_v52  ;;  %v7410_v43 = vmul.f32 0.5, %v3138_v53  ;;  %v3383_v49 = vmul.f32 0.70710677, %v3140_v26 }
 0xbc0   : > { %v7390_v10 = vpop.f32.mrb[110].mxu0  ;;  %v5587_v55 = vpop.eup %5586  ;;  %v7413_v27 = vmul.f32 %v3501_v50, %v7359_v41  ;;  %5602 = verf.f32 %v3382_v5  ;;  %v3385_v9 = vmul.f32 0.70710677, %v3253_v17  ;;  %v3384_v8 = vmul.f32 0.70710677, %v3142_v62 }
 0xbc1   : > { %v7397_v6 = vpop.f32.mrb[79].mxu1  ;;  %v7399_v57 = vpop.f32.mrb[111].mxu0  ;;  %v3502_v14 = vadd.f32 1.0, %v5587_v55  ;;  %v7416_v39 = vmul.f32 %v3500_v20, %v7361_v7  ;;  %5604 = verf.f32 %v3383_v49  ;;  %v3255_v52 = vadd.f32 %v7365_v28, %v7143_v11 }
 0xbc2   : > { %v5589_v21 = vpop.eup %5588  ;;  %5606 = verf.f32 %v3385_v9  ;;  %v7421_v41 = vadd.f32 %v3145_v42, %v7133_v16  ;;  %v7424_v53 = vadd.f32 %v3258_v29, %v7137_v15  ;;  %v7427_v18 = vadd.f32 %v3147_v33, %v7141_v51 }
 0xbc3   : > { %v5591_v54 = vpop.eup %5590  ;;  %v3503_v60 = vadd.f32 1.0, %v5589_v21  ;;  %5608 = verf.f32 %v3384_v8  ;;  %v7430_v37 = vmul.f32 %v3502_v14, %v7363_v48  ;;  %v3386_v46 = vmul.f32 0.70710677, %v3255_v52 }
 0xbc4   : > { %v5593_v19 = vpop.eup %5592  ;;  %v3505_v24 = vadd.f32 1.0, %v5591_v54  ;;  %v7433_v45 = vadd.f32 %v3260_v1, %v7143_v11  ;;  %v7435_v0 = vmul.f32 0.5, %v3251_v59  ;;  %v3319_v42 = vmul.f32 0.5, %v3140_v26 }
 0xbc5   : > { %v5595_v34 = vpop.eup %5594  ;;  %v3504_v31 = vadd.f32 1.0, %v5593_v19  ;;  %v3321_v40 = vmul.f32 0.5, %v3253_v17  ;;  %v3387_v29 = vmul.f32 0.70710677, %v7421_v41  ;;  %v7439_v12 = vmul.f32 %v3503_v60, %v7369_v2 }
 0xbc6   : > { %v5597_v7 = vpop.eup %5596  ;;  %v3506_v32 = vadd.f32 1.0, %v5595_v34  ;;  %v7442_v33 = vmul.f32 %v3505_v24, %v7371_v47  ;;  %5610 = verf.f32 %v3386_v46  ;;  %v3389_v48 = vmul.f32 0.70710677, %v7424_v53 }
 0xbc7   : > { %v5599_v28 = vpop.eup %5598  ;;  %v3568_v1 = vmul.f32 %v3504_v31, %v7376_v35  ;;  %v3507_v55 = vadd.f32 1.0, %v5597_v7  ;;  %v3320_v50 = vmul.f32 0.5, %v3142_v62  ;;  %v3388_v59 = vmul.f32 0.70710677, %v7427_v18 }
 0xbc8   : > { %v5601_v38 = vpop.eup %5600  ;;  %v3570_v26 = vmul.f32 %v3506_v32, %v7382_v58  ;;  %v3509_v21 = vadd.f32 1.0, %v5599_v28  ;;  %v3322_v20 = vmul.f32 0.5, %v3255_v52  ;;  %v3390_v2 = vmul.f32 0.70710677, %v7433_v45 }
 0xbc9   : > { %5612 = verf.f32 %v3387_v29  ;;  %v3604_v47 = vpack.c.bf16 %v3560_v3, %v7380_v56  ;;  %v3606_v17 = vpack.c.bf16 %v3562_v36, %v7384_v4  ;;  %v3150_v54 = vadd.f32 %v7388_v22, %v7133_v16 }
 0xbca   : > { %v5603_v5 = vpop.eup %5602  ;;  %v3508_v35 = vadd.f32 1.0, %v5601_v38  ;;  %5614 = verf.f32 %v3389_v48  ;;  %v3263_v62 = vadd.f32 %v7390_v10, %v7137_v15  ;;  %v3603_v58 = vpack.c.bf16 %v7386_v61, %v7374_v63 }
 0xbcb   : > { %v5605_v19 = vpop.eup %5604  ;;  %v7457_v49 = vmul.f32 %v3507_v55, %v3315_v23  ;;  %5616 = verf.f32 %v3388_v59  ;;  %3946 = vmatprep.mubr.bf16.mxu1 %v3604_v47  ;;  %4043 = vmatprep.mubr.bf16.mxu0 %v3606_v17  ;;  %v3391_v56 = vmul.f32 0.70710677, %v3150_v54  ;;  %v3605_v4 = vpack.c.bf16 %v7393_v25, %v7378_v30 }
 0xbcc   : > { %v5607_v16 = vpop.eup %5606  ;;  %v3511_v22 = vadd.f32 1.0, %v5605_v19  ;;  %5618 = verf.f32 %v3390_v2  ;;  %v3393_v3 = vmul.f32 0.70710677, %v3263_v62  ;;  %3947 = vmatmul.mubr.bf16.gmra.mrb[96].mxu1 %v3603_v58  ;;  %v3152_v15 = vadd.f32 %v7397_v6, %v7141_v51 }
 0xbcd   : > { %v5609_v10 = vpop.eup %5608  ;;  %v7464_v63 = vmul.f32 %v3509_v21, %v7404_v44  ;;  %v3513_v61 = vadd.f32 1.0, %v5607_v16  ;;  %5620 = verf.f32 %v3391_v56  ;;  %4044 = vmatmul.mubr.bf16.gmra.mrb[128].mxu0 %v3605_v4  ;;  %v3265_v23 = vadd.f32 %v7399_v57, %v7143_v11 }
 0xbce   : > { %v3572_v30 = vmul.f32 %v3508_v35, %v7410_v43  ;;  %v3575_v25 = vmul.f32 %v3511_v22, %v3319_v42  ;;  %v3512_v36 = vadd.f32 1.0, %v5609_v10  ;;  %5622 = verf.f32 %v3393_v3 }
 0xbcf   : > { %v3510_v14 = vadd.f32 1.0, %v5603_v5  ;;  %v7469_v9 = vmul.f32 %v3513_v61, %v3321_v40  ;;  %v3392_v34 = vmul.f32 0.70710677, %v3152_v15  ;;  %v3394_v51 = vmul.f32 0.70710677, %v3265_v23 }
 0xbd0   : > { %v5611_v6 = vpop.eup %5610  ;;  %v3576_v60 = vmul.f32 %v3512_v36, %v3320_v50  ;;  %v3608_v44 = vpack.c.bf16 %v3568_v1, %v7416_v39  ;;  %v3610_v8 = vpack.c.bf16 %v3570_v26, %v7430_v37  ;;  %v3607_v24 = vpack.c.bf16 %v7439_v12, %v7408_v13 }
 0xbd1   : > { %v3613_v11 = vpack.c.bf16 %v7469_v9, %v7464_v63  ;;  %v3514_v57 = vadd.f32 1.0, %v5611_v6  ;;  %5624 = verf.f32 %v3392_v34  ;;  %v3609_v43 = vpack.c.bf16 %v7442_v33, %v7413_v27 }
 0xbd2   : > { %5626 = verf.f32 %v3394_v51  ;;  %3954 = vmatprep.mubr.bf16.mxu1 %v3608_v44  ;;  %4051 = vmatprep.mubr.bf16.mxu0 %v3610_v8  ;;  %v3612_v31 = vpack.c.bf16 %v3576_v60, %v3572_v30  ;;  %v3611_v52 = vpack.c.bf16 %v3575_v25, %v7457_v49  ;;  %v3574_v7 = vmul.f32 %v3510_v14, %v7435_v0  ;;  %v7740_v60 = vld [vmem:[#allocation18_spill] sm:$0xff] }
 0xbd3   : > { %v5613_v39 = vpop.eup %5612  ;;  %v3578_v37 = vmul.f32 %v3514_v57, %v3322_v20  ;;  %v3323_v12 = vmul.f32 0.5, %v7421_v41  ;;  %v3327_v33 = vmul.f32 0.5, %v3150_v54  ;;  %v3325_v38 = vmul.f32 0.5, %v7424_v53 }
 0xbd4   : > { %v5615_v32 = vpop.eup %5614  ;;  %3955 = vmatmul.mubr.bf16.gmra.mrb[100].mxu1 %v3607_v24  ;;  %v3515_v42 = vadd.f32 1.0, %v5613_v39  ;;  %v3329_v1 = vmul.f32 0.5, %v3263_v62  ;;  %v3324_v17 = vmul.f32 0.5, %v7427_v18  ;;  %v3328_v5 = vmul.f32 0.5, %v3152_v15 }
 0xbd5   : > { %v5617_v13 = vpop.eup %5616  ;;  %4052 = vmatmul.mubr.bf16.gmra.mrb[132].mxu0 %v3609_v43  ;;  %3962 = vmatprep.mubr.bf16.mxu1 %v3612_v31  ;;  %v3614_v46 = vpack.c.bf16 %v3578_v37, %v3574_v7  ;;  %v3517_v27 = vadd.f32 1.0, %v5615_v32  ;;  %v3326_v54 = vmul.f32 0.5, %v7433_v45  ;;  %v3330_v58 = vmul.f32 0.5, %v3265_v23  ;;  %v7490_v45 = vld [vmem:[%s755_s29] ss:$0 sm:$0xff] }
 0xbd6   : > { %v5619_v28 = vpop.eup %5618  ;;  %v3579_v55 = vmul.f32 %v3515_v42, %v3323_v12  ;;  %v3516_v50 = vadd.f32 1.0, %v5617_v13  ;;  %v7742_v12 = vld [vmem:[#allocation20_spill] sm:$0xff] }
 0xbd7   : > { %v5621_v40 = vpop.eup %5620  ;;  %v3581_v21 = vmul.f32 %v3517_v27, %v3325_v38  ;;  %v3518_v20 = vadd.f32 1.0, %v5619_v28 }
 0xbd8   : > { %v5623_v29 = vpop.eup %5622  ;;  %v3519_v48 = vadd.f32 1.0, %v5621_v40  ;;  %v3580_v19 = vmul.f32 %v3516_v50, %v3324_v17 }
 0xbd9   : > { %v3521_v0 = vadd.f32 1.0, %v5623_v29  ;;  %v3582_v56 = vmul.f32 %v3518_v20, %v3326_v54 }
 0xbda   : > { %v3583_v59 = vmul.f32 %v3519_v48, %v3327_v33 }
 0xbdb   : > { %v5625_v26 = vpop.eup %5624  ;;  %v3585_v2 = vmul.f32 %v3521_v0, %v3329_v1 }
 0xbdc   : > { %v5627_v47 = vpop.eup %5626  ;;  %v3520_v35 = vadd.f32 1.0, %v5625_v26  ;;  %3963 = vmatmul.mubr.bf16.gmra.mrb[104].mxu1 %v3611_v52  ;;  %v3615_v41 = vpack.c.bf16 %v3583_v59, %v3579_v55  ;;  %v7743_v55 = vld [vmem:[#allocation21_spill] sm:$0xff] }
 0xbdd   : > { %v3522_v53 = vadd.f32 1.0, %v5627_v47  ;;  %v3617_v62 = vpack.c.bf16 %v3585_v2, %v3581_v21 }
 0xbde   : > { %v3584_v49 = vmul.f32 %v3520_v35, %v3328_v5 }
 0xbdf   : > { %v3586_v4 = vmul.f32 %v3522_v53, %v3330_v58  ;;  %v7744_v53 = vld [vmem:[#allocation22_spill] sm:$0xff] }
 0xbe0   : > { %v3616_v16 = vpack.c.bf16 %v3584_v49, %v3580_v19 }
 0xbe1   : > { %v3618_v22 = vpack.c.bf16 %v3586_v4, %v3582_v56 }
 0xbe2   : > { %3970 = vmatprep.mubr.bf16.mxu1 %v3616_v16  ;;  %v7745_v16 = vld [vmem:[#allocation23_spill] sm:$0xff] }
 0xbe4   : > { %3971 = vmatmul.mubr.bf16.gmra.mrb[108].mxu1 %v3615_v41 }
 0xbe5   : > { %4059 = vmatprep.mubr.bf16.mxu1 %v3614_v46 }
 0xbec   : > { %4060 = vmatmul.mubr.bf16.vlgmr.msra.gmra.mrb[112].mxu1 %v3613_v11  ;;  %v7741_v11 = vld [vmem:[#allocation19_spill] sm:$0xff] }
 0xbed   : > { %4067 = vmatprep.mubr.bf16.mxu1 %v3618_v22 }
 0xbf4   : > { %4068 = vmatmul.mubr.bf16.gmra.mrb[116].mxu1 %v3617_v62 }
 0xc62   : > { %v4704_v18 = vpop.f32.mrb[80].mxu1 }
 0xc63   : > { %v4768_v3 = vpop.f32.mrb[112].mxu0  ;;  %v4705_v15 = vpop.f32.mrb[81].mxu1 }
 0xc64   : > { %v4769_v10 = vpop.f32.mrb[113].mxu0  ;;  %v4706_v63 = vadd.f32 %v4705_v15, %v4704_v18  ;;  %v4707_v23 = vpop.f32.mrb[82].mxu1 }
 0xc65   : > { %v4770_v61 = vadd.f32 %v4769_v10, %v4768_v3  ;;  %v4771_v30 = vpop.f32.mrb[114].mxu0  ;;  %v4708_v25 = vpop.f32.mrb[83].mxu1 }
 0xc66   : > { %v4772_v36 = vpop.f32.mrb[115].mxu0  ;;  %v3917_v14 = vadd.f32 %v4706_v63, %v7490_v45  ;;  %v4709_v9 = vadd.f32 %v4708_v25, %v4707_v23 }
 0xc67   : > { %v4773_v34 = vadd.f32 %v4772_v36, %v4771_v30 }
 0xc68   : > { %v4014_v51 = vadd.f32 %v4770_v61, %v3917_v14  ;;  %v3920_v6 = vadd.f32 %v4709_v9, %v7490_v45 }
 0xc6a   : > { %v7495_v44 = vadd.f32 %v4014_v51, %v7740_v60  ;;  %v4017_v8 = vadd.f32 %v4773_v34, %v3920_v6  ;;  %v4710_v24 = vpop.f32.mrb[84].mxu1  ;;  %v7746_v34 = vld [vmem:[#allocation24_spill] sm:$0xff]  ;;  %v7747_v60 = vld [vmem:[#allocation25_spill] sm:$0xff] }
 0xc6b   : > { %v4774_v43 = vpop.f32.mrb[116].mxu0  ;;  %v4711_v31 = vpop.f32.mrb[85].mxu1 }
 0xc6c   : > { %4092 = vst [vmem:[#allocation2] sm:$0xff] %v7495_v44  ;;  %v4077_v57 = vadd.f32 %v4017_v8, %v7741_v11  ;;  %v4712_v52 = vadd.f32 %v4711_v31, %v4710_v24  ;;  %v4775_v39 = vpop.f32.mrb[117].mxu0  ;;  %v4713_v7 = vpop.f32.mrb[86].mxu1 }
 0xc6d   : > { %v4776_v37 = vadd.f32 %v4775_v39, %v4774_v43  ;;  %v4777_v32 = vpop.f32.mrb[118].mxu0  ;;  %v4714_v13 = vpop.f32.mrb[87].mxu1 }
 0xc6e   : > { %4093 = vst [vmem:[#allocation2 + $0x8] sm:$0xff] %v4077_v57  ;;  %v3925_v46 = vadd.f32 %v4712_v52, %v7490_v45  ;;  %v4715_v28 = vadd.f32 %v4714_v13, %v4713_v7  ;;  %v4778_v42 = vpop.f32.mrb[119].mxu0 }
 0xc6f   : > { %v4779_v40 = vadd.f32 %v4778_v42, %v4777_v32 }
 0xc70   : > { %v4022_v27 = vadd.f32 %v4776_v37, %v3925_v46  ;;  %v3928_v29 = vadd.f32 %v4715_v28, %v7490_v45 }
 0xc72   : > { %v4078_v33 = vadd.f32 %v4022_v27, %v7742_v12  ;;  %v4025_v48 = vadd.f32 %v4779_v40, %v3928_v29  ;;  %v4716_v38 = vpop.f32.mrb[88].mxu1  ;;  %v7748_v27 = vld [vmem:[#allocation26_spill] sm:$0xff] }
 0xc73   : > { %v4780_v1 = vpop.f32.mrb[120].mxu0  ;;  %v4717_v0 = vpop.f32.mrb[89].mxu1 }
 0xc74   : > { %4094 = vst [vmem:[#allocation2 + $0x10] sm:$0xff] %v4078_v33  ;;  %v4079_v50 = vadd.f32 %v4025_v48, %v7743_v55  ;;  %v4718_v59 = vadd.f32 %v4717_v0, %v4716_v38  ;;  %v4781_v26 = vpop.f32.mrb[121].mxu0  ;;  %v4719_v21 = vpop.f32.mrb[90].mxu1 }
 0xc75   : > { %v4782_v20 = vadd.f32 %v4781_v26, %v4780_v1  ;;  %v4783_v2 = vpop.f32.mrb[122].mxu0  ;;  %v4720_v47 = vpop.f32.mrb[91].mxu1  ;;  %v7749_v1 = vld [vmem:[#allocation27_spill] sm:$0xff] }
 0xc76   : > { %4095 = vst [vmem:[#allocation2 + $0x18] sm:$0xff] %v4079_v50  ;;  %v3933_v17 = vadd.f32 %v4718_v59, %v7490_v45  ;;  %v4721_v5 = vadd.f32 %v4720_v47, %v4719_v21  ;;  %v4784_v35 = vpop.f32.mrb[123].mxu0 }
 0xc77   : > { %v4785_v41 = vadd.f32 %v4784_v35, %v4783_v2 }
 0xc78   : > { %v4030_v54 = vadd.f32 %v4782_v20, %v3933_v17  ;;  %v3936_v58 = vadd.f32 %v4721_v5, %v7490_v45 }
 0xc7a   : > { %v4080_v62 = vadd.f32 %v4030_v54, %v7744_v53  ;;  %v4033_v19 = vadd.f32 %v4785_v41, %v3936_v58  ;;  %v4722_v49 = vpop.f32.mrb[92].mxu1  ;;  %v7750_v54 = vld [vmem:[#allocation28_spill] sm:$0xff] }
 0xc7b   : > { %v4786_v56 = vpop.f32.mrb[124].mxu0  ;;  %v4723_v4 = vpop.f32.mrb[93].mxu1 }
 0xc7c   : > { %4096 = vst [vmem:[#allocation2 + $0x20] sm:$0xff] %v4080_v62  ;;  %v4081_v22 = vadd.f32 %v4033_v19, %v7745_v16  ;;  %v4724_v18 = vadd.f32 %v4723_v4, %v4722_v49  ;;  %v4787_v3 = vpop.f32.mrb[125].mxu0  ;;  %v4725_v15 = vpop.f32.mrb[94].mxu1  ;;  %v7751_v49 = vld [vmem:[#allocation29_spill] sm:$0xff] }
 0xc7d   : > { %v4788_v10 = vadd.f32 %v4787_v3, %v4786_v56  ;;  %v4789_v63 = vpop.f32.mrb[126].mxu0  ;;  %v4726_v61 = vpop.f32.mrb[95].mxu1 }
 0xc7e   : > { %4097 = vst [vmem:[#allocation2 + $0x28] sm:$0xff] %v4081_v22  ;;  %v3941_v23 = vadd.f32 %v4724_v18, %v7490_v45  ;;  %v4727_v30 = vadd.f32 %v4726_v61, %v4725_v15  ;;  %v4790_v25 = vpop.f32.mrb[127].mxu0 }
 0xc7f   : > { %v4791_v36 = vadd.f32 %v4790_v25, %v4789_v63 }
 0xc80   : > { %v4038_v14 = vadd.f32 %v4788_v10, %v3941_v23  ;;  %v3944_v9 = vadd.f32 %v4727_v30, %v7490_v45 }
 0xc82   : > { %v4082_v51 = vadd.f32 %v4038_v14, %v7746_v34  ;;  %v4041_v6 = vadd.f32 %v4791_v36, %v3944_v9 }
 0xc84   : > { %4098 = vst [vmem:[#allocation2 + $0x30] sm:$0xff] %v4082_v51  ;;  %v4083_v8 = vadd.f32 %v4041_v6, %v7747_v60 }
 0xc86   : > { %4099 = vst [vmem:[#allocation2 + $0x38] sm:$0xff] %v4083_v8  ;;  %v7752_v8 = vld [vmem:[#allocation30_spill] sm:$0xff] }
 0xc9f   : > { %v4728_v24 = vpop.f32.mrb[96].mxu1 }
 0xca0   : > { %v4792_v11 = vpop.f32.mrb[128].mxu0  ;;  %v4729_v57 = vpop.f32.mrb[97].mxu1 }
 0xca1   : > { %v4730_v43 = vadd.f32 %v4729_v57, %v4728_v24  ;;  %v4793_v31 = vpop.f32.mrb[129].mxu0  ;;  %v4731_v52 = vpop.f32.mrb[98].mxu1  ;;  %v7753_v57 = vld [vmem:[#allocation31_spill] sm:$0xff] }
 0xca2   : > { %v4794_v39 = vadd.f32 %v4793_v31, %v4792_v11  ;;  %v4795_v7 = vpop.f32.mrb[130].mxu0  ;;  %v4732_v37 = vpop.f32.mrb[99].mxu1 }
 0xca3   : > { %v3949_v32 = vadd.f32 %v4730_v43, %v7490_v45  ;;  %v4733_v13 = vadd.f32 %v4732_v37, %v4731_v52  ;;  %v4796_v46 = vpop.f32.mrb[131].mxu0 }
 0xca4   : > { %v4797_v28 = vadd.f32 %v4796_v46, %v4795_v7 }
 0xca5   : > { %v4046_v42 = vadd.f32 %v4794_v39, %v3949_v32  ;;  %v3952_v40 = vadd.f32 %v4733_v13, %v7490_v45 }
 0xca7   : > { %v4084_v29 = vadd.f32 %v4046_v42, %v7748_v27  ;;  %v4049_v12 = vadd.f32 %v4797_v28, %v3952_v40  ;;  %v4734_v33 = vpop.f32.mrb[100].mxu1  ;;  %v7754_v42 = vld [vmem:[#allocation32_spill] sm:$0xff] }
 0xca8   : > { %v4798_v48 = vpop.f32.mrb[132].mxu0  ;;  %v4735_v38 = vpop.f32.mrb[101].mxu1 }
 0xca9   : > { %4100 = vst [vmem:[#allocation2 + $0x40] sm:$0xff] %v4084_v29  ;;  %v4085_v0 = vadd.f32 %v4049_v12, %v7749_v1  ;;  %v4736_v55 = vadd.f32 %v4735_v38, %v4734_v33  ;;  %v4799_v50 = vpop.f32.mrb[133].mxu0  ;;  %v4737_v59 = vpop.f32.mrb[102].mxu1  ;;  %v7755_v29 = vld [vmem:[#allocation33_spill] sm:$0xff]  ;;  %v4115_v33 = vsel (!%p4576_p1), %vm4114_vm2, %v7495_v44, 0.0  ;;  %v5645_v38 = vld [vmem:[%s7757_s19 + $0x8] sm:$0xff] (!%p4576_p1)  }
 0xcaa   : > { %v4800_v26 = vadd.f32 %v4799_v50, %v4798_v48  ;;  %v4801_v21 = vpop.f32.mrb[134].mxu0  ;;  %v4738_v20 = vpop.f32.mrb[103].mxu1  ;;  %4116 = vadd.xlane.f32.xlu0 (!%p4576_p1), %v4115_v33  ;;  %v5754_v48 = vmov (!%p4576_p1), 0.0  }
 0xcab   : > { %4101 = vst [vmem:[#allocation2 + $0x48] sm:$0xff] %v4085_v0  ;;  %v3957_v2 = vadd.f32 %v4736_v55, %v7490_v45  ;;  %v4739_v47 = vadd.f32 %v4738_v20, %v4737_v59  ;;  %v4802_v17 = vpop.f32.mrb[135].mxu0  ;;  %5017 = vmatprep.subr.bf16.mxu0 (!%p4576_p1), %v5754_v48  ;;  %v5648_v20 = vld [vmem:[%s7757_s19 + $0x20] sm:$0xff] (!%p4576_p1)   ;;  %5033 = vmatprep.mubr.msk.bf16.mxu0 (!%p4576_p1), %vm5755_vm3, %v5754_v48 }
 0xcac   : > { %v4803_v5 = vadd.f32 %v4802_v17, %v4801_v21  ;;  %v5647_v21 = vld [vmem:[%s7757_s19 + $0x18] sm:$0xff] (!%p4576_p1)  }
 0xcad   : > { %v4054_v35 = vadd.f32 %v4800_v26, %v3957_v2  ;;  %v3960_v41 = vadd.f32 %v4739_v47, %v7490_v45  ;;  %v5646_v26 = vld [vmem:[%s7757_s19 + $0x10] sm:$0xff] (!%p4576_p1)   ;;  %v5651_v47 = vld [vmem:[%s7757_s19 + $0x38] sm:$0xff] (!%p4576_p1)  }
 0xcae   : > { %v5650_v2 = vld [vmem:[%s7757_s19 + $0x30] sm:$0xff] (!%p4576_p1)  }
 0xcaf   : > { %v4086_v58 = vadd.f32 %v4054_v35, %v7750_v54  ;;  %v4057_v53 = vadd.f32 %v4803_v5, %v3960_v41  ;;  %v4740_v62 = vpop.f32.mrb[104].mxu1  ;;  %v4112_v54 = vld [vmem:[%s7758_s24] sm:$0x1] (!%p4576_p1) }
 0xcb0   : > { %v4741_v19 = vpop.f32.mrb[105].mxu1 }
 0xcb1   : > { %4102 = vst [vmem:[#allocation2 + $0x50] sm:$0xff] %v4086_v58  ;;  %v4087_v56 = vadd.f32 %v4057_v53, %v7751_v49  ;;  %v4742_v4 = vadd.f32 %v4741_v19, %v4740_v62  ;;  %v4743_v16 = vpop.f32.mrb[106].mxu1  ;;  %v4113_v53 = vld [vmem:[%s7759_s18] sm:$0x1] (!%p4576_p1) }
 0xcb2   : > { %v4744_v22 = vpop.f32.mrb[107].mxu1 }
 0xcb3   : > { %4103 = vst [vmem:[#allocation2 + $0x58] sm:$0xff] %v4087_v56  ;;  %v4745_v18 = vadd.f32 %v4744_v22, %v4743_v16  ;;  %v3965_v36 = vadd.f32 %v4742_v4, %v7490_v45  ;;  %v4147_v56 = vld [vmem:[%s7760_s20] sm:$0x1] (!%p4576_p1) }
 0xcb5   : > { %v3968_v51 = vadd.f32 %v4745_v18, %v7490_v45 }
 0xcb7   : > { %v4746_v3 = vpop.f32.mrb[108].mxu1 }
 0xcb8   : > { %v4747_v15 = vpop.f32.mrb[109].mxu1 }
 0xcb9   : > { %v4748_v10 = vadd.f32 %v4747_v15, %v4746_v3  ;;  %v4749_v63 = vpop.f32.mrb[110].mxu1 }
 0xcba   : > { %v4750_v61 = vpop.f32.mrb[111].mxu1 }
 0xcbb   : > { %v4751_v23 = vadd.f32 %v4750_v61, %v4749_v63  ;;  %v3973_v39 = vadd.f32 %v4748_v10, %v7490_v45 }
 0xcbd   : > { %v3976_v13 = vadd.f32 %v4751_v23, %v7490_v45  ;;  %v5644_v45 = vld [vmem:[%s7757_s19] sm:$0xff] (!%p4576_p1)  }
 0xcbe   : > { %5018 = vmatpush3.bf16.msra.mxu0 (!%p4576_p1), %v5644_v45 }
 0xcbf   : > { %v4804_v30 = vpop.f32.mrb[112].mxu1  ;;  %5019 = vmatprep.subr.bf16.mxu0 (!%p4576_p1), %v5754_v48 }
 0xcc0   : > { %v4805_v25 = vpop.f32.mrb[113].mxu1 }
 0xcc1   : > { %v4806_v14 = vadd.f32 %v4805_v25, %v4804_v30  ;;  %v4807_v9 = vpop.f32.mrb[114].mxu1 }
 0xcc2   : > { %v4808_v34 = vpop.f32.mrb[115].mxu1  ;;  %5020 = vmatpush3.bf16.msra.mxu0 (!%p4576_p1), %v5645_v38 }
 0xcc3   : > { %v4062_v6 = vadd.f32 %v4806_v14, %v3965_v36  ;;  %v4809_v60 = vadd.f32 %v4808_v34, %v4807_v9  ;;  %5021 = vmatprep.subr.bf16.mxu0 (!%p4576_p1), %v5754_v48 }
 0xcc5   : > { %v4088_v24 = vadd.f32 %v4062_v6, %v7752_v8  ;;  %v4065_v11 = vadd.f32 %v4809_v60, %v3968_v51 }
 0xcc6   : > { %5022 = vmatpush3.bf16.msra.mxu0 (!%p4576_p1), %v5646_v26 }
 0xcc7   : > { %4104 = vst [vmem:[#allocation2 + $0x60] sm:$0xff] %v4088_v24  ;;  %v4089_v43 = vadd.f32 %v4065_v11, %v7753_v57  ;;  %v4810_v31 = vpop.f32.mrb[116].mxu1  ;;  %5023 = vmatprep.subr.bf16.mxu0 (!%p4576_p1), %v5754_v48 }
 0xcc8   : > { %v4811_v52 = vpop.f32.mrb[117].mxu1 }
 0xcc9   : > { %4105 = vst [vmem:[#allocation2 + $0x68] sm:$0xff] %v4089_v43  ;;  %v4812_v7 = vadd.f32 %v4811_v52, %v4810_v31  ;;  %v4813_v37 = vpop.f32.mrb[118].mxu1 }
 0xcca   : > { %v4814_v32 = vpop.f32.mrb[119].mxu1  ;;  %5024 = vmatpush3.bf16.msra.mxu0 (!%p4576_p1), %v5647_v21 }
 0xccb   : > { %v4070_v46 = vadd.f32 %v4812_v7, %v3973_v39  ;;  %v4815_v28 = vadd.f32 %v4814_v32, %v4813_v37  ;;  %4111 = sbr.rel (%p4576_p1) target bundleno = 3771 (0xebb), region = 96  ;;  %5025 = vmatprep.subr.bf16.mxu0 (!%p4576_p1), %v5754_v48 }
 0xccd   : > { %v4090_v40 = vadd.f32 %v4070_v46, %v7754_v42  ;;  %v4073_v27 = vadd.f32 %v4815_v28, %v3976_v13 }
 0xcce   : > { %5026 = vmatpush3.bf16.msra.mxu0 (!%p4576_p1), %v5648_v20 }
 0xccf   : > { %4106 = vst [vmem:[#allocation2 + $0x70] sm:$0xff] %v4090_v40  ;;  %v4091_v12 = vadd.f32 %v4073_v27, %v7755_v29  ;;  %5027 = vmatprep.subr.bf16.mxu0 (!%p4576_p1), %v5754_v48 }
 0xcd1   : > { %4107 = vst [vmem:[#allocation2 + $0x78] sm:$0xff] %v4091_v12 }
 0xd37   : > { %v4117_v1 = vpop.xlane.xlu0 %4116 }
 0xd38   : > { %v4118_v0 = vmul.f32 0.0078125, %v4117_v1 }
 0xd3a   : > { %v4119_v55 = vsub.f32 %v7495_v44, %v4118_v0  ;;  %v5649_v44 = vld [vmem:[%s7757_s19 + $0x28] sm:$0xff]  }
 0xd3b   : > { %5028 = vmatpush3.bf16.msra.mxu0 %v5649_v44 }
 0xd3c   : > { %v4120_v50 = vmul.f32 %v4119_v55, %v4119_v55  ;;  %5029 = vmatprep.subr.bf16.mxu0 %v5754_v48 }
 0xd3e   : > { %v4121_v59 = vsel %vm4114_vm2, %v4120_v50, 0.0 }
 0xd3f   : > { %4122 = vadd.xlane.f32.xlu0 %v4121_v59  ;;  %5030 = vmatpush3.bf16.msra.mxu0 %v5650_v2 }
 0xd40   : > { %5031 = vmatprep.subr.bf16.mxu0 %v5754_v48 }
 0xd43   : > { %5032 = vmatpush3.bf16.msra.mxu0 %v5651_v47 }
 0xdcc   : > { %v4123_v17 = vpop.xlane.xlu0 %4122 }
 0xdcd   : > { %v4124_v5 = vmul.f32 0.0078125, %v4123_v17 }
 0xdcf   : > { %v4125_v35 = vadd.f32 1e-12, %v4124_v5 }
 0xdd1   : > { %5652 = vrsqrt.f32 %v4125_v35 }
 0xddb   : > { %v5653_v41 = vpop.eup %5652 }
 0xddc   : > { %v4127_v58 = vmul.f32 %v5653_v41, %v4119_v55 }
 0xdde   : > { %v4128_v62 = vmul.f32 %v4127_v58, %v4112_v54 }
 0xde0   : > { %v4129_v19 = vadd.f32 %v4128_v62, %v4113_v53 }
 0xde2   : > { %v4130_v49 = vpack.c.bf16 %v4129_v19, %v4129_v19 }
 0xde4   : > { %5034 = vmatmul.mubr.bf16.vlgmr.msra.gmra.mrb[0].mxu0 %v4130_v49 }
 0xeb7   : > { %v4230_v4 = vpop.f32.mrb[0].mxu0 }
 0xeb8   : > { %v4231_v16 = vadd.f32 %v4230_v4, %v4147_v56  ;;  %v5035_v22 = vpop.f32.mrb[1].mxu0 }
 0xeb9   : > { %v4233_v18 = vpop.f32.mrb[2].mxu0 }
 0xeba   : > { %4236 = vst [vmem:[%s5989_s15] sm:$0x1] %v4231_v16  ;;  %v5036_v3 = vpop.f32.mrb[3].mxu0 }
 0xebb PF: > { %s7761_s17 = sld [smem:[#allocation9_spill]]  ;;  %s7763_s22 = sld [smem:[#allocation49_spill]] }
 0xebc   : > { %s4250_s16 = sshll.u32 %s5989_s15, 4  ;;  %s7764_s5 = sand.u32 1, %s5724_s25   ;;  %s4251_s16 = int_to_ptr.vmem [resolvable:$true] %s4250_s16 }
 0xebd   : > { %s4238_s3 = scalar_lea.sflag [#allocation4], %s7764_s5  ;;  %s5654_s21 = scalar_lea.vmem %s4251_s16, 16 }
 0xebe   : > { %p5655_p2 = scmp.ne.s32.totalorder %s4251_s16, %s5654_s21  ;;  %s5756_s28 = smov [#allocation3]  }
 0xebf   : > { %s5658_s24 = sshll.u32 %s5756_s28, 4  ;;  %s5659_s24 = int_to_ptr.vmem [resolvable:$false] %s5658_s24 }
 0xec0   : > { %p5656_p4 = pnand %p5655_p2, %p5896_p3  ;;  %s5660_s29 = scalar_lea.vmem %s5659_s24, 32 }
 0xec1   : > { %s4585_s14 = sshll.u32 %s7761_s17, 4  ;;  %p5661_p6 = scmp.lt.s32.totalorder %s4251_s16, %s5659_s24 }
 0xec2   : > { %s7568_s30 = scalar_lea.hbm %s7763_s22, %s4585_s14  ;;  %p5657_p5 = pneg %p5656_p4 }
 0xec3   : > { %p5662_p7 = scmp.lt.s32.totalorder %s5660_s29, %s5654_s21 }
 0xec5   : > { %p5663_p8 = por %p5662_p7, %p5661_p6 }
 0xec7   : > { %p5664_p10 = pnand %p5663_p8, %p5657_p5 }
 0xec9   : > { %5667 = shalt.err (!%p5664_p10)
}
 0xeca   : > { %s5668_s15 = scalar_lea.hbm %s7568_s30, 16  ;;  %s5672_s0 = scalar_lea.hbm %s7763_s22, 32 }
 0xecb   : > { %p5669_p11 = scmp.ne.s32.totalorder %s7568_s30, %s5668_s15  ;;  %p5673_p0 = scmp.lt.u32.totalorder %s7568_s30, %s7763_s22 }
 0xecc   : > { %p5674_p1 = scmp.lt.u32.totalorder %s5672_s0, %s5668_s15  ;;  %p5676_p4 = scmp.lt.u32.totalorder %s5668_s15, %s7568_s30 }
 0xecd   : > { %p5670_p12 = pnand %p5669_p11, %p5896_p3 }
 0xece   : > { %p5675_p2 = por %p5674_p1, %p5673_p0 }
 0xecf   : > { %p5671_p13 = pneg %p5670_p12 }
 0xed0   : > { %p5677_p5 = por %p5676_p4, %p5675_p2 }
 0xed2   : > { %p5678_p6 = pnand %p5677_p5, %p5671_p13 }
 0xed4   : > { %5681 = shalt.err (!%p5678_p6)
}
 0xed5   : > { %5071 = dma.vmem_to_hbm [thread:$0]  (%p5896_p3), %s4251_s16, 16, %s7568_s30, %s4238_s3  }
 0xed6 PF: > { %s7765_s17 = sld [smem:[#allocation12_spill]]  ;;  %s7766_s14 = sld [smem:[#allocation6_spill]] }
 0xedc   : > { %p5077_p7 = scmp.ge.s32.totalorder %s7765_s17, 2  ;;  %s4262_s26 = sand.u32 1, %s7766_s14  }
 0xedd   : > { %s4263_s5 = scalar_lea.sflag [#allocation4], %s4262_s26 }
 0xede   : > { %p5074_p8 = pnand %p5077_p7, %p5906_p9 }
 0xee0   : > { %5715 = dma.done.wait (!%p5074_p8), %s4263_s5, 16  }
 0xee1   : > { %5717 = vsyncadd (!%p5074_p8), %s4263_s5, 4294967280  ;;  %s30_s30 = sadd.s32 1, %s7765_s17   ;;  %s7768_s21 = sld [smem:[#allocation7_spill]] }
 0xee2   : > { %p27_p10 = scmp.ge.s32.totalorder %s30_s30, 6   ;;  %s7769_s26 = sld [smem:[#allocation17_spill]] }
 0xee3   : > { %s7770_s27 = sld [smem:[#allocation10_spill]]  ;;  %s7771_s28 = sld [smem:[#allocation11_spill]] }
 0xee4   : > { %s7772_s29 = sld [smem:[#allocation13_spill]]  ;;  %s7773_s0 = sld [smem:[#allocation15_spill]] }
 0xee5   : > { %s7774_s24 = smov %s5724_s25  ;;  %29 = sbr.rel (!%p27_p10) target bundleno = 15 (0xf), region = 167 }
 0xee7   : > { %s7775_s25 = smov %s7768_s21 }
 0xeec   :  { %4267 = vsyncpa [#allocation4], 1 }
 0xeed   :  { %4269 = vsyncpa [#allocation4 + $0x1], 1 }

</bundles_post_ra>
